<compile_context>
chip_gen: v6e
topology: v6e:2x2x1
jax: 0.10.0
libtpu: 0.0.40
codegen_flags: <defaults>
</compile_context>

<pallas_src>
import functools

import jax
import jax.numpy as jnp
from jax.experimental import pallas as pl
from jax.experimental.pallas import tpu as pltpu


_LANES = 128  # distances packed per output "super-row"


def _cdiv(a, b):
    return -(-a // b)


def _round_up(a, b):
    return _cdiv(a, b) * b


def _vmem_budget_and_limit():
    """Generation-aware (budget_for_tiles, vmem_limit_bytes)."""
    cap = None
    try:
        cap = getattr(pltpu.get_tpu_info(), "vmem_capacity_bytes", None)
    except Exception:  # pragma: no cover - conservative fallback
        cap = None
    if not cap:
        cap = 64 * 1024 * 1024  # assume v7x-class per-core VMEM if unknown
    limit = min(cap // 2, 64 * 1024 * 1024)   # 64 MiB on v5e/v6e, 32 MiB on v7x
    budget = (limit * 3) // 4                 # headroom for compiler internals
    return budget, limit


def _gaussian_rbf_kernel(x_ref, w_ref, off_ref, y_ref, *, coeff):
    # x_ref:   (TB, 128)           f32  distances, lane-dense
    # w_ref:   (128, 128*n_rbf)    bf16 0/1 fan-out matrix
    # off_ref: (1, 128*n_rbf)      f32  offsets tiled 128x
    # y_ref:   (TB, 128*n_rbf)     packed output (same memory as (M, n_rbf))
    x = x_ref[...]

    # bf16x3 split of the f32 distances: xh + xm + xl == x to <= 1 ulp, so the
    # MXU fan-out below is (near-)exact regardless of matmul precision.
    xh = x.astype(jnp.bfloat16)
    r1 = x - xh.astype(jnp.float32)
    xm = r1.astype(jnp.bfloat16)
    xl = (r1 - xm.astype(jnp.float32)).astype(jnp.bfloat16)

    w = w_ref[...]
    # MXU does the lane fan-out: x_rep[p, d] == x[p, d // n_rbf].
    x_rep = (jnp.dot(xh, w, preferred_element_type=jnp.float32)
             + jnp.dot(xm, w, preferred_element_type=jnp.float32)
             + jnp.dot(xl, w, preferred_element_type=jnp.float32))

    d = x_rep - off_ref[...]                              # (TB, 128*n_rbf) f32
    y_ref[...] = jnp.exp(coeff * (d * d)).astype(y_ref.dtype)


@functools.partial(
    jax.jit,
    static_argnames=("coeff", "tb", "n_rows_out", "out_dtype", "vmem_limit"))
def _rbf_pallas(x2d, w, off_row, *, coeff, tb, n_rows_out, out_dtype, vmem_limit):
    rows_in, lanes = x2d.shape                            # lanes == 128
    ncols = off_row.shape[1]                              # 128 * n_rbf
    out_dt = jnp.dtype(out_dtype)
    grid = (pl.cdiv(n_rows_out, tb),)
    kernel = functools.partial(_gaussian_rbf_kernel, coeff=coeff)

    flops = 3 * 2 * lanes * rows_in * ncols + 4 * rows_in * ncols
    bytes_accessed = (rows_in * lanes * 4                 # x read
                      + n_rows_out * ncols * out_dt.itemsize  # y write
                      + lanes * ncols * 2                 # fan-out matrix
                      + ncols * 4)                        # tiled offsets

    return pl.pallas_call(
        kernel,
        out_shape=jax.ShapeDtypeStruct((n_rows_out, ncols), out_dt),
        grid_spec=pltpu.PrefetchScalarGridSpec(
            num_scalar_prefetch=0,
            grid=grid,
            in_specs=[
                pl.BlockSpec((tb, lanes), lambda i: (i, 0)),       # distances
                pl.BlockSpec((lanes, ncols), lambda i: (0, 0)),    # W (const)
                pl.BlockSpec((1, ncols), lambda i: (0, 0)),        # offsets
            ],
            out_specs=pl.BlockSpec((tb, ncols), lambda i: (i, 0)),
        ),
        compiler_params=pltpu.CompilerParams(
            dimension_semantics=("parallel",),
            vmem_limit_bytes=vmem_limit,
        ),
        cost_estimate=pl.CostEstimate(
            flops=flops,
            transcendentals=rows_in * ncols,
            bytes_accessed=bytes_accessed,
        ),
    )(x2d, w, off_row)


class GaussianRBF:
    """JAX/Pallas port of the PyTorch GaussianRBF module (forward only)."""

    def __init__(self, n_rbf: int, cutoff: float, start: float = 0.0,
                 trainable: bool = False):
        # `trainable` only affects training (nn.Parameter vs buffer); the
        # forward math is identical, so it is accepted and ignored here.
        self.n_rbf = n_rbf
        offsets = jnp.linspace(start, cutoff, n_rbf, dtype=jnp.float32)
        # Same as reference: n_rbf == 1 or start == cutoff gives widths == 0
        # and coeff == -inf, identical to the PyTorch module.
        widths = jnp.abs(offsets[1] - offsets[0]) * jnp.ones_like(offsets)
        self.offsets = offsets                            # (n_rbf,)
        self.widths = widths                              # (n_rbf,)
        self.coeff = float((-0.5 / (widths ** 2))[0])     # exact f32 value

        ncols = _LANES * self.n_rbf
        # Constant 0/1 fan-out matrix: W[q, d] = 1  iff  q == d // n_rbf.
        q = jnp.arange(_LANES)
        dcol = jnp.arange(ncols) // n_rbf
        self._w = (q[:, None] == dcol[None, :]).astype(jnp.bfloat16)
        # Offsets tiled across the packed lane dim: off_row[d] = offsets[d % n_rbf].
        self._off_row = jnp.tile(offsets, _LANES).reshape(1, ncols)

        self._vmem_budget, self._vmem_limit = _vmem_budget_and_limit()

    def _pick_tiling(self, n_rows: int, out_itemsize: int, tile_rows):
        """Choose (tb, n_rows_ker, grid) under the generation-aware budget."""
        ncols = _LANES * self.n_rbf
        # Per tb-row VMEM: output block (double-buffered) + two f32
        # temporaries (x_rep, d) + input block (double-buffered).
        per_row = 2 * ncols * out_itemsize + 2 * ncols * 4 + 2 * _LANES * 4
        const_b = 2 * (_LANES * ncols * 2) + 2 * (8 * ncols * 4)  # W + offsets

        if n_rows < 8:
            tb, n_rows_ker = 8, 8                # single, full (validated) block
        else:
            n_rows_ker = n_rows
            tb = max(8, ((self._vmem_budget - const_b) // per_row) // 8 * 8)
            tb = min(tb, 512)
            if tile_rows is not None:
                tb = min(tb, max(8, (tile_rows // 8) * 8))
            tb = min(tb, (n_rows // 8) * 8)      # block never exceeds the array
            if n_rows >= 16:                     # keep >=2 steps (v7x megacore)
                tb = min(tb, max(8, _round_up(_cdiv(n_rows, 2), 8)))
            tb = max(tb, 8)
        grid = _cdiv(n_rows_ker, tb)
        return tb, n_rows_ker, grid

    def __call__(self, inputs: jnp.ndarray, *, tile_rows=None,
                 out_dtype=jnp.float32) -> jnp.ndarray:
        inputs = jnp.asarray(inputs, jnp.float32)
        orig_shape = inputs.shape
        x_flat = inputs.reshape(-1)
        m = int(x_flat.shape[0])
        out_dt = jnp.dtype(out_dtype)

        n_rows = _cdiv(m, _LANES)                         # output super-rows
        tb, n_rows_ker, grid = self._pick_tiling(n_rows, out_dt.itemsize,
                                                 tile_rows)
        rows_in = grid * tb                               # input: full blocks

        x2d = jnp.pad(x_flat, (0, rows_in * _LANES - m)).reshape(rows_in, _LANES)
        y2d = _rbf_pallas(x2d, self._w, self._off_row,
                          coeff=self.coeff, tb=tb, n_rows_out=n_rows_ker,
                          out_dtype=out_dt.name, vmem_limit=self._vmem_limit)

        # (rows, 128*n_rbf) -> (rows*128, n_rbf) is a free row-major reshape.
        y = y2d.reshape(n_rows_ker * _LANES, self.n_rbf)
        if n_rows_ker * _LANES != m:
            # TODO(synk): ragged edge counts still cost one re-copy of the
            # output; have the consumer accept a leading dim padded to a
            # multiple of 128 (or fuse the expansion) to remove it.
            y = y[:m]
        return y.reshape(*orig_shape, self.n_rbf)


def _reference(inputs, n_rbf, cutoff, start=0.0):
    offsets = jnp.linspace(start, cutoff, n_rbf, dtype=jnp.float32)
    widths = jnp.abs(offsets[1] - offsets[0]) * jnp.ones_like(offsets)
    coeff = -0.5 / widths ** 2
    diff = inputs[..., None] - offsets
    return jnp.exp(coeff * (diff * diff))


if __name__ == "__main__":
    key = jax.random.PRNGKey(0)
    n_rbf, cutoff = 32, 5.0
    rbf = GaussianRBF(n_rbf=n_rbf, cutoff=cutoff, start=0.0)

    k1, k2 = jax.random.split(key)

    # Case 1: small distance tensor (batch=2, n_edges=16) = 32 distances;
    # exercises the ragged (m % 128 != 0) padding + post-slice path.
    x1 = jax.random.uniform(k1, (2, 16), minval=0.0, maxval=5.0,
                            dtype=jnp.float32)
    y1 = jax.block_until_ready(rbf(x1))
    y1_ref = _reference(x1, n_rbf, cutoff)
    assert y1.shape == (2, 16, n_rbf), y1.shape
    assert jnp.allclose(y1, y1_ref, atol=1e-5, rtol=1e-5), float(
        jnp.max(jnp.abs(y1 - y1_ref)))

    # Case 2: (4, 8, 64) = 2048 distances, a multiple of 128 -> no padding of
    # the output, no post-slice, 2 grid steps (one per TensorCore on v7x).
    x2 = jax.random.uniform(k2, (4, 8, 64), minval=0.0, maxval=5.0,
                            dtype=jnp.float32)
    y2 = jax.block_until_ready(rbf(x2))
    y2_ref = _reference(x2, n_rbf, cutoff)
    assert y2.shape == (4, 8, 64, n_rbf), y2.shape
    assert jnp.allclose(y2, y2_ref, atol=1e-5, rtol=1e-5), float(
        jnp.max(jnp.abs(y2 - y2_ref)))

    print("KERNEL_OK")
</pallas_src>

<mosaic_0001>
module attributes {stable_mosaic.version = 11 : i64} {
  func.func @_gaussian_rbf_kernel(%arg0: i32, %arg1: memref<8x128xf32, #tpu.memory_space<vmem>>, %arg2: memref<128x4096xbf16, #tpu.memory_space<vmem>>, %arg3: memref<1x4096xf32, #tpu.memory_space<vmem>>, %arg4: memref<8x4096xf32, #tpu.memory_space<vmem>>) attributes {dimension_semantics = [#tpu.dimension_semantics<parallel>], iteration_bounds = array<i64: 1>, scalar_prefetch = 0 : i64, scratch_operands = 0 : i64, tpu.core_type = #tpu.core_type<tc>, window_params = [{transform_indices = @transform_0, window_bounds = array<i64: 8, 128>}, {pipeline_mode = #tpu.pipeline_mode<synchronous>, transform_indices = @transform_1, window_bounds = array<i64: 128, 4096>}, {pipeline_mode = #tpu.pipeline_mode<synchronous>, transform_indices = @transform_2, window_bounds = array<i64: 1, 4096>}, {transform_indices = @transform_3, window_bounds = array<i64: 8, 4096>}]} {
    %c0 = arith.constant 0 : index
    %c0_0 = arith.constant 0 : index
    %0 = vector.load %arg1[%c0, %c0_0] : memref<8x128xf32, #tpu.memory_space<vmem>>, vector<8x128xf32>
    %1 = arith.truncf %0 : vector<8x128xf32> to vector<8x128xbf16>
    %2 = arith.extf %1 : vector<8x128xbf16> to vector<8x128xf32>
    %3 = arith.subf %0, %2 : vector<8x128xf32>
    %4 = arith.truncf %3 : vector<8x128xf32> to vector<8x128xbf16>
    %5 = arith.extf %4 : vector<8x128xbf16> to vector<8x128xf32>
    %6 = arith.subf %3, %5 : vector<8x128xf32>
    %7 = arith.truncf %6 : vector<8x128xf32> to vector<8x128xbf16>
    %c0_1 = arith.constant 0 : index
    %c0_2 = arith.constant 0 : index
    %8 = vector.load %arg2[%c0_1, %c0_2] : memref<128x4096xbf16, #tpu.memory_space<vmem>>, vector<128x4096xbf16>
    %cst = arith.constant dense<0.000000e+00> : vector<8x4096xf32>
    %9 = tpu.matmul %1, %8, %cst {dimension_numbers = #tpu.dot_dimension_numbers<[1], [0], [0], [1], [0, 0, 1, 1], [], []>} : vector<8x128xbf16>, vector<128x4096xbf16>, vector<8x4096xf32> -> vector<8x4096xf32>
    %cst_3 = arith.constant dense<0.000000e+00> : vector<8x4096xf32>
    %10 = tpu.matmul %4, %8, %cst_3 {dimension_numbers = #tpu.dot_dimension_numbers<[1], [0], [0], [1], [0, 0, 1, 1], [], []>} : vector<8x128xbf16>, vector<128x4096xbf16>, vector<8x4096xf32> -> vector<8x4096xf32>
    %11 = arith.addf %9, %10 : vector<8x4096xf32>
    %cst_4 = arith.constant dense<0.000000e+00> : vector<8x4096xf32>
    %12 = tpu.matmul %7, %8, %cst_4 {dimension_numbers = #tpu.dot_dimension_numbers<[1], [0], [0], [1], [0, 0, 1, 1], [], []>} : vector<8x128xbf16>, vector<128x4096xbf16>, vector<8x4096xf32> -> vector<8x4096xf32>
    %13 = arith.addf %11, %12 : vector<8x4096xf32>
    %c0_5 = arith.constant 0 : index
    %c0_6 = arith.constant 0 : index
    %14 = vector.load %arg3[%c0_5, %c0_6] : memref<1x4096xf32, #tpu.memory_space<vmem>>, vector<1x4096xf32>
    %15 = vector.broadcast %14 : vector<1x4096xf32> to vector<8x4096xf32>
    %16 = arith.subf %13, %15 : vector<8x4096xf32>
    %17 = arith.mulf %16, %16 : vector<8x4096xf32>
    %cst_7 = arith.constant -19.2200012 : f32
    %18 = vector.broadcast %cst_7 : f32 to vector<8x4096xf32>
    %19 = arith.mulf %18, %17 : vector<8x4096xf32>
    %20 = math.exp %19 : vector<8x4096xf32>
    %c0_8 = arith.constant 0 : index
    %c0_9 = arith.constant 0 : index
    %21 = vector.load %arg4[%c0_8, %c0_9] : memref<8x4096xf32, #tpu.memory_space<vmem>>, vector<8x4096xf32>
    tpu.vector_store %arg4[%c0_8, %c0_9], %20 {strides = array<i32>} : memref<8x4096xf32, #tpu.memory_space<vmem>>, vector<8x4096xf32>,
    return
  }
  func.func @transform_0(%arg0: i32) -> (i32, i32) {
    %c0_i32 = arith.constant 0 : i32
    %c0_i32_0 = arith.constant 0 : i32
    return %arg0, %c0_i32 : i32, i32
  }
  func.func @transform_1(%arg0: i32) -> (i32, i32) {
    %c0_i32 = arith.constant 0 : i32
    %c0_i32_0 = arith.constant 0 : i32
    %c0_i32_1 = arith.constant 0 : i32
    return %c0_i32, %c0_i32_0 : i32, i32
  }
  func.func @transform_2(%arg0: i32) -> (i32, i32) {
    %c0_i32 = arith.constant 0 : i32
    %c0_i32_0 = arith.constant 0 : i32
    %c0_i32_1 = arith.constant 0 : i32
    return %c0_i32, %c0_i32_0 : i32, i32
  }
  func.func @transform_3(%arg0: i32) -> (i32, i32) {
    %c0_i32 = arith.constant 0 : i32
    %c0_i32_0 = arith.constant 0 : i32
    return %arg0, %c0_i32 : i32, i32
  }
}

</mosaic_0001>

<bundles_post_ra>
// kernel: _rbf_pallas.1
= control target key start
LH: loop header
LB: loop body
LE: loop exit
PB: predicated region body
PF: predicated region fallthrough
CT: control target
= control target key end

     0   :  { %8 = vsyncpa [#allocation3], 0  ;;  %s6104_s0 = inlined_call_operand.hbm [shape: f32[8,128], index: 0, kind: input, shape index: {}]   ;;  %s6105_s1 = inlined_call_operand.hbm [shape: bf16[128,4096], index: 1, kind: input, shape index: {}]   ;;  %s6106_s2 = inlined_call_operand.hbm [shape: f32[1,4096], index: 2, kind: input, shape index: {}]   ;;  %s6107_s3 = inlined_call_operand.hbm [shape: f32[8,4096], index: 3, kind: output, shape index: {}]  }
   0x1   :  { %9 = vsyncpa [#allocation6], 0 }
   0x2   :  { %10 = vsyncpa [#allocation4], 0  ;;  %s4386_s12 = smov [#allocation5]  }
   0x3   :  { %s26_s13 = sshll.u32 %s4386_s12, 4  ;;  %s27_s13 = int_to_ptr.vmem [resolvable:$true] %s26_s13 }
   0x4   :  { %s4308_s14 = scalar_lea.vmem %s27_s13, 32768  ;;  %p4313_p1 = scmp.lt.s32.totalorder %s27_s13, %s27_s13 }
   0x5   :  { %p4309_p0 = scmp.ne.s32.totalorder %s27_s13, %s4308_s14  ;;  %p4314_p2 = scmp.lt.s32.totalorder %s4308_s14, %s4308_s14 }
   0x7   :  { %p4315_p3 = por %p4314_p2, %p4313_p1 }
   0x9   :  { %p4316_p4 = pnand %p4315_p3, %p4309_p0 }
   0xb   :  { %4319 = shalt.err (!%p4316_p4)
}
   0xc   :  { %s4387_s15 = smov 2048   ;;  %s4388_s16 = smov 128  }
   0xd   :  { %32 = dma.hbm_to_vmem [thread:$0]  %s6105_s1, 32768, %s27_s13, [#allocation6], %s4387_s15, %s4387_s15, %s4388_s16  }
   0xe   :  { %s4389_s19 = smov [#allocation2]   ;;  %s4390_s21 = smov [#allocation7]  }
   0xf   :  { %s17_s20 = sshll.u32 %s4389_s19, 4  ;;  %s39_s22 = sshll.u32 %s4390_s21, 4  ;;  %s18_s20 = int_to_ptr.vmem [resolvable:$true] %s17_s20  ;;  %s40_s22 = int_to_ptr.vmem [resolvable:$true] %s39_s22 }
  0x10   :  { %s4328_s23 = scalar_lea.vmem %s18_s20, 128  ;;  %p4333_p6 = scmp.lt.s32.totalorder %s18_s20, %s18_s20 }
  0x11   :  { %p4329_p5 = scmp.ne.s32.totalorder %s18_s20, %s4328_s23  ;;  %p4334_p7 = scmp.lt.s32.totalorder %s4328_s23, %s4328_s23 }
  0x13   :  { %p4335_p8 = por %p4334_p7, %p4333_p6 }
  0x15   :  { %p4336_p9 = pnand %p4335_p8, %p4329_p5 }
  0x17   :  { %4339 = shalt.err (!%p4336_p9)
}
  0x18   :  { %20 = dma.hbm_to_vmem [thread:$0]  %s6104_s0, 128, %s18_s20, [#allocation3]  }
  0x19   :  { %s4348_s26 = scalar_lea.vmem %s40_s22, 512  ;;  %p4353_p11 = scmp.lt.s32.totalorder %s40_s22, %s40_s22 }
  0x1a   :  { %p4349_p10 = scmp.ne.s32.totalorder %s40_s22, %s4348_s26  ;;  %p4354_p12 = scmp.lt.s32.totalorder %s4348_s26, %s4348_s26 }
  0x1c   :  { %p4355_p13 = por %p4354_p12, %p4353_p11 }
  0x1e   :  { %p4356_p0 = pnand %p4355_p13, %p4349_p10 }
  0x20   :  { %4359 = shalt.err (!%p4356_p0)
}
  0x21   :  { %42 = dma.hbm_to_vmem [thread:$0]  %s6106_s2, 512, %s40_s22, [#allocation6]  }
  0x22   :  { %4380 = dma.done.wait [#allocation3], 128  }
  0x23   :  { %4381 = vsyncadd [#allocation3], 4294967168 }
  0x24   :  { %4382 = dma.done.wait [#allocation6], 33280  }
  0x25   :  { %4383 = vsyncadd [#allocation6], 4294934016  ;;  %v6108_v0 = vmov 0   ;;  %v285_v1 = vld [vmem:[#allocation5 + $0x700] sm:$0xff]  ;;  %v286_v3 = vld [vmem:[#allocation5 + $0x708] sm:$0xff]  ;;  %s4392_s0 = smov [#allocation8]  }
  0x26   :  { %1629 = vmatprep.mubr.bf16.mxu0 %v6108_v0  ;;  %1670 = vmatprep.mubr.bf16.mxu1 %v6108_v0  ;;  %v301_v2 = vld [vmem:[#allocation5 + $0x780] sm:$0xff]  ;;  %v302_v5 = vld [vmem:[#allocation5 + $0x788] sm:$0xff]  ;;  %v53_v44 = vld [vmem:[#allocation2] sm:$0xff]  ;;  %s3963_s2 = sshll.u32 %s4392_s0, 4  ;;  %s3964_s2 = int_to_ptr.vmem [resolvable:$true] %s3963_s2 }
  0x27   :  { %v4424_v4 = vcombine.high %v285_v1, %v301_v2  ;;  %v4426_v6 = vcombine.low %v285_v1, %v301_v2  ;;  %v253_v7 = vld [vmem:[#allocation5 + $0x600] sm:$0xff]  ;;  %v4428_v9 = vcombine.high %v286_v3, %v302_v5  ;;  %v4430_v10 = vcombine.low %v286_v3, %v302_v5  ;;  %v254_v12 = vld [vmem:[#allocation5 + $0x608] sm:$0xff]  ;;  %v287_v3 = vld [vmem:[#allocation5 + $0x710] sm:$0xff]  ;;  %s4360_s28 = scalar_lea.vmem %s3964_s2, 4096  ;;  %p4365_p2 = scmp.lt.s32.totalorder %s3964_s2, %s3964_s2 }
  0x28   :  { %v269_v8 = vld [vmem:[#allocation5 + $0x680] sm:$0xff]  ;;  %v270_v13 = vld [vmem:[#allocation5 + $0x688] sm:$0xff]  ;;  %v4486_v52 = vpack.c.bf16 %v53_v44, %v53_v44  ;;  %v303_v5 = vld [vmem:[#allocation5 + $0x790] sm:$0xff]  ;;  %p4361_p1 = scmp.ne.s32.totalorder %s3964_s2, %s4360_s28  ;;  %p4366_p3 = scmp.lt.s32.totalorder %s4360_s28, %s4360_s28 }
  0x29   :  { %v4432_v11 = vcombine.high %v253_v7, %v269_v8  ;;  %v221_v14 = vld [vmem:[#allocation5 + $0x500] sm:$0xff]  ;;  %1597 = vmatprep.subr.bf16.mxu0 %v4424_v4  ;;  %v4435_v15 = vcombine.high %v254_v12, %v270_v13  ;;  %v222_v17 = vld [vmem:[#allocation5 + $0x508] sm:$0xff]  ;;  %1638 = vmatprep.subr.bf16.mxu1 %v4428_v9  ;;  %v4439_v19 = vcombine.low %v253_v7, %v269_v8  ;;  %v288_v8 = vld [vmem:[#allocation5 + $0x718] sm:$0xff] }
  0x2a   :  { %v237_v16 = vld [vmem:[#allocation5 + $0x580] sm:$0xff]  ;;  %v238_v18 = vld [vmem:[#allocation5 + $0x588] sm:$0xff]  ;;  %1598 = vmatpush1.bf16.msra.mxu0 %v4426_v6  ;;  %1639 = vmatpush1.bf16.msra.mxu1 %v4430_v10  ;;  %v4443_v20 = vcombine.low %v254_v12, %v270_v13  ;;  %v55_v61 = vunpack.c.l.bf16 %v4486_v52  ;;  %v304_v12 = vld [vmem:[#allocation5 + $0x798] sm:$0xff]  ;;  %p4367_p4 = por %p4366_p3, %p4365_p2 }
  0x2b   :  { %1599 = vmatprep.subr.bf16.mxu0 %v4432_v11  ;;  %v4445_v21 = vcombine.high %v221_v14, %v237_v16  ;;  %1640 = vmatprep.subr.bf16.mxu1 %v4435_v15  ;;  %v4448_v22 = vcombine.high %v222_v17, %v238_v18  ;;  %v189_v23 = vld [vmem:[#allocation5 + $0x400] sm:$0xff]  ;;  %v190_v25 = vld [vmem:[#allocation5 + $0x408] sm:$0xff]  ;;  %v4451_v27 = vcombine.low %v221_v14, %v237_v16 }
  0x2c   :  { %v205_v24 = vld [vmem:[#allocation5 + $0x480] sm:$0xff]  ;;  %v206_v26 = vld [vmem:[#allocation5 + $0x488] sm:$0xff]  ;;  %v4455_v28 = vcombine.low %v222_v17, %v238_v18  ;;  %v4513_v7 = vsub.f32 %v53_v44, %v55_v61  ;;  %v4522_v16 = vcombine.high %v287_v3, %v303_v5  ;;  %v4525_v17 = vcombine.high %v288_v8, %v304_v12  ;;  %v255_v18 = vld [vmem:[#allocation5 + $0x610] sm:$0xff]  ;;  %p4368_p5 = pnand %p4367_p4, %p4361_p1 }
  0x2d   :  { %v4457_v29 = vcombine.high %v189_v23, %v205_v24  ;;  %v4460_v30 = vcombine.high %v190_v25, %v206_v26  ;;  %v157_v31 = vld [vmem:[#allocation5 + $0x300] sm:$0xff]  ;;  %v158_v33 = vld [vmem:[#allocation5 + $0x308] sm:$0xff]  ;;  %v4463_v35 = vcombine.low %v189_v23, %v205_v24  ;;  %v4467_v36 = vcombine.low %v190_v25, %v206_v26  ;;  %v271_v23 = vld [vmem:[#allocation5 + $0x690] sm:$0xff] }
  0x2e   :  { %1600 = vmatpush1.bf16.msra.mxu0 %v4439_v19  ;;  %1641 = vmatpush1.bf16.msra.mxu1 %v4443_v20  ;;  %v173_v32 = vld [vmem:[#allocation5 + $0x380] sm:$0xff]  ;;  %v174_v34 = vld [vmem:[#allocation5 + $0x388] sm:$0xff]  ;;  %6524 = vst [vmem:[#allocation12_spill] sm:$0xff] %v4513_v7  ;;  %v4529_v24 = vpack.c.bf16 %v4513_v7, %v4513_v7  ;;  %v256_v25 = vld [vmem:[#allocation5 + $0x618] sm:$0xff]  ;;  %v4546_v44 = vcombine.low %v255_v18, %v271_v23 }
  0x2f   :  { %1601 = vmatprep.subr.bf16.mxu0 %v4445_v21  ;;  %1642 = vmatprep.subr.bf16.mxu1 %v4448_v22  ;;  %v4469_v37 = vcombine.high %v157_v31, %v173_v32  ;;  %v4472_v38 = vcombine.high %v158_v33, %v174_v34  ;;  %v125_v39 = vld [vmem:[#allocation5 + $0x200] sm:$0xff]  ;;  %v126_v41 = vld [vmem:[#allocation5 + $0x208] sm:$0xff]  ;;  %v4475_v43 = vcombine.low %v157_v31, %v173_v32  ;;  %v272_v26 = vld [vmem:[#allocation5 + $0x698] sm:$0xff] }
  0x30   :  { %v141_v40 = vld [vmem:[#allocation5 + $0x280] sm:$0xff]  ;;  %v142_v42 = vld [vmem:[#allocation5 + $0x288] sm:$0xff]  ;;  %v4479_v45 = vcombine.low %v158_v33, %v174_v34  ;;  %v4532_v31 = vcombine.low %v287_v3, %v303_v5  ;;  %v4536_v32 = vcombine.low %v288_v8, %v304_v12  ;;  %v4538_v33 = vcombine.high %v255_v18, %v271_v23  ;;  %6528 = vst [vmem:[#allocation16_spill] sm:$0xff] %v4546_v44  ;;  %v159_v8 = vld [vmem:[#allocation5 + $0x310] sm:$0xff] }
  0x31   :  { %v4481_v46 = vcombine.high %v125_v39, %v141_v40  ;;  %v4484_v47 = vcombine.high %v126_v41, %v142_v42  ;;  %v93_v48 = vld [vmem:[#allocation5 + $0x100] sm:$0xff]  ;;  %v94_v50 = vld [vmem:[#allocation5 + $0x108] sm:$0xff]  ;;  %v4489_v53 = vcombine.low %v125_v39, %v141_v40  ;;  %v4493_v54 = vcombine.low %v126_v41, %v142_v42  ;;  %v223_v39 = vld [vmem:[#allocation5 + $0x510] sm:$0xff] }
  0x32   :  { %1602 = vmatpush1.bf16.msra.mxu0 %v4451_v27  ;;  %1643 = vmatpush1.bf16.msra.mxu1 %v4455_v28  ;;  %v109_v49 = vld [vmem:[#allocation5 + $0x180] sm:$0xff]  ;;  %v110_v51 = vld [vmem:[#allocation5 + $0x188] sm:$0xff]  ;;  %6525 = vst [vmem:[#allocation13_spill] sm:$0xff] %v4536_v32  ;;  %6526 = vst [vmem:[#allocation14_spill] sm:$0xff] %v4538_v33  ;;  %v4541_v34 = vcombine.high %v256_v25, %v272_v26 }
  0x33   :  { %1603 = vmatprep.subr.bf16.mxu0 %v4457_v29  ;;  %1644 = vmatprep.subr.bf16.mxu1 %v4460_v30  ;;  %v4495_v55 = vcombine.high %v93_v48, %v109_v49  ;;  %v4498_v56 = vcombine.high %v94_v50, %v110_v51  ;;  %v61_v57 = vld [vmem:[#allocation5] sm:$0xff]  ;;  %v62_v59 = vld [vmem:[#allocation5 + $0x8] sm:$0xff]  ;;  %v4502_v62 = vcombine.low %v93_v48, %v109_v49  ;;  %v239_v40 = vld [vmem:[#allocation5 + $0x590] sm:$0xff] }
  0x34   :  { %v77_v58 = vld [vmem:[#allocation5 + $0x80] sm:$0xff]  ;;  %v78_v60 = vld [vmem:[#allocation5 + $0x88] sm:$0xff]  ;;  %v4506_v63 = vcombine.low %v94_v50, %v110_v51  ;;  %6527 = vst [vmem:[#allocation15_spill] sm:$0xff] %v4541_v34  ;;  %v224_v41 = vld [vmem:[#allocation5 + $0x518] sm:$0xff]  ;;  %v4550_v48 = vcombine.low %v256_v25, %v272_v26  ;;  %v4552_v49 = vcombine.high %v223_v39, %v239_v40 }
  0x35   :  { %v4508_v1 = vcombine.high %v61_v57, %v77_v58  ;;  %v4511_v2 = vcombine.high %v62_v59, %v78_v60  ;;  %v4516_v13 = vcombine.low %v61_v57, %v77_v58  ;;  %v4520_v14 = vcombine.low %v62_v59, %v78_v60  ;;  %v240_v42 = vld [vmem:[#allocation5 + $0x598] sm:$0xff]  ;;  %v191_v51 = vld [vmem:[#allocation5 + $0x410] sm:$0xff] }
  0x36   :  { %1604 = vmatpush1.bf16.msra.mxu0 %v4463_v35  ;;  %1645 = vmatpush1.bf16.msra.mxu1 %v4467_v36  ;;  %6529 = vst [vmem:[#allocation17_spill] sm:$0xff] %v4550_v48  ;;  %6530 = vst [vmem:[#allocation18_spill] sm:$0xff] %v4552_v49  ;;  %v4555_v50 = vcombine.high %v224_v41, %v240_v42  ;;  %v207_v57 = vld [vmem:[#allocation5 + $0x490] sm:$0xff]  ;;  %v192_v58 = vld [vmem:[#allocation5 + $0x418] sm:$0xff]  ;;  %v4560_v60 = vcombine.low %v223_v39, %v239_v40 }
  0x37   :  { %1605 = vmatprep.subr.bf16.mxu0 %v4469_v37  ;;  %1646 = vmatprep.subr.bf16.mxu1 %v4472_v38  ;;  %v208_v59 = vld [vmem:[#allocation5 + $0x498] sm:$0xff]  ;;  %v4564_v61 = vcombine.low %v224_v41, %v240_v42  ;;  %v4566_v3 = vcombine.high %v191_v51, %v207_v57  ;;  %v175_v12 = vld [vmem:[#allocation5 + $0x390] sm:$0xff]  ;;  %v4572_v25 = vcombine.low %v191_v51, %v207_v57 }
  0x38   :  { %6531 = vst [vmem:[#allocation19_spill] sm:$0xff] %v4555_v50  ;;  %6532 = vst [vmem:[#allocation20_spill] sm:$0xff] %v4560_v60  ;;  %v4569_v5 = vcombine.high %v192_v58, %v208_v59  ;;  %v160_v18 = vld [vmem:[#allocation5 + $0x318] sm:$0xff]  ;;  %v4576_v26 = vcombine.low %v192_v58, %v208_v59  ;;  %v4578_v39 = vcombine.high %v159_v8, %v175_v12  ;;  %v127_v41 = vld [vmem:[#allocation5 + $0x210] sm:$0xff] }
  0x39   :  { %6533 = vst [vmem:[#allocation21_spill] sm:$0xff] %v4564_v61  ;;  %6534 = vst [vmem:[#allocation22_spill] sm:$0xff] %v4566_v3  ;;  %v176_v23 = vld [vmem:[#allocation5 + $0x398] sm:$0xff]  ;;  %v143_v42 = vld [vmem:[#allocation5 + $0x290] sm:$0xff]  ;;  %v4584_v51 = vcombine.low %v159_v8, %v175_v12 }
  0x3a   :  { %1606 = vmatpush1.bf16.msra.mxu0 %v4475_v43  ;;  %1647 = vmatpush1.bf16.msra.mxu1 %v4479_v45  ;;  %6535 = vst [vmem:[#allocation23_spill] sm:$0xff] %v4569_v5  ;;  %6536 = vst [vmem:[#allocation24_spill] sm:$0xff] %v4572_v25  ;;  %v4581_v40 = vcombine.high %v160_v18, %v176_v23  ;;  %v144_v7 = vld [vmem:[#allocation5 + $0x298] sm:$0xff]  ;;  %v4588_v57 = vcombine.low %v160_v18, %v176_v23 }
  0x3b   :  { %1607 = vmatprep.subr.bf16.mxu0 %v4481_v46  ;;  %1648 = vmatprep.subr.bf16.mxu1 %v4484_v47  ;;  %6537 = vst [vmem:[#allocation25_spill] sm:$0xff] %v4576_v26  ;;  %6538 = vst [vmem:[#allocation26_spill] sm:$0xff] %v4578_v39  ;;  %v4590_v58 = vcombine.high %v127_v41, %v143_v42  ;;  %v4596_v8 = vcombine.low %v127_v41, %v143_v42 }
  0x3c   :  { %6539 = vst [vmem:[#allocation27_spill] sm:$0xff] %v4581_v40  ;;  %6540 = vst [vmem:[#allocation28_spill] sm:$0xff] %v4584_v51 }
  0x3d   :  { %6541 = vst [vmem:[#allocation29_spill] sm:$0xff] %v4588_v57  ;;  %6542 = vst [vmem:[#allocation30_spill] sm:$0xff] %v4590_v58 }
  0x3e   :  { %1608 = vmatpush1.bf16.msra.mxu0 %v4489_v53  ;;  %1649 = vmatpush1.bf16.msra.mxu1 %v4493_v54  ;;  %6544 = vst [vmem:[#allocation32_spill] sm:$0xff] %v4596_v8 }
  0x3f   :  { %1609 = vmatprep.subr.bf16.mxu0 %v4495_v55  ;;  %1650 = vmatprep.subr.bf16.mxu1 %v4498_v56 }
  0x42   :  { %1610 = vmatpush1.bf16.msra.mxu0 %v4502_v62  ;;  %1651 = vmatpush1.bf16.msra.mxu1 %v4506_v63 }
  0x43   :  { %1611 = vmatprep.subr.bf16.mxu0 %v4508_v1  ;;  %1652 = vmatprep.subr.bf16.mxu1 %v4511_v2 }
  0x46   :  { %1612 = vmatpush1.bf16.msra.mxu0 %v4516_v13  ;;  %1653 = vmatpush1.bf16.msra.mxu1 %v4520_v14 }
  0x47   :  { %1679 = vmatprep.subr.bf16.mxu0 %v4522_v16  ;;  %1720 = vmatprep.subr.bf16.mxu1 %v4525_v17 }
  0x49   :  { %1630 = vmatmul.mubr.bf16.vlgmr.msra.gmra.mxu0 %v4529_v24  ;;  %1671 = vmatmul.mubr.bf16.vlgmr.msra.gmra.mxu1 %v4529_v24 }
  0x4a   :  { %1680 = vmatpush1.bf16.msra.mxu0 %v4532_v31  ;;  %1721 = vmatpush1.bf16.msra.mxu1 %v4536_v32 }
  0x4b   :  { %1681 = vmatprep.subr.bf16.mxu0 %v4538_v33  ;;  %1722 = vmatprep.subr.bf16.mxu1 %v4541_v34 }
  0x4c   :  { %1711 = vmatprep.mubr.bf16.mxu0 %v6108_v0  ;;  %1752 = vmatprep.mubr.bf16.mxu1 %v6108_v0  ;;  %v128_v0 = vld [vmem:[#allocation5 + $0x218] sm:$0xff] }
  0x4d   :  { %v4593_v59 = vcombine.high %v128_v0, %v144_v7  ;;  %v4600_v12 = vcombine.low %v128_v0, %v144_v7 }
  0x4e   :  { %1682 = vmatpush1.bf16.msra.mxu0 %v4546_v44  ;;  %1723 = vmatpush1.bf16.msra.mxu1 %v4550_v48 }
  0x4f   :  { %1683 = vmatprep.subr.bf16.mxu0 %v4552_v49  ;;  %1724 = vmatprep.subr.bf16.mxu1 %v4555_v50  ;;  %6543 = vst [vmem:[#allocation31_spill] sm:$0xff] %v4593_v59  ;;  %6545 = vst [vmem:[#allocation33_spill] sm:$0xff] %v4600_v12  ;;  %v178_v50 = vld [vmem:[#allocation5 + $0x3a8] sm:$0xff]  ;;  %v172_v49 = vld [vmem:[#allocation5 + $0x378] sm:$0xff] }
  0x52   :  { %1684 = vmatpush1.bf16.msra.mxu0 %v4560_v60  ;;  %1725 = vmatpush1.bf16.msra.mxu1 %v4564_v61  ;;  %v96_v61 = vld [vmem:[#allocation5 + $0x118] sm:$0xff] }
  0x53   :  { %1685 = vmatprep.subr.bf16.mxu0 %v4566_v3  ;;  %1726 = vmatprep.subr.bf16.mxu1 %v4569_v5  ;;  %v95_v5 = vld [vmem:[#allocation5 + $0x110] sm:$0xff]  ;;  %v112_v60 = vld [vmem:[#allocation5 + $0x198] sm:$0xff] }
  0x54   :  { %v111_v3 = vld [vmem:[#allocation5 + $0x190] sm:$0xff]  ;;  %v4605_v23 = vcombine.high %v96_v61, %v112_v60  ;;  %v4612_v0 = vcombine.low %v96_v61, %v112_v60 }
  0x55   :  { %v4602_v18 = vcombine.high %v95_v5, %v111_v3  ;;  %v4608_v41 = vcombine.low %v95_v5, %v111_v3 }
  0x56   :  { %1686 = vmatpush1.bf16.msra.mxu0 %v4572_v25  ;;  %1727 = vmatpush1.bf16.msra.mxu1 %v4576_v26  ;;  %6547 = vst [vmem:[#allocation35_spill] sm:$0xff] %v4605_v23  ;;  %v64_v26 = vld [vmem:[#allocation5 + $0x18] sm:$0xff]  ;;  %6549 = vst [vmem:[#allocation37_spill] sm:$0xff] %v4612_v0 }
  0x57   :  { %1687 = vmatprep.subr.bf16.mxu0 %v4578_v39  ;;  %1728 = vmatprep.subr.bf16.mxu1 %v4581_v40  ;;  %6546 = vst [vmem:[#allocation34_spill] sm:$0xff] %v4602_v18  ;;  %v63_v40 = vld [vmem:[#allocation5 + $0x10] sm:$0xff]  ;;  %v80_v25 = vld [vmem:[#allocation5 + $0x98] sm:$0xff]  ;;  %6548 = vst [vmem:[#allocation36_spill] sm:$0xff] %v4608_v41 }
  0x58   :  { %v79_v39 = vld [vmem:[#allocation5 + $0x90] sm:$0xff]  ;;  %v4617_v42 = vcombine.high %v64_v26, %v80_v25  ;;  %v4624_v60 = vcombine.low %v64_v26, %v80_v25 }
  0x59   :  { %v4614_v7 = vcombine.high %v63_v40, %v79_v39  ;;  %v4620_v3 = vcombine.low %v63_v40, %v79_v39 }
  0x5a   :  { %1688 = vmatpush1.bf16.msra.mxu0 %v4584_v51  ;;  %1729 = vmatpush1.bf16.msra.mxu1 %v4588_v57  ;;  %6551 = vst [vmem:[#allocation39_spill] sm:$0xff] %v4617_v42  ;;  %v290_v57 = vld [vmem:[#allocation5 + $0x728] sm:$0xff]  ;;  %6553 = vst [vmem:[#allocation41_spill] sm:$0xff] %v4624_v60 }
  0x5b   :  { %1689 = vmatprep.subr.bf16.mxu0 %v4590_v58  ;;  %1730 = vmatprep.subr.bf16.mxu1 %v4593_v59  ;;  %6550 = vst [vmem:[#allocation38_spill] sm:$0xff] %v4614_v7  ;;  %v289_v59 = vld [vmem:[#allocation5 + $0x720] sm:$0xff]  ;;  %v306_v51 = vld [vmem:[#allocation5 + $0x7a8] sm:$0xff]  ;;  %6552 = vst [vmem:[#allocation40_spill] sm:$0xff] %v4620_v3 }
  0x5c   :  { %v305_v58 = vld [vmem:[#allocation5 + $0x7a0] sm:$0xff]  ;;  %v4629_v5 = vcombine.high %v290_v57, %v306_v51  ;;  %v4636_v25 = vcombine.low %v290_v57, %v306_v51 }
  0x5d   :  { %v4626_v61 = vcombine.high %v289_v59, %v305_v58  ;;  %v4632_v39 = vcombine.low %v289_v59, %v305_v58 }
  0x5e   :  { %1690 = vmatpush1.bf16.msra.mxu0 %v4596_v8  ;;  %1731 = vmatpush1.bf16.msra.mxu1 %v4600_v12  ;;  %6555 = vst [vmem:[#allocation43_spill] sm:$0xff] %v4629_v5  ;;  %v258_v12 = vld [vmem:[#allocation5 + $0x628] sm:$0xff]  ;;  %6557 = vst [vmem:[#allocation45_spill] sm:$0xff] %v4636_v25 }
  0x5f   :  { %1691 = vmatprep.subr.bf16.mxu0 %v4602_v18  ;;  %1732 = vmatprep.subr.bf16.mxu1 %v4605_v23  ;;  %6554 = vst [vmem:[#allocation42_spill] sm:$0xff] %v4626_v61  ;;  %v257_v23 = vld [vmem:[#allocation5 + $0x620] sm:$0xff]  ;;  %v274_v8 = vld [vmem:[#allocation5 + $0x6a8] sm:$0xff]  ;;  %6556 = vst [vmem:[#allocation44_spill] sm:$0xff] %v4632_v39 }
  0x60   :  { %v273_v18 = vld [vmem:[#allocation5 + $0x6a0] sm:$0xff]  ;;  %v4641_v40 = vcombine.high %v258_v12, %v274_v8  ;;  %v4650_v51 = vcombine.low %v258_v12, %v274_v8 }
  0x61   :  { %v4638_v26 = vcombine.high %v257_v23, %v273_v18  ;;  %v4646_v58 = vcombine.low %v257_v23, %v273_v18 }
  0x62   :  { %1692 = vmatpush1.bf16.msra.mxu0 %v4608_v41  ;;  %1733 = vmatpush1.bf16.msra.mxu1 %v4612_v0  ;;  %6559 = vst [vmem:[#allocation47_spill] sm:$0xff] %v4641_v40  ;;  %v226_v0 = vld [vmem:[#allocation5 + $0x528] sm:$0xff]  ;;  %6561 = vst [vmem:[#allocation49_spill] sm:$0xff] %v4650_v51 }
  0x63   :  { %1693 = vmatprep.subr.bf16.mxu0 %v4614_v7  ;;  %1734 = vmatprep.subr.bf16.mxu1 %v4617_v42  ;;  %6558 = vst [vmem:[#allocation46_spill] sm:$0xff] %v4638_v26  ;;  %v225_v42 = vld [vmem:[#allocation5 + $0x520] sm:$0xff]  ;;  %6560 = vst [vmem:[#allocation48_spill] sm:$0xff] %v4646_v58  ;;  %v194_v41 = vld [vmem:[#allocation5 + $0x428] sm:$0xff] }
  0x64   :  { %v241_v7 = vld [vmem:[#allocation5 + $0x5a0] sm:$0xff] }
  0x65   :  { %v4652_v57 = vcombine.high %v225_v42, %v241_v7  ;;  %v4660_v18 = vcombine.low %v225_v42, %v241_v7 }
  0x66   :  { %1694 = vmatpush1.bf16.msra.mxu0 %v4620_v3  ;;  %1735 = vmatpush1.bf16.msra.mxu1 %v4624_v60  ;;  %v242_v3 = vld [vmem:[#allocation5 + $0x5a8] sm:$0xff]  ;;  %v6564_v60 = vmov 0  }
  0x67   :  { %1761 = vmatprep.subr.bf16.mxu0 %v4626_v61  ;;  %1802 = vmatprep.subr.bf16.mxu1 %v4629_v5  ;;  %6562 = vst [vmem:[#allocation50_spill] sm:$0xff] %v4652_v57  ;;  %v4655_v59 = vcombine.high %v226_v0, %v242_v3  ;;  %v193_v5 = vld [vmem:[#allocation5 + $0x420] sm:$0xff]  ;;  %6565 = vst [vmem:[#allocation52_spill] sm:$0xff] %v4660_v18  ;;  %v4664_v8 = vcombine.low %v226_v0, %v242_v3 }
  0x68   :  { %v209_v61 = vld [vmem:[#allocation5 + $0x4a0] sm:$0xff] }
  0x69   :  { %1712 = vmatmul.mubr.bf16.vlgmr.msra.gmra.mxu0 %v4529_v24  ;;  %1753 = vmatmul.mubr.bf16.vlgmr.msra.gmra.mxu1 %v4529_v24  ;;  %6563 = vst [vmem:[#allocation51_spill] sm:$0xff] %v4655_v59  ;;  %6566 = vst [vmem:[#allocation53_spill] sm:$0xff] %v4664_v8  ;;  %v4666_v12 = vcombine.high %v193_v5, %v209_v61  ;;  %v4672_v7 = vcombine.low %v193_v5, %v209_v61 }
  0x6a   :  { %1762 = vmatpush1.bf16.msra.mxu0 %v4632_v39  ;;  %1803 = vmatpush1.bf16.msra.mxu1 %v4636_v25  ;;  %v210_v39 = vld [vmem:[#allocation5 + $0x4a8] sm:$0xff] }
  0x6b   :  { %1763 = vmatprep.subr.bf16.mxu0 %v4638_v26  ;;  %1804 = vmatprep.subr.bf16.mxu1 %v4641_v40  ;;  %6567 = vst [vmem:[#allocation54_spill] sm:$0xff] %v4666_v12  ;;  %v4669_v23 = vcombine.high %v194_v41, %v210_v39  ;;  %v161_v40 = vld [vmem:[#allocation5 + $0x320] sm:$0xff]  ;;  %v162_v25 = vld [vmem:[#allocation5 + $0x328] sm:$0xff]  ;;  %6569 = vst [vmem:[#allocation56_spill] sm:$0xff] %v4672_v7  ;;  %v4676_v0 = vcombine.low %v194_v41, %v210_v39 }
  0x6c   :  { %1793 = vmatprep.mubr.bf16.mxu0 %v6564_v60  ;;  %1834 = vmatprep.mubr.bf16.mxu1 %v6564_v60  ;;  %v177_v26 = vld [vmem:[#allocation5 + $0x3a0] sm:$0xff]  ;;  %v4681_v3 = vcombine.high %v162_v25, %v178_v50  ;;  %v4688_v41 = vcombine.low %v162_v25, %v178_v50 }
  0x6d   :  { %6568 = vst [vmem:[#allocation55_spill] sm:$0xff] %v4669_v23  ;;  %6570 = vst [vmem:[#allocation57_spill] sm:$0xff] %v4676_v0  ;;  %v4678_v42 = vcombine.high %v161_v40, %v177_v26  ;;  %v4684_v61 = vcombine.low %v161_v40, %v177_v26 }
  0x6e   :  { %1764 = vmatpush1.bf16.msra.mxu0 %v4646_v58  ;;  %1805 = vmatpush1.bf16.msra.mxu1 %v4650_v51  ;;  %6572 = vst [vmem:[#allocation59_spill] sm:$0xff] %v4681_v3  ;;  %v130_v51 = vld [vmem:[#allocation5 + $0x228] sm:$0xff]  ;;  %6574 = vst [vmem:[#allocation61_spill] sm:$0xff] %v4688_v41 }
  0x6f   :  { %1765 = vmatprep.subr.bf16.mxu0 %v4652_v57  ;;  %1806 = vmatprep.subr.bf16.mxu1 %v4655_v59  ;;  %6571 = vst [vmem:[#allocation58_spill] sm:$0xff] %v4678_v42  ;;  %v129_v59 = vld [vmem:[#allocation5 + $0x220] sm:$0xff]  ;;  %v146_v58 = vld [vmem:[#allocation5 + $0x2a8] sm:$0xff]  ;;  %6573 = vst [vmem:[#allocation60_spill] sm:$0xff] %v4684_v61 }
  0x70   :  { %v145_v57 = vld [vmem:[#allocation5 + $0x2a0] sm:$0xff]  ;;  %v4693_v39 = vcombine.high %v130_v51, %v146_v58  ;;  %v4700_v50 = vcombine.low %v130_v51, %v146_v58 }
  0x71   :  { %v4690_v5 = vcombine.high %v129_v59, %v145_v57  ;;  %v4696_v26 = vcombine.low %v129_v59, %v145_v57 }
  0x72   :  { %1766 = vmatpush1.bf16.msra.mxu0 %v4660_v18  ;;  %1807 = vmatpush1.bf16.msra.mxu1 %v4664_v8  ;;  %6576 = vst [vmem:[#allocation63_spill] sm:$0xff] %v4693_v39  ;;  %v98_v8 = vld [vmem:[#allocation5 + $0x128] sm:$0xff]  ;;  %6578 = vst [vmem:[#allocation65_spill] sm:$0xff] %v4700_v50 }
  0x73   :  { %1767 = vmatprep.subr.bf16.mxu0 %v4666_v12  ;;  %1808 = vmatprep.subr.bf16.mxu1 %v4669_v23  ;;  %6575 = vst [vmem:[#allocation62_spill] sm:$0xff] %v4690_v5  ;;  %v97_v23 = vld [vmem:[#allocation5 + $0x120] sm:$0xff]  ;;  %v114_v18 = vld [vmem:[#allocation5 + $0x1a8] sm:$0xff]  ;;  %6577 = vst [vmem:[#allocation64_spill] sm:$0xff] %v4696_v26 }
  0x74   :  { %v113_v12 = vld [vmem:[#allocation5 + $0x1a0] sm:$0xff]  ;;  %v4705_v40 = vcombine.high %v98_v8, %v114_v18  ;;  %v4712_v58 = vcombine.low %v98_v8, %v114_v18 }
  0x75   :  { %v4702_v25 = vcombine.high %v97_v23, %v113_v12  ;;  %v4708_v57 = vcombine.low %v97_v23, %v113_v12 }
  0x76   :  { %1768 = vmatpush1.bf16.msra.mxu0 %v4672_v7  ;;  %1809 = vmatpush1.bf16.msra.mxu1 %v4676_v0  ;;  %6580 = vst [vmem:[#allocation67_spill] sm:$0xff] %v4705_v40  ;;  %v66_v0 = vld [vmem:[#allocation5 + $0x28] sm:$0xff]  ;;  %6582 = vst [vmem:[#allocation69_spill] sm:$0xff] %v4712_v58 }
  0x77   :  { %1769 = vmatprep.subr.bf16.mxu0 %v4678_v42  ;;  %1810 = vmatprep.subr.bf16.mxu1 %v4681_v3  ;;  %6579 = vst [vmem:[#allocation66_spill] sm:$0xff] %v4702_v25  ;;  %v65_v3 = vld [vmem:[#allocation5 + $0x20] sm:$0xff]  ;;  %v82_v7 = vld [vmem:[#allocation5 + $0xa8] sm:$0xff]  ;;  %6581 = vst [vmem:[#allocation68_spill] sm:$0xff] %v4708_v57 }
  0x78   :  { %v81_v42 = vld [vmem:[#allocation5 + $0xa0] sm:$0xff]  ;;  %v4717_v59 = vcombine.high %v66_v0, %v82_v7  ;;  %v4724_v18 = vcombine.low %v66_v0, %v82_v7 }
  0x79   :  { %v4714_v51 = vcombine.high %v65_v3, %v81_v42  ;;  %v4720_v12 = vcombine.low %v65_v3, %v81_v42 }
  0x7a   :  { %1770 = vmatpush1.bf16.msra.mxu0 %v4684_v61  ;;  %1811 = vmatpush1.bf16.msra.mxu1 %v4688_v41  ;;  %6584 = vst [vmem:[#allocation71_spill] sm:$0xff] %v4717_v59  ;;  %v292_v41 = vld [vmem:[#allocation5 + $0x738] sm:$0xff]  ;;  %6586 = vst [vmem:[#allocation73_spill] sm:$0xff] %v4724_v18 }
  0x7b   :  { %1771 = vmatprep.subr.bf16.mxu0 %v4690_v5  ;;  %1812 = vmatprep.subr.bf16.mxu1 %v4693_v39  ;;  %6583 = vst [vmem:[#allocation70_spill] sm:$0xff] %v4714_v51  ;;  %v291_v39 = vld [vmem:[#allocation5 + $0x730] sm:$0xff]  ;;  %v308_v61 = vld [vmem:[#allocation5 + $0x7b8] sm:$0xff]  ;;  %6585 = vst [vmem:[#allocation72_spill] sm:$0xff] %v4720_v12 }
  0x7c   :  { %v307_v5 = vld [vmem:[#allocation5 + $0x7b0] sm:$0xff]  ;;  %v4729_v23 = vcombine.high %v292_v41, %v308_v61  ;;  %v4736_v7 = vcombine.low %v292_v41, %v308_v61 }
  0x7d   :  { %v4726_v8 = vcombine.high %v291_v39, %v307_v5  ;;  %v4732_v42 = vcombine.low %v291_v39, %v307_v5 }
  0x7e   :  { %1772 = vmatpush1.bf16.msra.mxu0 %v4696_v26  ;;  %1813 = vmatpush1.bf16.msra.mxu1 %v4700_v50  ;;  %6588 = vst [vmem:[#allocation75_spill] sm:$0xff] %v4729_v23  ;;  %v260_v50 = vld [vmem:[#allocation5 + $0x638] sm:$0xff]  ;;  %6590 = vst [vmem:[#allocation77_spill] sm:$0xff] %v4736_v7 }
  0x7f   :  { %1773 = vmatprep.subr.bf16.mxu0 %v4702_v25  ;;  %1814 = vmatprep.subr.bf16.mxu1 %v4705_v40  ;;  %6587 = vst [vmem:[#allocation74_spill] sm:$0xff] %v4726_v8  ;;  %v259_v40 = vld [vmem:[#allocation5 + $0x630] sm:$0xff]  ;;  %v276_v26 = vld [vmem:[#allocation5 + $0x6b8] sm:$0xff]  ;;  %6589 = vst [vmem:[#allocation76_spill] sm:$0xff] %v4732_v42 }
  0x80   :  { %v275_v25 = vld [vmem:[#allocation5 + $0x6b0] sm:$0xff]  ;;  %v4741_v3 = vcombine.high %v260_v50, %v276_v26  ;;  %v4750_v61 = vcombine.low %v260_v50, %v276_v26 }
  0x81   :  { %v4738_v0 = vcombine.high %v259_v40, %v275_v25  ;;  %v4746_v5 = vcombine.low %v259_v40, %v275_v25 }
  0x82   :  { %1774 = vmatpush1.bf16.msra.mxu0 %v4708_v57  ;;  %1815 = vmatpush1.bf16.msra.mxu1 %v4712_v58  ;;  %6592 = vst [vmem:[#allocation79_spill] sm:$0xff] %v4741_v3  ;;  %v228_v58 = vld [vmem:[#allocation5 + $0x538] sm:$0xff]  ;;  %6594 = vst [vmem:[#allocation81_spill] sm:$0xff] %v4750_v61 }
  0x83   :  { %1775 = vmatprep.subr.bf16.mxu0 %v4714_v51  ;;  %1816 = vmatprep.subr.bf16.mxu1 %v4717_v59  ;;  %6591 = vst [vmem:[#allocation78_spill] sm:$0xff] %v4738_v0  ;;  %v227_v59 = vld [vmem:[#allocation5 + $0x530] sm:$0xff]  ;;  %6593 = vst [vmem:[#allocation80_spill] sm:$0xff] %v4746_v5  ;;  %v180_v57 = vld [vmem:[#allocation5 + $0x3b8] sm:$0xff] }
  0x84   :  { %v243_v51 = vld [vmem:[#allocation5 + $0x5b0] sm:$0xff] }
  0x85   :  { %v4752_v41 = vcombine.high %v227_v59, %v243_v51  ;;  %v4760_v25 = vcombine.low %v227_v59, %v243_v51 }
  0x86   :  { %1776 = vmatpush1.bf16.msra.mxu0 %v4720_v12  ;;  %1817 = vmatpush1.bf16.msra.mxu1 %v4724_v18  ;;  %v244_v12 = vld [vmem:[#allocation5 + $0x5b8] sm:$0xff] }
  0x87   :  { %1843 = vmatprep.subr.bf16.mxu0 %v4726_v8  ;;  %1884 = vmatprep.subr.bf16.mxu1 %v4729_v23  ;;  %6595 = vst [vmem:[#allocation82_spill] sm:$0xff] %v4752_v41  ;;  %v4755_v39 = vcombine.high %v228_v58, %v244_v12  ;;  %v195_v23 = vld [vmem:[#allocation5 + $0x430] sm:$0xff]  ;;  %v196_v18 = vld [vmem:[#allocation5 + $0x438] sm:$0xff]  ;;  %6597 = vst [vmem:[#allocation84_spill] sm:$0xff] %v4760_v25  ;;  %v4764_v26 = vcombine.low %v228_v58, %v244_v12 }
  0x88   :  { %v211_v8 = vld [vmem:[#allocation5 + $0x4b0] sm:$0xff] }
  0x89   :  { %1794 = vmatmul.mubr.bf16.vlgmr.msra.gmra.mxu0 %v4529_v24  ;;  %1835 = vmatmul.mubr.bf16.vlgmr.msra.gmra.mxu1 %v4529_v24  ;;  %6596 = vst [vmem:[#allocation83_spill] sm:$0xff] %v4755_v39  ;;  %6598 = vst [vmem:[#allocation85_spill] sm:$0xff] %v4764_v26  ;;  %v4766_v50 = vcombine.high %v195_v23, %v211_v8  ;;  %v4772_v51 = vcombine.low %v195_v23, %v211_v8 }
  0x8a   :  { %1844 = vmatpush1.bf16.msra.mxu0 %v4732_v42  ;;  %1885 = vmatpush1.bf16.msra.mxu1 %v4736_v7  ;;  %v212_v42 = vld [vmem:[#allocation5 + $0x4b8] sm:$0xff] }
  0x8b   :  { %1845 = vmatprep.subr.bf16.mxu0 %v4738_v0  ;;  %1886 = vmatprep.subr.bf16.mxu1 %v4741_v3  ;;  %6599 = vst [vmem:[#allocation86_spill] sm:$0xff] %v4766_v50  ;;  %v4769_v40 = vcombine.high %v196_v18, %v212_v42  ;;  %v163_v3 = vld [vmem:[#allocation5 + $0x330] sm:$0xff]  ;;  %v164_v7 = vld [vmem:[#allocation5 + $0x338] sm:$0xff]  ;;  %6601 = vst [vmem:[#allocation88_spill] sm:$0xff] %v4772_v51  ;;  %v4776_v58 = vcombine.low %v196_v18, %v212_v42 }
  0x8c   :  { %1875 = vmatprep.mubr.bf16.mxu0 %v6564_v60  ;;  %1916 = vmatprep.mubr.bf16.mxu1 %v6564_v60  ;;  %v179_v0 = vld [vmem:[#allocation5 + $0x3b0] sm:$0xff]  ;;  %v4781_v12 = vcombine.high %v164_v7, %v180_v57  ;;  %v4788_v18 = vcombine.low %v164_v7, %v180_v57 }
  0x8d   :  { %6600 = vst [vmem:[#allocation87_spill] sm:$0xff] %v4769_v40  ;;  %6602 = vst [vmem:[#allocation89_spill] sm:$0xff] %v4776_v58  ;;  %v4778_v59 = vcombine.high %v163_v3, %v179_v0  ;;  %v4784_v8 = vcombine.low %v163_v3, %v179_v0 }
  0x8e   :  { %1846 = vmatpush1.bf16.msra.mxu0 %v4746_v5  ;;  %1887 = vmatpush1.bf16.msra.mxu1 %v4750_v61  ;;  %6604 = vst [vmem:[#allocation91_spill] sm:$0xff] %v4781_v12  ;;  %v132_v61 = vld [vmem:[#allocation5 + $0x238] sm:$0xff]  ;;  %6606 = vst [vmem:[#allocation93_spill] sm:$0xff] %v4788_v18 }
  0x8f   :  { %1847 = vmatprep.subr.bf16.mxu0 %v4752_v41  ;;  %1888 = vmatprep.subr.bf16.mxu1 %v4755_v39  ;;  %6603 = vst [vmem:[#allocation90_spill] sm:$0xff] %v4778_v59  ;;  %v131_v39 = vld [vmem:[#allocation5 + $0x230] sm:$0xff]  ;;  %v148_v5 = vld [vmem:[#allocation5 + $0x2b8] sm:$0xff]  ;;  %6605 = vst [vmem:[#allocation92_spill] sm:$0xff] %v4784_v8 }
  0x90   :  { %v147_v41 = vld [vmem:[#allocation5 + $0x2b0] sm:$0xff]  ;;  %v4793_v42 = vcombine.high %v132_v61, %v148_v5  ;;  %v4800_v57 = vcombine.low %v132_v61, %v148_v5 }
  0x91   :  { %v4790_v23 = vcombine.high %v131_v39, %v147_v41  ;;  %v4796_v0 = vcombine.low %v131_v39, %v147_v41 }
  0x92   :  { %1848 = vmatpush1.bf16.msra.mxu0 %v4760_v25  ;;  %1889 = vmatpush1.bf16.msra.mxu1 %v4764_v26  ;;  %6608 = vst [vmem:[#allocation95_spill] sm:$0xff] %v4793_v42  ;;  %v100_v26 = vld [vmem:[#allocation5 + $0x138] sm:$0xff]  ;;  %6610 = vst [vmem:[#allocation97_spill] sm:$0xff] %v4800_v57 }
  0x93   :  { %1849 = vmatprep.subr.bf16.mxu0 %v4766_v50  ;;  %1890 = vmatprep.subr.bf16.mxu1 %v4769_v40  ;;  %6607 = vst [vmem:[#allocation94_spill] sm:$0xff] %v4790_v23  ;;  %v99_v40 = vld [vmem:[#allocation5 + $0x130] sm:$0xff]  ;;  %v116_v25 = vld [vmem:[#allocation5 + $0x1b8] sm:$0xff]  ;;  %6609 = vst [vmem:[#allocation96_spill] sm:$0xff] %v4796_v0 }
  0x94   :  { %v115_v50 = vld [vmem:[#allocation5 + $0x1b0] sm:$0xff]  ;;  %v4805_v3 = vcombine.high %v100_v26, %v116_v25  ;;  %v4812_v5 = vcombine.low %v100_v26, %v116_v25 }
  0x95   :  { %v4802_v7 = vcombine.high %v99_v40, %v115_v50  ;;  %v4808_v41 = vcombine.low %v99_v40, %v115_v50 }
  0x96   :  { %1850 = vmatpush1.bf16.msra.mxu0 %v4772_v51  ;;  %1891 = vmatpush1.bf16.msra.mxu1 %v4776_v58  ;;  %6612 = vst [vmem:[#allocation99_spill] sm:$0xff] %v4805_v3  ;;  %v68_v58 = vld [vmem:[#allocation5 + $0x38] sm:$0xff]  ;;  %6614 = vst [vmem:[#allocation101_spill] sm:$0xff] %v4812_v5 }
  0x97   :  { %1851 = vmatprep.subr.bf16.mxu0 %v4778_v59  ;;  %1892 = vmatprep.subr.bf16.mxu1 %v4781_v12  ;;  %6611 = vst [vmem:[#allocation98_spill] sm:$0xff] %v4802_v7  ;;  %v67_v12 = vld [vmem:[#allocation5 + $0x30] sm:$0xff]  ;;  %v84_v51 = vld [vmem:[#allocation5 + $0xb8] sm:$0xff]  ;;  %6613 = vst [vmem:[#allocation100_spill] sm:$0xff] %v4808_v41 }
  0x98   :  { %v83_v59 = vld [vmem:[#allocation5 + $0xb0] sm:$0xff]  ;;  %v4817_v39 = vcombine.high %v68_v58, %v84_v51  ;;  %v4824_v25 = vcombine.low %v68_v58, %v84_v51 }
  0x99   :  { %v4814_v61 = vcombine.high %v67_v12, %v83_v59  ;;  %v4820_v50 = vcombine.low %v67_v12, %v83_v59 }
  0x9a   :  { %1852 = vmatpush1.bf16.msra.mxu0 %v4784_v8  ;;  %1893 = vmatpush1.bf16.msra.mxu1 %v4788_v18  ;;  %6616 = vst [vmem:[#allocation103_spill] sm:$0xff] %v4817_v39  ;;  %v294_v18 = vld [vmem:[#allocation5 + $0x748] sm:$0xff]  ;;  %6618 = vst [vmem:[#allocation105_spill] sm:$0xff] %v4824_v25 }
  0x9b   :  { %1853 = vmatprep.subr.bf16.mxu0 %v4790_v23  ;;  %1894 = vmatprep.subr.bf16.mxu1 %v4793_v42  ;;  %6615 = vst [vmem:[#allocation102_spill] sm:$0xff] %v4814_v61  ;;  %v293_v42 = vld [vmem:[#allocation5 + $0x740] sm:$0xff]  ;;  %v310_v8 = vld [vmem:[#allocation5 + $0x7c8] sm:$0xff]  ;;  %6617 = vst [vmem:[#allocation104_spill] sm:$0xff] %v4820_v50 }
  0x9c   :  { %v309_v23 = vld [vmem:[#allocation5 + $0x7c0] sm:$0xff]  ;;  %v4829_v40 = vcombine.high %v294_v18, %v310_v8  ;;  %v4836_v51 = vcombine.low %v294_v18, %v310_v8 }
  0x9d   :  { %v4826_v26 = vcombine.high %v293_v42, %v309_v23  ;;  %v4832_v59 = vcombine.low %v293_v42, %v309_v23 }
  0x9e   :  { %1854 = vmatpush1.bf16.msra.mxu0 %v4796_v0  ;;  %1895 = vmatpush1.bf16.msra.mxu1 %v4800_v57  ;;  %6620 = vst [vmem:[#allocation107_spill] sm:$0xff] %v4829_v40  ;;  %v262_v57 = vld [vmem:[#allocation5 + $0x648] sm:$0xff]  ;;  %6622 = vst [vmem:[#allocation109_spill] sm:$0xff] %v4836_v51 }
  0x9f   :  { %1855 = vmatprep.subr.bf16.mxu0 %v4802_v7  ;;  %1896 = vmatprep.subr.bf16.mxu1 %v4805_v3  ;;  %6619 = vst [vmem:[#allocation106_spill] sm:$0xff] %v4826_v26  ;;  %v261_v3 = vld [vmem:[#allocation5 + $0x640] sm:$0xff]  ;;  %v278_v0 = vld [vmem:[#allocation5 + $0x6c8] sm:$0xff]  ;;  %6621 = vst [vmem:[#allocation108_spill] sm:$0xff] %v4832_v59 }
  0xa0   :  { %v277_v7 = vld [vmem:[#allocation5 + $0x6c0] sm:$0xff]  ;;  %v4841_v12 = vcombine.high %v262_v57, %v278_v0  ;;  %v4850_v8 = vcombine.low %v262_v57, %v278_v0 }
  0xa1   :  { %v4838_v58 = vcombine.high %v261_v3, %v277_v7  ;;  %v4846_v23 = vcombine.low %v261_v3, %v277_v7 }
  0xa2   :  { %1856 = vmatpush1.bf16.msra.mxu0 %v4808_v41  ;;  %1897 = vmatpush1.bf16.msra.mxu1 %v4812_v5  ;;  %6624 = vst [vmem:[#allocation111_spill] sm:$0xff] %v4841_v12  ;;  %v230_v5 = vld [vmem:[#allocation5 + $0x548] sm:$0xff]  ;;  %6626 = vst [vmem:[#allocation113_spill] sm:$0xff] %v4850_v8 }
  0xa3   :  { %1857 = vmatprep.subr.bf16.mxu0 %v4814_v61  ;;  %1898 = vmatprep.subr.bf16.mxu1 %v4817_v39  ;;  %6623 = vst [vmem:[#allocation110_spill] sm:$0xff] %v4838_v58  ;;  %v229_v39 = vld [vmem:[#allocation5 + $0x540] sm:$0xff]  ;;  %6625 = vst [vmem:[#allocation112_spill] sm:$0xff] %v4846_v23  ;;  %v182_v41 = vld [vmem:[#allocation5 + $0x3c8] sm:$0xff] }
  0xa4   :  { %v245_v61 = vld [vmem:[#allocation5 + $0x5c0] sm:$0xff] }
  0xa5   :  { %v4852_v18 = vcombine.high %v229_v39, %v245_v61  ;;  %v4860_v7 = vcombine.low %v229_v39, %v245_v61 }
  0xa6   :  { %1858 = vmatpush1.bf16.msra.mxu0 %v4820_v50  ;;  %1899 = vmatpush1.bf16.msra.mxu1 %v4824_v25  ;;  %v246_v50 = vld [vmem:[#allocation5 + $0x5c8] sm:$0xff] }
  0xa7   :  { %1925 = vmatprep.subr.bf16.mxu0 %v4826_v26  ;;  %1966 = vmatprep.subr.bf16.mxu1 %v4829_v40  ;;  %6627 = vst [vmem:[#allocation114_spill] sm:$0xff] %v4852_v18  ;;  %v4855_v42 = vcombine.high %v230_v5, %v246_v50  ;;  %v197_v40 = vld [vmem:[#allocation5 + $0x440] sm:$0xff]  ;;  %v198_v25 = vld [vmem:[#allocation5 + $0x448] sm:$0xff]  ;;  %6629 = vst [vmem:[#allocation116_spill] sm:$0xff] %v4860_v7  ;;  %v4864_v0 = vcombine.low %v230_v5, %v246_v50 }
  0xa8   :  { %v213_v26 = vld [vmem:[#allocation5 + $0x4c0] sm:$0xff] }
  0xa9   :  { %1876 = vmatmul.mubr.bf16.vlgmr.msra.gmra.mxu0 %v4529_v24  ;;  %1917 = vmatmul.mubr.bf16.vlgmr.msra.gmra.mxu1 %v4529_v24  ;;  %6628 = vst [vmem:[#allocation115_spill] sm:$0xff] %v4855_v42  ;;  %6630 = vst [vmem:[#allocation117_spill] sm:$0xff] %v4864_v0  ;;  %v4866_v57 = vcombine.high %v197_v40, %v213_v26  ;;  %v4872_v61 = vcombine.low %v197_v40, %v213_v26 }
  0xaa   :  { %1926 = vmatpush1.bf16.msra.mxu0 %v4832_v59  ;;  %1967 = vmatpush1.bf16.msra.mxu1 %v4836_v51  ;;  %v214_v59 = vld [vmem:[#allocation5 + $0x4c8] sm:$0xff] }
  0xab   :  { %1927 = vmatprep.subr.bf16.mxu0 %v4838_v58  ;;  %1968 = vmatprep.subr.bf16.mxu1 %v4841_v12  ;;  %6631 = vst [vmem:[#allocation118_spill] sm:$0xff] %v4866_v57  ;;  %v4869_v3 = vcombine.high %v198_v25, %v214_v59  ;;  %v165_v12 = vld [vmem:[#allocation5 + $0x340] sm:$0xff]  ;;  %v166_v51 = vld [vmem:[#allocation5 + $0x348] sm:$0xff]  ;;  %6633 = vst [vmem:[#allocation120_spill] sm:$0xff] %v4872_v61  ;;  %v4876_v5 = vcombine.low %v198_v25, %v214_v59 }
  0xac   :  { %1957 = vmatprep.mubr.bf16.mxu0 %v6564_v60  ;;  %1998 = vmatprep.mubr.bf16.mxu1 %v6564_v60  ;;  %v181_v58 = vld [vmem:[#allocation5 + $0x3c0] sm:$0xff]  ;;  %v4881_v50 = vcombine.high %v166_v51, %v182_v41  ;;  %v4888_v25 = vcombine.low %v166_v51, %v182_v41 }
  0xad   :  { %6632 = vst [vmem:[#allocation119_spill] sm:$0xff] %v4869_v3  ;;  %6634 = vst [vmem:[#allocation121_spill] sm:$0xff] %v4876_v5  ;;  %v4878_v39 = vcombine.high %v165_v12, %v181_v58  ;;  %v4884_v26 = vcombine.low %v165_v12, %v181_v58 }
  0xae   :  { %1928 = vmatpush1.bf16.msra.mxu0 %v4846_v23  ;;  %1969 = vmatpush1.bf16.msra.mxu1 %v4850_v8  ;;  %6636 = vst [vmem:[#allocation123_spill] sm:$0xff] %v4881_v50  ;;  %v134_v8 = vld [vmem:[#allocation5 + $0x248] sm:$0xff]  ;;  %6638 = vst [vmem:[#allocation125_spill] sm:$0xff] %v4888_v25 }
  0xaf   :  { %1929 = vmatprep.subr.bf16.mxu0 %v4852_v18  ;;  %1970 = vmatprep.subr.bf16.mxu1 %v4855_v42  ;;  %6635 = vst [vmem:[#allocation122_spill] sm:$0xff] %v4878_v39  ;;  %v133_v42 = vld [vmem:[#allocation5 + $0x240] sm:$0xff]  ;;  %v150_v23 = vld [vmem:[#allocation5 + $0x2c8] sm:$0xff]  ;;  %6637 = vst [vmem:[#allocation124_spill] sm:$0xff] %v4884_v26 }
  0xb0   :  { %v149_v18 = vld [vmem:[#allocation5 + $0x2c0] sm:$0xff]  ;;  %v4893_v59 = vcombine.high %v134_v8, %v150_v23  ;;  %v4900_v41 = vcombine.low %v134_v8, %v150_v23 }
  0xb1   :  { %v4890_v40 = vcombine.high %v133_v42, %v149_v18  ;;  %v4896_v58 = vcombine.low %v133_v42, %v149_v18 }
  0xb2   :  { %1930 = vmatpush1.bf16.msra.mxu0 %v4860_v7  ;;  %1971 = vmatpush1.bf16.msra.mxu1 %v4864_v0  ;;  %6640 = vst [vmem:[#allocation127_spill] sm:$0xff] %v4893_v59  ;;  %v102_v0 = vld [vmem:[#allocation5 + $0x148] sm:$0xff]  ;;  %6642 = vst [vmem:[#allocation129_spill] sm:$0xff] %v4900_v41 }
  0xb3   :  { %1931 = vmatprep.subr.bf16.mxu0 %v4866_v57  ;;  %1972 = vmatprep.subr.bf16.mxu1 %v4869_v3  ;;  %6639 = vst [vmem:[#allocation126_spill] sm:$0xff] %v4890_v40  ;;  %v101_v3 = vld [vmem:[#allocation5 + $0x140] sm:$0xff]  ;;  %v118_v7 = vld [vmem:[#allocation5 + $0x1c8] sm:$0xff]  ;;  %6641 = vst [vmem:[#allocation128_spill] sm:$0xff] %v4896_v58 }
  0xb4   :  { %v117_v57 = vld [vmem:[#allocation5 + $0x1c0] sm:$0xff]  ;;  %v4905_v12 = vcombine.high %v102_v0, %v118_v7  ;;  %v4912_v23 = vcombine.low %v102_v0, %v118_v7 }
  0xb5   :  { %v4902_v51 = vcombine.high %v101_v3, %v117_v57  ;;  %v4908_v18 = vcombine.low %v101_v3, %v117_v57 }
  0xb6   :  { %1932 = vmatpush1.bf16.msra.mxu0 %v4872_v61  ;;  %1973 = vmatpush1.bf16.msra.mxu1 %v4876_v5  ;;  %6644 = vst [vmem:[#allocation131_spill] sm:$0xff] %v4905_v12  ;;  %v70_v5 = vld [vmem:[#allocation5 + $0x48] sm:$0xff]  ;;  %6646 = vst [vmem:[#allocation133_spill] sm:$0xff] %v4912_v23 }
  0xb7   :  { %1933 = vmatprep.subr.bf16.mxu0 %v4878_v39  ;;  %1974 = vmatprep.subr.bf16.mxu1 %v4881_v50  ;;  %6643 = vst [vmem:[#allocation130_spill] sm:$0xff] %v4902_v51  ;;  %v69_v50 = vld [vmem:[#allocation5 + $0x40] sm:$0xff]  ;;  %v86_v61 = vld [vmem:[#allocation5 + $0xc8] sm:$0xff]  ;;  %6645 = vst [vmem:[#allocation132_spill] sm:$0xff] %v4908_v18 }
  0xb8   :  { %v85_v39 = vld [vmem:[#allocation5 + $0xc0] sm:$0xff]  ;;  %v4917_v42 = vcombine.high %v70_v5, %v86_v61  ;;  %v4924_v7 = vcombine.low %v70_v5, %v86_v61 }
  0xb9   :  { %v4914_v8 = vcombine.high %v69_v50, %v85_v39  ;;  %v4920_v57 = vcombine.low %v69_v50, %v85_v39 }
  0xba   :  { %1934 = vmatpush1.bf16.msra.mxu0 %v4884_v26  ;;  %1975 = vmatpush1.bf16.msra.mxu1 %v4888_v25  ;;  %6648 = vst [vmem:[#allocation135_spill] sm:$0xff] %v4917_v42  ;;  %v296_v25 = vld [vmem:[#allocation5 + $0x758] sm:$0xff]  ;;  %6650 = vst [vmem:[#allocation137_spill] sm:$0xff] %v4924_v7 }
  0xbb   :  { %1935 = vmatprep.subr.bf16.mxu0 %v4890_v40  ;;  %1976 = vmatprep.subr.bf16.mxu1 %v4893_v59  ;;  %6647 = vst [vmem:[#allocation134_spill] sm:$0xff] %v4914_v8  ;;  %v295_v59 = vld [vmem:[#allocation5 + $0x750] sm:$0xff]  ;;  %v312_v26 = vld [vmem:[#allocation5 + $0x7d8] sm:$0xff]  ;;  %6649 = vst [vmem:[#allocation136_spill] sm:$0xff] %v4920_v57 }
  0xbc   :  { %v311_v40 = vld [vmem:[#allocation5 + $0x7d0] sm:$0xff]  ;;  %v4929_v3 = vcombine.high %v296_v25, %v312_v26  ;;  %v4936_v61 = vcombine.low %v296_v25, %v312_v26 }
  0xbd   :  { %v4926_v0 = vcombine.high %v295_v59, %v311_v40  ;;  %v4932_v39 = vcombine.low %v295_v59, %v311_v40 }
  0xbe   :  { %1936 = vmatpush1.bf16.msra.mxu0 %v4896_v58  ;;  %1977 = vmatpush1.bf16.msra.mxu1 %v4900_v41  ;;  %6652 = vst [vmem:[#allocation139_spill] sm:$0xff] %v4929_v3  ;;  %v264_v41 = vld [vmem:[#allocation5 + $0x658] sm:$0xff]  ;;  %6654 = vst [vmem:[#allocation141_spill] sm:$0xff] %v4936_v61 }
  0xbf   :  { %1937 = vmatprep.subr.bf16.mxu0 %v4902_v51  ;;  %1978 = vmatprep.subr.bf16.mxu1 %v4905_v12  ;;  %6651 = vst [vmem:[#allocation138_spill] sm:$0xff] %v4926_v0  ;;  %v263_v12 = vld [vmem:[#allocation5 + $0x650] sm:$0xff]  ;;  %v280_v58 = vld [vmem:[#allocation5 + $0x6d8] sm:$0xff]  ;;  %6653 = vst [vmem:[#allocation140_spill] sm:$0xff] %v4932_v39 }
  0xc0   :  { %v279_v51 = vld [vmem:[#allocation5 + $0x6d0] sm:$0xff]  ;;  %v4941_v50 = vcombine.high %v264_v41, %v280_v58  ;;  %v4950_v26 = vcombine.low %v264_v41, %v280_v58 }
  0xc1   :  { %v4938_v5 = vcombine.high %v263_v12, %v279_v51  ;;  %v4946_v40 = vcombine.low %v263_v12, %v279_v51 }
  0xc2   :  { %1938 = vmatpush1.bf16.msra.mxu0 %v4908_v18  ;;  %1979 = vmatpush1.bf16.msra.mxu1 %v4912_v23  ;;  %6656 = vst [vmem:[#allocation143_spill] sm:$0xff] %v4941_v50  ;;  %v232_v23 = vld [vmem:[#allocation5 + $0x558] sm:$0xff]  ;;  %6658 = vst [vmem:[#allocation145_spill] sm:$0xff] %v4950_v26 }
  0xc3   :  { %1939 = vmatprep.subr.bf16.mxu0 %v4914_v8  ;;  %1980 = vmatprep.subr.bf16.mxu1 %v4917_v42  ;;  %6655 = vst [vmem:[#allocation142_spill] sm:$0xff] %v4938_v5  ;;  %v231_v42 = vld [vmem:[#allocation5 + $0x550] sm:$0xff]  ;;  %6657 = vst [vmem:[#allocation144_spill] sm:$0xff] %v4946_v40  ;;  %v184_v18 = vld [vmem:[#allocation5 + $0x3d8] sm:$0xff] }
  0xc4   :  { %v247_v8 = vld [vmem:[#allocation5 + $0x5d0] sm:$0xff] }
  0xc5   :  { %v4952_v25 = vcombine.high %v231_v42, %v247_v8  ;;  %v4960_v51 = vcombine.low %v231_v42, %v247_v8 }
  0xc6   :  { %1940 = vmatpush1.bf16.msra.mxu0 %v4920_v57  ;;  %1981 = vmatpush1.bf16.msra.mxu1 %v4924_v7  ;;  %v248_v57 = vld [vmem:[#allocation5 + $0x5d8] sm:$0xff] }
  0xc7   :  { %2007 = vmatprep.subr.bf16.mxu0 %v4926_v0  ;;  %2048 = vmatprep.subr.bf16.mxu1 %v4929_v3  ;;  %6659 = vst [vmem:[#allocation146_spill] sm:$0xff] %v4952_v25  ;;  %v4955_v59 = vcombine.high %v232_v23, %v248_v57  ;;  %v199_v3 = vld [vmem:[#allocation5 + $0x450] sm:$0xff]  ;;  %v200_v7 = vld [vmem:[#allocation5 + $0x458] sm:$0xff]  ;;  %6661 = vst [vmem:[#allocation148_spill] sm:$0xff] %v4960_v51  ;;  %v4964_v58 = vcombine.low %v232_v23, %v248_v57 }
  0xc8   :  { %v215_v0 = vld [vmem:[#allocation5 + $0x4d0] sm:$0xff] }
  0xc9   :  { %1958 = vmatmul.mubr.bf16.vlgmr.msra.gmra.mxu0 %v4529_v24  ;;  %1999 = vmatmul.mubr.bf16.vlgmr.msra.gmra.mxu1 %v4529_v24  ;;  %6660 = vst [vmem:[#allocation147_spill] sm:$0xff] %v4955_v59  ;;  %6662 = vst [vmem:[#allocation149_spill] sm:$0xff] %v4964_v58  ;;  %v4966_v41 = vcombine.high %v199_v3, %v215_v0  ;;  %v4972_v8 = vcombine.low %v199_v3, %v215_v0 }
  0xca   :  { %2008 = vmatpush1.bf16.msra.mxu0 %v4932_v39  ;;  %2049 = vmatpush1.bf16.msra.mxu1 %v4936_v61  ;;  %v216_v39 = vld [vmem:[#allocation5 + $0x4d8] sm:$0xff] }
  0xcb   :  { %2009 = vmatprep.subr.bf16.mxu0 %v4938_v5  ;;  %2050 = vmatprep.subr.bf16.mxu1 %v4941_v50  ;;  %6663 = vst [vmem:[#allocation150_spill] sm:$0xff] %v4966_v41  ;;  %v4969_v12 = vcombine.high %v200_v7, %v216_v39  ;;  %v167_v50 = vld [vmem:[#allocation5 + $0x350] sm:$0xff]  ;;  %v168_v61 = vld [vmem:[#allocation5 + $0x358] sm:$0xff]  ;;  %6665 = vst [vmem:[#allocation152_spill] sm:$0xff] %v4972_v8  ;;  %v4976_v23 = vcombine.low %v200_v7, %v216_v39 }
  0xcc   :  { %2039 = vmatprep.mubr.bf16.mxu0 %v6564_v60  ;;  %2080 = vmatprep.mubr.bf16.mxu1 %v6564_v60  ;;  %v183_v5 = vld [vmem:[#allocation5 + $0x3d0] sm:$0xff]  ;;  %v4981_v57 = vcombine.high %v168_v61, %v184_v18  ;;  %v4988_v7 = vcombine.low %v168_v61, %v184_v18 }
  0xcd   :  { %6664 = vst [vmem:[#allocation151_spill] sm:$0xff] %v4969_v12  ;;  %6666 = vst [vmem:[#allocation153_spill] sm:$0xff] %v4976_v23  ;;  %v4978_v42 = vcombine.high %v167_v50, %v183_v5  ;;  %v4984_v0 = vcombine.low %v167_v50, %v183_v5 }
  0xce   :  { %2010 = vmatpush1.bf16.msra.mxu0 %v4946_v40  ;;  %2051 = vmatpush1.bf16.msra.mxu1 %v4950_v26  ;;  %6668 = vst [vmem:[#allocation155_spill] sm:$0xff] %v4981_v57  ;;  %v136_v26 = vld [vmem:[#allocation5 + $0x258] sm:$0xff]  ;;  %6670 = vst [vmem:[#allocation157_spill] sm:$0xff] %v4988_v7 }
  0xcf   :  { %2011 = vmatprep.subr.bf16.mxu0 %v4952_v25  ;;  %2052 = vmatprep.subr.bf16.mxu1 %v4955_v59  ;;  %6667 = vst [vmem:[#allocation154_spill] sm:$0xff] %v4978_v42  ;;  %v135_v59 = vld [vmem:[#allocation5 + $0x250] sm:$0xff]  ;;  %v152_v40 = vld [vmem:[#allocation5 + $0x2d8] sm:$0xff]  ;;  %6669 = vst [vmem:[#allocation156_spill] sm:$0xff] %v4984_v0 }
  0xd0   :  { %v151_v25 = vld [vmem:[#allocation5 + $0x2d0] sm:$0xff]  ;;  %v4993_v39 = vcombine.high %v136_v26, %v152_v40  ;;  %v5000_v18 = vcombine.low %v136_v26, %v152_v40 }
  0xd1   :  { %v4990_v3 = vcombine.high %v135_v59, %v151_v25  ;;  %v4996_v5 = vcombine.low %v135_v59, %v151_v25 }
  0xd2   :  { %2012 = vmatpush1.bf16.msra.mxu0 %v4960_v51  ;;  %2053 = vmatpush1.bf16.msra.mxu1 %v4964_v58  ;;  %6672 = vst [vmem:[#allocation159_spill] sm:$0xff] %v4993_v39  ;;  %v104_v58 = vld [vmem:[#allocation5 + $0x158] sm:$0xff]  ;;  %6674 = vst [vmem:[#allocation161_spill] sm:$0xff] %v5000_v18 }
  0xd3   :  { %2013 = vmatprep.subr.bf16.mxu0 %v4966_v41  ;;  %2054 = vmatprep.subr.bf16.mxu1 %v4969_v12  ;;  %6671 = vst [vmem:[#allocation158_spill] sm:$0xff] %v4990_v3  ;;  %v103_v12 = vld [vmem:[#allocation5 + $0x150] sm:$0xff]  ;;  %v120_v51 = vld [vmem:[#allocation5 + $0x1d8] sm:$0xff]  ;;  %6673 = vst [vmem:[#allocation160_spill] sm:$0xff] %v4996_v5 }
  0xd4   :  { %v119_v41 = vld [vmem:[#allocation5 + $0x1d0] sm:$0xff]  ;;  %v5005_v50 = vcombine.high %v104_v58, %v120_v51  ;;  %v5012_v40 = vcombine.low %v104_v58, %v120_v51 }
  0xd5   :  { %v5002_v61 = vcombine.high %v103_v12, %v119_v41  ;;  %v5008_v25 = vcombine.low %v103_v12, %v119_v41 }
  0xd6   :  { %2014 = vmatpush1.bf16.msra.mxu0 %v4972_v8  ;;  %2055 = vmatpush1.bf16.msra.mxu1 %v4976_v23  ;;  %6676 = vst [vmem:[#allocation163_spill] sm:$0xff] %v5005_v50  ;;  %v72_v23 = vld [vmem:[#allocation5 + $0x58] sm:$0xff]  ;;  %6678 = vst [vmem:[#allocation165_spill] sm:$0xff] %v5012_v40 }
  0xd7   :  { %2015 = vmatprep.subr.bf16.mxu0 %v4978_v42  ;;  %2056 = vmatprep.subr.bf16.mxu1 %v4981_v57  ;;  %6675 = vst [vmem:[#allocation162_spill] sm:$0xff] %v5002_v61  ;;  %v71_v57 = vld [vmem:[#allocation5 + $0x50] sm:$0xff]  ;;  %v88_v8 = vld [vmem:[#allocation5 + $0xd8] sm:$0xff]  ;;  %6677 = vst [vmem:[#allocation164_spill] sm:$0xff] %v5008_v25 }
  0xd8   :  { %v87_v42 = vld [vmem:[#allocation5 + $0xd0] sm:$0xff]  ;;  %v5017_v59 = vcombine.high %v72_v23, %v88_v8  ;;  %v5024_v51 = vcombine.low %v72_v23, %v88_v8 }
  0xd9   :  { %v5014_v26 = vcombine.high %v71_v57, %v87_v42  ;;  %v5020_v41 = vcombine.low %v71_v57, %v87_v42 }
  0xda   :  { %2016 = vmatpush1.bf16.msra.mxu0 %v4984_v0  ;;  %2057 = vmatpush1.bf16.msra.mxu1 %v4988_v7  ;;  %6680 = vst [vmem:[#allocation167_spill] sm:$0xff] %v5017_v59  ;;  %v298_v7 = vld [vmem:[#allocation5 + $0x768] sm:$0xff]  ;;  %6682 = vst [vmem:[#allocation169_spill] sm:$0xff] %v5024_v51 }
  0xdb   :  { %2017 = vmatprep.subr.bf16.mxu0 %v4990_v3  ;;  %2058 = vmatprep.subr.bf16.mxu1 %v4993_v39  ;;  %6679 = vst [vmem:[#allocation166_spill] sm:$0xff] %v5014_v26  ;;  %v297_v39 = vld [vmem:[#allocation5 + $0x760] sm:$0xff]  ;;  %v314_v0 = vld [vmem:[#allocation5 + $0x7e8] sm:$0xff]  ;;  %6681 = vst [vmem:[#allocation168_spill] sm:$0xff] %v5020_v41 }
  0xdc   :  { %v313_v3 = vld [vmem:[#allocation5 + $0x7e0] sm:$0xff]  ;;  %v5029_v12 = vcombine.high %v298_v7, %v314_v0  ;;  %v5036_v8 = vcombine.low %v298_v7, %v314_v0 }
  0xdd   :  { %v5026_v58 = vcombine.high %v297_v39, %v313_v3  ;;  %v5032_v42 = vcombine.low %v297_v39, %v313_v3 }
  0xde   :  { %2018 = vmatpush1.bf16.msra.mxu0 %v4996_v5  ;;  %2059 = vmatpush1.bf16.msra.mxu1 %v5000_v18  ;;  %6684 = vst [vmem:[#allocation171_spill] sm:$0xff] %v5029_v12  ;;  %v266_v18 = vld [vmem:[#allocation5 + $0x668] sm:$0xff]  ;;  %6686 = vst [vmem:[#allocation173_spill] sm:$0xff] %v5036_v8 }
  0xdf   :  { %2019 = vmatprep.subr.bf16.mxu0 %v5002_v61  ;;  %2060 = vmatprep.subr.bf16.mxu1 %v5005_v50  ;;  %6683 = vst [vmem:[#allocation170_spill] sm:$0xff] %v5026_v58  ;;  %v265_v50 = vld [vmem:[#allocation5 + $0x660] sm:$0xff]  ;;  %v282_v5 = vld [vmem:[#allocation5 + $0x6e8] sm:$0xff]  ;;  %6685 = vst [vmem:[#allocation172_spill] sm:$0xff] %v5032_v42 }
  0xe0   :  { %v281_v61 = vld [vmem:[#allocation5 + $0x6e0] sm:$0xff]  ;;  %v5041_v57 = vcombine.high %v266_v18, %v282_v5  ;;  %v5050_v0 = vcombine.low %v266_v18, %v282_v5 }
  0xe1   :  { %v5038_v23 = vcombine.high %v265_v50, %v281_v61  ;;  %v5046_v3 = vcombine.low %v265_v50, %v281_v61 }
  0xe2   :  { %2020 = vmatpush1.bf16.msra.mxu0 %v5008_v25  ;;  %2061 = vmatpush1.bf16.msra.mxu1 %v5012_v40  ;;  %6688 = vst [vmem:[#allocation175_spill] sm:$0xff] %v5041_v57  ;;  %v234_v40 = vld [vmem:[#allocation5 + $0x568] sm:$0xff]  ;;  %6690 = vst [vmem:[#allocation177_spill] sm:$0xff] %v5050_v0 }
  0xe3   :  { %2021 = vmatprep.subr.bf16.mxu0 %v5014_v26  ;;  %2062 = vmatprep.subr.bf16.mxu1 %v5017_v59  ;;  %6687 = vst [vmem:[#allocation174_spill] sm:$0xff] %v5038_v23  ;;  %v233_v59 = vld [vmem:[#allocation5 + $0x560] sm:$0xff]  ;;  %6689 = vst [vmem:[#allocation176_spill] sm:$0xff] %v5046_v3  ;;  %v186_v25 = vld [vmem:[#allocation5 + $0x3e8] sm:$0xff] }
  0xe4   :  { %v249_v26 = vld [vmem:[#allocation5 + $0x5e0] sm:$0xff] }
  0xe5   :  { %v5052_v7 = vcombine.high %v233_v59, %v249_v26  ;;  %v5060_v61 = vcombine.low %v233_v59, %v249_v26 }
  0xe6   :  { %2022 = vmatpush1.bf16.msra.mxu0 %v5020_v41  ;;  %2063 = vmatpush1.bf16.msra.mxu1 %v5024_v51  ;;  %v250_v41 = vld [vmem:[#allocation5 + $0x5e8] sm:$0xff] }
  0xe7   :  { %2089 = vmatprep.subr.bf16.mxu0 %v5026_v58  ;;  %2130 = vmatprep.subr.bf16.mxu1 %v5029_v12  ;;  %6691 = vst [vmem:[#allocation178_spill] sm:$0xff] %v5052_v7  ;;  %v5055_v39 = vcombine.high %v234_v40, %v250_v41  ;;  %v201_v12 = vld [vmem:[#allocation5 + $0x460] sm:$0xff]  ;;  %v202_v51 = vld [vmem:[#allocation5 + $0x468] sm:$0xff]  ;;  %6693 = vst [vmem:[#allocation180_spill] sm:$0xff] %v5060_v61  ;;  %v5064_v5 = vcombine.low %v234_v40, %v250_v41 }
  0xe8   :  { %v217_v58 = vld [vmem:[#allocation5 + $0x4e0] sm:$0xff] }
  0xe9   :  { %2040 = vmatmul.mubr.bf16.vlgmr.msra.gmra.mxu0 %v4529_v24  ;;  %2081 = vmatmul.mubr.bf16.vlgmr.msra.gmra.mxu1 %v4529_v24  ;;  %6692 = vst [vmem:[#allocation179_spill] sm:$0xff] %v5055_v39  ;;  %6694 = vst [vmem:[#allocation181_spill] sm:$0xff] %v5064_v5  ;;  %v5066_v18 = vcombine.high %v201_v12, %v217_v58  ;;  %v5072_v26 = vcombine.low %v201_v12, %v217_v58 }
  0xea   :  { %2090 = vmatpush1.bf16.msra.mxu0 %v5032_v42  ;;  %2131 = vmatpush1.bf16.msra.mxu1 %v5036_v8  ;;  %v218_v42 = vld [vmem:[#allocation5 + $0x4e8] sm:$0xff] }
  0xeb   :  { %2091 = vmatprep.subr.bf16.mxu0 %v5038_v23  ;;  %2132 = vmatprep.subr.bf16.mxu1 %v5041_v57  ;;  %6695 = vst [vmem:[#allocation182_spill] sm:$0xff] %v5066_v18  ;;  %v5069_v50 = vcombine.high %v202_v51, %v218_v42  ;;  %v169_v57 = vld [vmem:[#allocation5 + $0x360] sm:$0xff]  ;;  %v170_v8 = vld [vmem:[#allocation5 + $0x368] sm:$0xff]  ;;  %6697 = vst [vmem:[#allocation184_spill] sm:$0xff] %v5072_v26  ;;  %v5076_v40 = vcombine.low %v202_v51, %v218_v42 }
  0xec   :  { %2121 = vmatprep.mubr.bf16.mxu0 %v6564_v60  ;;  %2162 = vmatprep.mubr.bf16.mxu1 %v6564_v60  ;;  %v185_v23 = vld [vmem:[#allocation5 + $0x3e0] sm:$0xff]  ;;  %v5081_v41 = vcombine.high %v170_v8, %v186_v25  ;;  %v5088_v51 = vcombine.low %v170_v8, %v186_v25 }
  0xed   :  { %6696 = vst [vmem:[#allocation183_spill] sm:$0xff] %v5069_v50  ;;  %6698 = vst [vmem:[#allocation185_spill] sm:$0xff] %v5076_v40  ;;  %v5078_v59 = vcombine.high %v169_v57, %v185_v23  ;;  %v5084_v58 = vcombine.low %v169_v57, %v185_v23 }
  0xee   :  { %2092 = vmatpush1.bf16.msra.mxu0 %v5046_v3  ;;  %2133 = vmatpush1.bf16.msra.mxu1 %v5050_v0  ;;  %6700 = vst [vmem:[#allocation187_spill] sm:$0xff] %v5081_v41  ;;  %v138_v0 = vld [vmem:[#allocation5 + $0x268] sm:$0xff]  ;;  %6702 = vst [vmem:[#allocation189_spill] sm:$0xff] %v5088_v51 }
  0xef   :  { %2093 = vmatprep.subr.bf16.mxu0 %v5052_v7  ;;  %2134 = vmatprep.subr.bf16.mxu1 %v5055_v39  ;;  %6699 = vst [vmem:[#allocation186_spill] sm:$0xff] %v5078_v59  ;;  %v137_v39 = vld [vmem:[#allocation5 + $0x260] sm:$0xff]  ;;  %v154_v3 = vld [vmem:[#allocation5 + $0x2e8] sm:$0xff]  ;;  %6701 = vst [vmem:[#allocation188_spill] sm:$0xff] %v5084_v58 }
  0xf0   :  { %v153_v7 = vld [vmem:[#allocation5 + $0x2e0] sm:$0xff]  ;;  %v5093_v42 = vcombine.high %v138_v0, %v154_v3  ;;  %v5100_v25 = vcombine.low %v138_v0, %v154_v3 }
  0xf1   :  { %v5090_v12 = vcombine.high %v137_v39, %v153_v7  ;;  %v5096_v23 = vcombine.low %v137_v39, %v153_v7 }
  0xf2   :  { %2094 = vmatpush1.bf16.msra.mxu0 %v5060_v61  ;;  %2135 = vmatpush1.bf16.msra.mxu1 %v5064_v5  ;;  %6704 = vst [vmem:[#allocation191_spill] sm:$0xff] %v5093_v42  ;;  %v106_v5 = vld [vmem:[#allocation5 + $0x168] sm:$0xff]  ;;  %6706 = vst [vmem:[#allocation193_spill] sm:$0xff] %v5100_v25 }
  0xf3   :  { %2095 = vmatprep.subr.bf16.mxu0 %v5066_v18  ;;  %2136 = vmatprep.subr.bf16.mxu1 %v5069_v50  ;;  %6703 = vst [vmem:[#allocation190_spill] sm:$0xff] %v5090_v12  ;;  %v105_v50 = vld [vmem:[#allocation5 + $0x160] sm:$0xff]  ;;  %v122_v61 = vld [vmem:[#allocation5 + $0x1e8] sm:$0xff]  ;;  %6705 = vst [vmem:[#allocation192_spill] sm:$0xff] %v5096_v23 }
  0xf4   :  { %v121_v18 = vld [vmem:[#allocation5 + $0x1e0] sm:$0xff]  ;;  %v5105_v57 = vcombine.high %v106_v5, %v122_v61  ;;  %v5112_v3 = vcombine.low %v106_v5, %v122_v61 }
  0xf5   :  { %v5102_v8 = vcombine.high %v105_v50, %v121_v18  ;;  %v5108_v7 = vcombine.low %v105_v50, %v121_v18 }
  0xf6   :  { %2096 = vmatpush1.bf16.msra.mxu0 %v5072_v26  ;;  %2137 = vmatpush1.bf16.msra.mxu1 %v5076_v40  ;;  %6708 = vst [vmem:[#allocation195_spill] sm:$0xff] %v5105_v57  ;;  %v74_v40 = vld [vmem:[#allocation5 + $0x68] sm:$0xff]  ;;  %6710 = vst [vmem:[#allocation197_spill] sm:$0xff] %v5112_v3 }
  0xf7   :  { %2097 = vmatprep.subr.bf16.mxu0 %v5078_v59  ;;  %2138 = vmatprep.subr.bf16.mxu1 %v5081_v41  ;;  %6707 = vst [vmem:[#allocation194_spill] sm:$0xff] %v5102_v8  ;;  %v73_v41 = vld [vmem:[#allocation5 + $0x60] sm:$0xff]  ;;  %v90_v26 = vld [vmem:[#allocation5 + $0xe8] sm:$0xff]  ;;  %6709 = vst [vmem:[#allocation196_spill] sm:$0xff] %v5108_v7 }
  0xf8   :  { %v89_v59 = vld [vmem:[#allocation5 + $0xe0] sm:$0xff]  ;;  %v5117_v39 = vcombine.high %v74_v40, %v90_v26  ;;  %v5124_v61 = vcombine.low %v74_v40, %v90_v26 }
  0xf9   :  { %v5114_v0 = vcombine.high %v73_v41, %v89_v59  ;;  %v5120_v18 = vcombine.low %v73_v41, %v89_v59 }
  0xfa   :  { %2098 = vmatpush1.bf16.msra.mxu0 %v5084_v58  ;;  %2139 = vmatpush1.bf16.msra.mxu1 %v5088_v51  ;;  %6712 = vst [vmem:[#allocation199_spill] sm:$0xff] %v5117_v39  ;;  %v300_v51 = vld [vmem:[#allocation5 + $0x778] sm:$0xff]  ;;  %6714 = vst [vmem:[#allocation201_spill] sm:$0xff] %v5124_v61 }
  0xfb   :  { %2099 = vmatprep.subr.bf16.mxu0 %v5090_v12  ;;  %2140 = vmatprep.subr.bf16.mxu1 %v5093_v42  ;;  %6711 = vst [vmem:[#allocation198_spill] sm:$0xff] %v5114_v0  ;;  %v299_v42 = vld [vmem:[#allocation5 + $0x770] sm:$0xff]  ;;  %v316_v58 = vld [vmem:[#allocation5 + $0x7f8] sm:$0xff]  ;;  %6713 = vst [vmem:[#allocation200_spill] sm:$0xff] %v5120_v18 }
  0xfc   :  { %v315_v12 = vld [vmem:[#allocation5 + $0x7f0] sm:$0xff]  ;;  %v5129_v50 = vcombine.high %v300_v51, %v316_v58  ;;  %v5136_v26 = vcombine.low %v300_v51, %v316_v58 }
  0xfd   :  { %v5126_v5 = vcombine.high %v299_v42, %v315_v12  ;;  %v5132_v59 = vcombine.low %v299_v42, %v315_v12  ;;  %v236_v12 = vld [vmem:[#allocation5 + $0x578] sm:$0xff] }
  0xfe   :  { %2100 = vmatpush1.bf16.msra.mxu0 %v5096_v23  ;;  %2141 = vmatpush1.bf16.msra.mxu1 %v5100_v25  ;;  %6716 = vst [vmem:[#allocation203_spill] sm:$0xff] %v5129_v50  ;;  %v268_v25 = vld [vmem:[#allocation5 + $0x678] sm:$0xff]  ;;  %6718 = vst [vmem:[#allocation205_spill] sm:$0xff] %v5136_v26 }
  0xff   :  { %2101 = vmatprep.subr.bf16.mxu0 %v5102_v8  ;;  %2142 = vmatprep.subr.bf16.mxu1 %v5105_v57  ;;  %6715 = vst [vmem:[#allocation202_spill] sm:$0xff] %v5126_v5  ;;  %v267_v57 = vld [vmem:[#allocation5 + $0x670] sm:$0xff]  ;;  %v284_v23 = vld [vmem:[#allocation5 + $0x6f8] sm:$0xff]  ;;  %6717 = vst [vmem:[#allocation204_spill] sm:$0xff] %v5132_v59 }
 0x100   :  { %v283_v8 = vld [vmem:[#allocation5 + $0x6f0] sm:$0xff]  ;;  %v5141_v41 = vcombine.high %v268_v25, %v284_v23  ;;  %v252_v42 = vld [vmem:[#allocation5 + $0x5f8] sm:$0xff] }
 0x101   :  { %v5138_v40 = vcombine.high %v267_v57, %v283_v8  ;;  %v5150_v58 = vcombine.low %v267_v57, %v283_v8  ;;  %v204_v57 = vld [vmem:[#allocation5 + $0x478] sm:$0xff] }
 0x102   :  { %2102 = vmatpush1.bf16.msra.mxu0 %v5108_v7  ;;  %2143 = vmatpush1.bf16.msra.mxu1 %v5112_v3  ;;  %6720 = vst [vmem:[#allocation207_spill] sm:$0xff] %v5141_v41  ;;  %v171_v7 = vld [vmem:[#allocation5 + $0x370] sm:$0xff] }
 0x103   :  { %2103 = vmatprep.subr.bf16.mxu0 %v5114_v0  ;;  %2144 = vmatprep.subr.bf16.mxu1 %v5117_v39  ;;  %6719 = vst [vmem:[#allocation206_spill] sm:$0xff] %v5138_v40  ;;  %v235_v39 = vld [vmem:[#allocation5 + $0x570] sm:$0xff]  ;;  %6723 = vst [vmem:[#allocation210_spill] sm:$0xff] %v5150_v58 }
 0x104   :  { %v251_v0 = vld [vmem:[#allocation5 + $0x5f0] sm:$0xff] }
 0x106   :  { %2104 = vmatpush1.bf16.msra.mxu0 %v5120_v18  ;;  %2145 = vmatpush1.bf16.msra.mxu1 %v5124_v61  ;;  %v203_v61 = vld [vmem:[#allocation5 + $0x470] sm:$0xff] }
 0x107   :  { %2171 = vmatprep.subr.bf16.mxu0 %v5126_v5  ;;  %2212 = vmatprep.subr.bf16.mxu1 %v5129_v50  ;;  %v5156_v50 = vcombine.low %v268_v25, %v284_v23  ;;  %v5168_v23 = vcombine.low %v235_v39, %v251_v0 }
 0x109   :  { %v5143_v3 = vpop.f32.mrf.mxu0  ;;  %2122 = vmatmul.mubr.bf16.vlgmr.msra.gmra.mxu0 %v4529_v24  ;;  %v5146_v18 = vpop.f32.mrf.mxu1  ;;  %2163 = vmatmul.mubr.bf16.vlgmr.msra.gmra.mxu1 %v4529_v24  ;;  %6728 = vst [vmem:[#allocation215_spill] sm:$0xff] %v5168_v23 }
 0x10a   :  { %6721 = vst [vmem:[#allocation208_spill] sm:$0xff] %v5143_v3  ;;  %6722 = vst [vmem:[#allocation209_spill] sm:$0xff] %v5146_v18  ;;  %2172 = vmatpush1.bf16.msra.mxu0 %v5132_v59  ;;  %2213 = vmatpush1.bf16.msra.mxu1 %v5136_v26  ;;  %v5158_v3 = vcombine.high %v235_v39, %v251_v0  ;;  %v5163_v18 = vcombine.high %v236_v12, %v252_v42  ;;  %v219_v59 = vld [vmem:[#allocation5 + $0x4f0] sm:$0xff]  ;;  %v220_v26 = vld [vmem:[#allocation5 + $0x4f8] sm:$0xff] }
 0x10b   :  { %v5153_v51 = vpop.f32.mrf.mxu0  ;;  %2173 = vmatprep.subr.bf16.mxu0 %v5138_v40  ;;  %v5160_v5 = vpop.f32.mrf.mxu1  ;;  %2214 = vmatprep.subr.bf16.mxu1 %v5141_v41  ;;  %v5174_v41 = vcombine.high %v203_v61, %v219_v59  ;;  %v5180_v0 = vcombine.low %v203_v61, %v219_v59  ;;  %v5184_v39 = vcombine.low %v204_v57, %v220_v26 }
 0x10c   :  { %6724 = vst [vmem:[#allocation211_spill] sm:$0xff] %v5153_v51  ;;  %6725 = vst [vmem:[#allocation212_spill] sm:$0xff] %v5158_v3  ;;  %2203 = vmatprep.mubr.bf16.mxu0 %v6564_v60  ;;  %2244 = vmatprep.mubr.bf16.mxu1 %v6564_v60 }
 0x10d   :  { %6726 = vst [vmem:[#allocation213_spill] sm:$0xff] %v5160_v5  ;;  %6727 = vst [vmem:[#allocation214_spill] sm:$0xff] %v5163_v18  ;;  %v1635_v8 = vpop.f32.mrf.mxu0  ;;  %v1676_v51 = vpop.f32.mrf.mxu1  ;;  %v5172_v5 = vcombine.low %v236_v12, %v252_v42  ;;  %v139_v42 = vld [vmem:[#allocation5 + $0x270] sm:$0xff] }
 0x10e   :  { %2174 = vmatpush1.bf16.msra.mxu0 %v5150_v58  ;;  %2215 = vmatpush1.bf16.msra.mxu1 %v5156_v50  ;;  %6730 = vst [vmem:[#allocation217_spill] sm:$0xff] %v5174_v41  ;;  %v5177_v8 = vcombine.high %v204_v57, %v220_v26  ;;  %v187_v51 = vld [vmem:[#allocation5 + $0x3f0] sm:$0xff]  ;;  %v188_v58 = vld [vmem:[#allocation5 + $0x3f8] sm:$0xff]  ;;  %6732 = vst [vmem:[#allocation219_spill] sm:$0xff] %v5180_v0 }
 0x10f   :  { %v1636_v25 = vpop.f32.mrf.mxu0  ;;  %2175 = vmatprep.subr.bf16.mxu0 %v5158_v3  ;;  %6729 = vst [vmem:[#allocation216_spill] sm:$0xff] %v5172_v5  ;;  %v1677_v40 = vpop.f32.mrf.mxu1  ;;  %2216 = vmatprep.subr.bf16.mxu1 %v5163_v18  ;;  %6733 = vst [vmem:[#allocation220_spill] sm:$0xff] %v5184_v39  ;;  %v5186_v12 = vcombine.high %v171_v7, %v187_v51  ;;  %v140_v18 = vld [vmem:[#allocation5 + $0x278] sm:$0xff]  ;;  %v5192_v61 = vcombine.low %v171_v7, %v187_v51 }
 0x110   :  { %6731 = vst [vmem:[#allocation218_spill] sm:$0xff] %v5177_v8  ;;  %v5189_v40 = vcombine.high %v172_v49, %v188_v58  ;;  %v155_v25 = vld [vmem:[#allocation5 + $0x2f0] sm:$0xff]  ;;  %v156_v3 = vld [vmem:[#allocation5 + $0x2f8] sm:$0xff]  ;;  %v5196_v59 = vcombine.low %v172_v49, %v188_v58 }
 0x111   :  { %6734 = vst [vmem:[#allocation221_spill] sm:$0xff] %v5186_v12  ;;  %v5198_v26 = vcombine.high %v139_v42, %v155_v25  ;;  %v5201_v57 = vcombine.high %v140_v18, %v156_v3  ;;  %v5204_v7 = vcombine.low %v139_v42, %v155_v25  ;;  %v5208_v49 = vcombine.low %v140_v18, %v156_v3 }
 0x112   :  { %2176 = vmatpush1.bf16.msra.mxu0 %v5168_v23  ;;  %2217 = vmatpush1.bf16.msra.mxu1 %v5172_v5  ;;  %6735 = vst [vmem:[#allocation222_spill] sm:$0xff] %v5189_v40  ;;  %v108_v5 = vld [vmem:[#allocation5 + $0x178] sm:$0xff] }
 0x113   :  { %2177 = vmatprep.subr.bf16.mxu0 %v5174_v41  ;;  %2218 = vmatprep.subr.bf16.mxu1 %v5177_v8  ;;  %6736 = vst [vmem:[#allocation223_spill] sm:$0xff] %v5201_v57  ;;  %v107_v8 = vld [vmem:[#allocation5 + $0x170] sm:$0xff]  ;;  %v124_v23 = vld [vmem:[#allocation5 + $0x1f8] sm:$0xff]  ;;  %6737 = vst [vmem:[#allocation224_spill] sm:$0xff] %v5208_v49 }
 0x114   :  { %v123_v41 = vld [vmem:[#allocation5 + $0x1f0] sm:$0xff]  ;;  %v5213_v51 = vcombine.high %v108_v5, %v124_v23  ;;  %v5220_v3 = vcombine.low %v108_v5, %v124_v23 }
 0x115   :  { %v5210_v58 = vcombine.high %v107_v8, %v123_v41  ;;  %v5216_v42 = vcombine.low %v107_v8, %v123_v41 }
 0x116   :  { %2178 = vmatpush1.bf16.msra.mxu0 %v5180_v0  ;;  %2219 = vmatpush1.bf16.msra.mxu1 %v5184_v39  ;;  %6738 = vst [vmem:[#allocation225_spill] sm:$0xff] %v5213_v51  ;;  %v76_v39 = vld [vmem:[#allocation5 + $0x78] sm:$0xff] }
 0x117   :  { %2179 = vmatprep.subr.bf16.mxu0 %v5186_v12  ;;  %2220 = vmatprep.subr.bf16.mxu1 %v5189_v40  ;;  %v75_v40 = vld [vmem:[#allocation5 + $0x70] sm:$0xff]  ;;  %v92_v0 = vld [vmem:[#allocation5 + $0xf8] sm:$0xff] }
 0x118   :  { %v91_v12 = vld [vmem:[#allocation5 + $0xf0] sm:$0xff]  ;;  %v5225_v25 = vcombine.high %v76_v39, %v92_v0  ;;  %v5232_v41 = vcombine.low %v76_v39, %v92_v0 }
 0x119   :  { %v5222_v18 = vcombine.high %v75_v40, %v91_v12 }
 0x11a   :  { %2180 = vmatpush1.bf16.msra.mxu0 %v5192_v61  ;;  %2221 = vmatpush1.bf16.msra.mxu1 %v5196_v59  ;;  %6739 = vst [vmem:[#allocation226_spill] sm:$0xff] %v5225_v25  ;;  %6740 = vst [vmem:[#allocation227_spill] sm:$0xff] %v5232_v41 }
 0x11b   :  { %2181 = vmatprep.subr.bf16.mxu0 %v5198_v26  ;;  %2222 = vmatprep.subr.bf16.mxu1 %v5201_v57  ;;  %v5228_v57 = vcombine.low %v75_v40, %v91_v12 }
 0x11e   :  { %2182 = vmatpush1.bf16.msra.mxu0 %v5204_v7  ;;  %2223 = vmatpush1.bf16.msra.mxu1 %v5208_v49 }
 0x11f   :  { %2183 = vmatprep.subr.bf16.mxu0 %v5210_v58  ;;  %2224 = vmatprep.subr.bf16.mxu1 %v5213_v51 }
 0x122   :  { %2184 = vmatpush1.bf16.msra.mxu0 %v5216_v42  ;;  %2225 = vmatpush1.bf16.msra.mxu1 %v5220_v3 }
 0x123   :  { %2185 = vmatprep.subr.bf16.mxu0 %v5222_v18  ;;  %2226 = vmatprep.subr.bf16.mxu1 %v5225_v25 }
 0x126   :  { %2186 = vmatpush1.bf16.msra.mxu0 %v5228_v57  ;;  %2227 = vmatpush1.bf16.msra.mxu1 %v5232_v41 }
 0x127   :  { %2253 = vmatprep.subr.bf16.mxu0 %v4424_v4  ;;  %2294 = vmatprep.subr.bf16.mxu1 %v4428_v9 }
 0x129   :  { %v5239_v5 = vpop.f32.mrf.mxu0  ;;  %2204 = vmatmul.mubr.bf16.vlgmr.msra.gmra.mxu0 %v4529_v24  ;;  %v5242_v23 = vpop.f32.mrf.mxu1  ;;  %2245 = vmatmul.mubr.bf16.vlgmr.msra.gmra.mxu1 %v4529_v24 }
 0x12a   :  { %6741 = vst [vmem:[#allocation228_spill] sm:$0xff] %v5239_v5  ;;  %6742 = vst [vmem:[#allocation229_spill] sm:$0xff] %v5242_v23  ;;  %2254 = vmatpush1.bf16.msra.mxu0 %v4426_v6  ;;  %2295 = vmatpush1.bf16.msra.mxu1 %v4430_v10  ;;  %v6749_v23 = vld [vmem:[#allocation18_spill] sm:$0xff]  ;;  %v6750_v5 = vld [vmem:[#allocation19_spill] sm:$0xff] }
 0x12b   :  { %v5247_v8 = vpop.f32.mrf.mxu0  ;;  %2255 = vmatprep.subr.bf16.mxu0 %v4432_v11  ;;  %v5250_v0 = vpop.f32.mrf.mxu1  ;;  %2296 = vmatprep.subr.bf16.mxu1 %v4435_v15 }
 0x12c   :  { %6743 = vst [vmem:[#allocation230_spill] sm:$0xff] %v5247_v8  ;;  %6744 = vst [vmem:[#allocation231_spill] sm:$0xff] %v5250_v0  ;;  %2285 = vmatprep.mubr.bf16.mxu0 %v6564_v60  ;;  %2326 = vmatprep.mubr.bf16.mxu1 %v6564_v60 }
 0x12d   :  { %v1717_v39 = vpop.f32.mrf.mxu0  ;;  %v1758_v12 = vpop.f32.mrf.mxu1 }
 0x12e   :  { %2256 = vmatpush1.bf16.msra.mxu0 %v4439_v19  ;;  %2297 = vmatpush1.bf16.msra.mxu1 %v4443_v20 }
 0x12f   :  { %v1718_v40 = vpop.f32.mrf.mxu0  ;;  %2257 = vmatprep.subr.bf16.mxu0 %v4445_v21  ;;  %v1759_v8 = vpop.f32.mrf.mxu1  ;;  %2298 = vmatprep.subr.bf16.mxu1 %v4448_v22 }
 0x132   :  { %2258 = vmatpush1.bf16.msra.mxu0 %v4451_v27  ;;  %2299 = vmatpush1.bf16.msra.mxu1 %v4455_v28 }
 0x133   :  { %2259 = vmatprep.subr.bf16.mxu0 %v4457_v29  ;;  %2300 = vmatprep.subr.bf16.mxu1 %v4460_v30 }
 0x136   :  { %2260 = vmatpush1.bf16.msra.mxu0 %v4463_v35  ;;  %2301 = vmatpush1.bf16.msra.mxu1 %v4467_v36 }
 0x137   :  { %2261 = vmatprep.subr.bf16.mxu0 %v4469_v37  ;;  %2302 = vmatprep.subr.bf16.mxu1 %v4472_v38 }
 0x13a   :  { %2262 = vmatpush1.bf16.msra.mxu0 %v4475_v43  ;;  %2303 = vmatpush1.bf16.msra.mxu1 %v4479_v45 }
 0x13b   :  { %2263 = vmatprep.subr.bf16.mxu0 %v4481_v46  ;;  %2304 = vmatprep.subr.bf16.mxu1 %v4484_v47 }
 0x13e   :  { %2264 = vmatpush1.bf16.msra.mxu0 %v4489_v53  ;;  %2305 = vmatpush1.bf16.msra.mxu1 %v4493_v54 }
 0x13f   :  { %2265 = vmatprep.subr.bf16.mxu0 %v4495_v55  ;;  %2306 = vmatprep.subr.bf16.mxu1 %v4498_v56 }
 0x142   :  { %2266 = vmatpush1.bf16.msra.mxu0 %v4502_v62  ;;  %2307 = vmatpush1.bf16.msra.mxu1 %v4506_v63 }
 0x143   :  { %2267 = vmatprep.subr.bf16.mxu0 %v4508_v1  ;;  %2308 = vmatprep.subr.bf16.mxu1 %v4511_v2 }
 0x146   :  { %2268 = vmatpush1.bf16.msra.mxu0 %v4516_v13  ;;  %2309 = vmatpush1.bf16.msra.mxu1 %v4520_v14 }
 0x147   :  { %2335 = vmatprep.subr.bf16.mxu0 %v4522_v16  ;;  %2376 = vmatprep.subr.bf16.mxu1 %v4525_v17 }
 0x149   :  { %v5283_v8 = vpop.f32.mrf.mxu0  ;;  %2286 = vmatmul.mubr.bf16.vlgmr.msra.gmra.mxu0 %v4486_v52  ;;  %v5286_v39 = vpop.f32.mrf.mxu1  ;;  %2327 = vmatmul.mubr.bf16.vlgmr.msra.gmra.mxu1 %v4486_v52 }
 0x14a   :  { %6745 = vst [vmem:[#allocation232_spill] sm:$0xff] %v5283_v8  ;;  %6746 = vst [vmem:[#allocation233_spill] sm:$0xff] %v5286_v39  ;;  %2336 = vmatpush1.bf16.msra.mxu0 %v4532_v31  ;;  %2377 = vmatpush1.bf16.msra.mxu1 %v4536_v32  ;;  %v6755_v32 = vld [vmem:[#allocation24_spill] sm:$0xff] }
 0x14b   :  { %v5291_v12 = vpop.f32.mrf.mxu0  ;;  %2337 = vmatprep.subr.bf16.mxu0 %v4538_v33  ;;  %v5294_v40 = vpop.f32.mrf.mxu1  ;;  %2378 = vmatprep.subr.bf16.mxu1 %v4541_v34  ;;  %v6751_v33 = vld [vmem:[#allocation20_spill] sm:$0xff]  ;;  %v6753_v34 = vld [vmem:[#allocation22_spill] sm:$0xff] }
 0x14c   :  { %6747 = vst [vmem:[#allocation234_spill] sm:$0xff] %v5291_v12  ;;  %6748 = vst [vmem:[#allocation235_spill] sm:$0xff] %v5294_v40  ;;  %2367 = vmatprep.mubr.bf16.mxu0 %v6564_v60  ;;  %2408 = vmatprep.mubr.bf16.mxu1 %v6564_v60  ;;  %v6752_v40 = vld [vmem:[#allocation21_spill] sm:$0xff] }
 0x14d   :  { %v1799_v8 = vpop.f32.mrf.mxu0  ;;  %v1840_v39 = vpop.f32.mrf.mxu1 }
 0x14e   :  { %2338 = vmatpush1.bf16.msra.mxu0 %v4546_v44  ;;  %2379 = vmatpush1.bf16.msra.mxu1 %v4550_v48  ;;  %v6754_v8 = vld [vmem:[#allocation23_spill] sm:$0xff]  ;;  %v6756_v39 = vld [vmem:[#allocation25_spill] sm:$0xff]  ;;  %v6757_v44 = vld [vmem:[#allocation26_spill] sm:$0xff] }
 0x14f   :  { %v1800_v0 = vpop.f32.mrf.mxu0  ;;  %2339 = vmatprep.subr.bf16.mxu0 %v6749_v23  ;;  %v1841_v12 = vpop.f32.mrf.mxu1  ;;  %2380 = vmatprep.subr.bf16.mxu1 %v6750_v5  ;;  %v6759_v23 = vld [vmem:[#allocation28_spill] sm:$0xff]  ;;  %v6761_v5 = vld [vmem:[#allocation30_spill] sm:$0xff] }
 0x150   :  { %v6758_v0 = vld [vmem:[#allocation27_spill] sm:$0xff]  ;;  %v6760_v12 = vld [vmem:[#allocation29_spill] sm:$0xff]  ;;  %v6791_v48 = vld [vmem:[#allocation56_spill] sm:$0xff] }
 0x152   :  { %2340 = vmatpush1.bf16.msra.mxu0 %v6751_v33  ;;  %2381 = vmatpush1.bf16.msra.mxu1 %v6752_v40  ;;  %v6762_v33 = vld [vmem:[#allocation31_spill] sm:$0xff]  ;;  %v6763_v40 = vld [vmem:[#allocation32_spill] sm:$0xff] }
 0x153   :  { %2341 = vmatprep.subr.bf16.mxu0 %v6753_v34  ;;  %2382 = vmatprep.subr.bf16.mxu1 %v6754_v8  ;;  %v6764_v34 = vld [vmem:[#allocation33_spill] sm:$0xff]  ;;  %v6765_v8 = vld [vmem:[#allocation34_spill] sm:$0xff] }
 0x156   :  { %2342 = vmatpush1.bf16.msra.mxu0 %v6755_v32  ;;  %2383 = vmatpush1.bf16.msra.mxu1 %v6756_v39  ;;  %v6766_v32 = vld [vmem:[#allocation35_spill] sm:$0xff]  ;;  %v6767_v39 = vld [vmem:[#allocation36_spill] sm:$0xff] }
 0x157   :  { %2343 = vmatprep.subr.bf16.mxu0 %v6757_v44  ;;  %2384 = vmatprep.subr.bf16.mxu1 %v6758_v0  ;;  %v6768_v44 = vld [vmem:[#allocation37_spill] sm:$0xff]  ;;  %v6769_v0 = vld [vmem:[#allocation38_spill] sm:$0xff] }
 0x15a   :  { %2344 = vmatpush1.bf16.msra.mxu0 %v6759_v23  ;;  %2385 = vmatpush1.bf16.msra.mxu1 %v6760_v12  ;;  %v6770_v23 = vld [vmem:[#allocation39_spill] sm:$0xff]  ;;  %v6771_v12 = vld [vmem:[#allocation40_spill] sm:$0xff] }
 0x15b   :  { %2345 = vmatprep.subr.bf16.mxu0 %v6761_v5  ;;  %2386 = vmatprep.subr.bf16.mxu1 %v6762_v33  ;;  %v6772_v5 = vld [vmem:[#allocation41_spill] sm:$0xff]  ;;  %v6773_v33 = vld [vmem:[#allocation42_spill] sm:$0xff] }
 0x15e   :  { %2346 = vmatpush1.bf16.msra.mxu0 %v6763_v40  ;;  %2387 = vmatpush1.bf16.msra.mxu1 %v6764_v34  ;;  %v6774_v40 = vld [vmem:[#allocation43_spill] sm:$0xff] }
 0x15f   :  { %2347 = vmatprep.subr.bf16.mxu0 %v6765_v8  ;;  %2388 = vmatprep.subr.bf16.mxu1 %v6766_v32  ;;  %v6786_v8 = vld [vmem:[#allocation51_spill] sm:$0xff] }
 0x162   :  { %2348 = vmatpush1.bf16.msra.mxu0 %v6767_v39  ;;  %2389 = vmatpush1.bf16.msra.mxu1 %v6768_v44  ;;  %v6777_v44 = vld [vmem:[#allocation44_spill] sm:$0xff]  ;;  %v6784_v39 = vld [vmem:[#allocation49_spill] sm:$0xff] }
 0x163   :  { %2349 = vmatprep.subr.bf16.mxu0 %v6769_v0  ;;  %2390 = vmatprep.subr.bf16.mxu1 %v6770_v23  ;;  %v6778_v0 = vld [vmem:[#allocation45_spill] sm:$0xff] }
 0x166   :  { %2350 = vmatpush1.bf16.msra.mxu0 %v6771_v12  ;;  %2391 = vmatpush1.bf16.msra.mxu1 %v6772_v5  ;;  %v6780_v12 = vld [vmem:[#allocation46_spill] sm:$0xff] }
 0x167   :  { %2417 = vmatprep.subr.bf16.mxu0 %v6773_v33  ;;  %2458 = vmatprep.subr.bf16.mxu1 %v6774_v40  ;;  %v6782_v33 = vld [vmem:[#allocation47_spill] sm:$0xff]  ;;  %v6783_v40 = vld [vmem:[#allocation48_spill] sm:$0xff] }
 0x169   :  { %v5327_v34 = vpop.f32.mrf.mxu0  ;;  %2368 = vmatmul.mubr.bf16.vlgmr.msra.gmra.mxu0 %v4486_v52  ;;  %v5330_v32 = vpop.f32.mrf.mxu1  ;;  %2409 = vmatmul.mubr.bf16.vlgmr.msra.gmra.mxu1 %v4486_v52 }
 0x16a   :  { %6775 = vst [vmem:[#allocation236_spill] sm:$0xff] %v5327_v34  ;;  %6776 = vst [vmem:[#allocation237_spill] sm:$0xff] %v5330_v32  ;;  %2418 = vmatpush1.bf16.msra.mxu0 %v6777_v44  ;;  %2459 = vmatpush1.bf16.msra.mxu1 %v6778_v0  ;;  %v6785_v0 = vld [vmem:[#allocation50_spill] sm:$0xff] }
 0x16b   :  { %v5335_v23 = vpop.f32.mrf.mxu0  ;;  %2419 = vmatprep.subr.bf16.mxu0 %v6780_v12  ;;  %v5338_v5 = vpop.f32.mrf.mxu1  ;;  %2460 = vmatprep.subr.bf16.mxu1 %v6782_v33  ;;  %v6787_v12 = vld [vmem:[#allocation52_spill] sm:$0xff]  ;;  %v6789_v33 = vld [vmem:[#allocation54_spill] sm:$0xff] }
 0x16c   :  { %6779 = vst [vmem:[#allocation238_spill] sm:$0xff] %v5335_v23  ;;  %6781 = vst [vmem:[#allocation239_spill] sm:$0xff] %v5338_v5  ;;  %2449 = vmatprep.mubr.bf16.mxu0 %v6564_v60  ;;  %2490 = vmatprep.mubr.bf16.mxu1 %v6564_v60  ;;  %v6788_v5 = vld [vmem:[#allocation53_spill] sm:$0xff] }
 0x16d   :  { %v1881_v34 = vpop.f32.mrf.mxu0  ;;  %v1922_v32 = vpop.f32.mrf.mxu1 }
 0x16e   :  { %2420 = vmatpush1.bf16.msra.mxu0 %v6783_v40  ;;  %2461 = vmatpush1.bf16.msra.mxu1 %v6784_v39  ;;  %v6790_v34 = vld [vmem:[#allocation55_spill] sm:$0xff]  ;;  %v6792_v32 = vld [vmem:[#allocation57_spill] sm:$0xff]  ;;  %v6793_v40 = vld [vmem:[#allocation58_spill] sm:$0xff] }
 0x16f   :  { %v1882_v44 = vpop.f32.mrf.mxu0  ;;  %2421 = vmatprep.subr.bf16.mxu0 %v6785_v0  ;;  %v1923_v23 = vpop.f32.mrf.mxu1  ;;  %2462 = vmatprep.subr.bf16.mxu1 %v6786_v8  ;;  %v6795_v0 = vld [vmem:[#allocation60_spill] sm:$0xff]  ;;  %v6797_v8 = vld [vmem:[#allocation62_spill] sm:$0xff] }
 0x170   :  { %v6794_v44 = vld [vmem:[#allocation59_spill] sm:$0xff]  ;;  %v6796_v23 = vld [vmem:[#allocation61_spill] sm:$0xff]  ;;  %v6827_v39 = vld [vmem:[#allocation88_spill] sm:$0xff] }
 0x172   :  { %2422 = vmatpush1.bf16.msra.mxu0 %v6787_v12  ;;  %2463 = vmatpush1.bf16.msra.mxu1 %v6788_v5  ;;  %v6798_v12 = vld [vmem:[#allocation63_spill] sm:$0xff]  ;;  %v6799_v5 = vld [vmem:[#allocation64_spill] sm:$0xff] }
 0x173   :  { %2423 = vmatprep.subr.bf16.mxu0 %v6789_v33  ;;  %2464 = vmatprep.subr.bf16.mxu1 %v6790_v34  ;;  %v6800_v33 = vld [vmem:[#allocation65_spill] sm:$0xff]  ;;  %v6801_v34 = vld [vmem:[#allocation66_spill] sm:$0xff] }
 0x176   :  { %2424 = vmatpush1.bf16.msra.mxu0 %v6791_v48  ;;  %2465 = vmatpush1.bf16.msra.mxu1 %v6792_v32  ;;  %v6802_v48 = vld [vmem:[#allocation67_spill] sm:$0xff]  ;;  %v6803_v32 = vld [vmem:[#allocation68_spill] sm:$0xff] }
 0x177   :  { %2425 = vmatprep.subr.bf16.mxu0 %v6793_v40  ;;  %2466 = vmatprep.subr.bf16.mxu1 %v6794_v44  ;;  %v6804_v40 = vld [vmem:[#allocation69_spill] sm:$0xff]  ;;  %v6805_v44 = vld [vmem:[#allocation70_spill] sm:$0xff] }
 0x17a   :  { %2426 = vmatpush1.bf16.msra.mxu0 %v6795_v0  ;;  %2467 = vmatpush1.bf16.msra.mxu1 %v6796_v23  ;;  %v6806_v0 = vld [vmem:[#allocation71_spill] sm:$0xff]  ;;  %v6807_v23 = vld [vmem:[#allocation72_spill] sm:$0xff] }
 0x17b   :  { %2427 = vmatprep.subr.bf16.mxu0 %v6797_v8  ;;  %2468 = vmatprep.subr.bf16.mxu1 %v6798_v12  ;;  %v6808_v8 = vld [vmem:[#allocation73_spill] sm:$0xff]  ;;  %v6809_v12 = vld [vmem:[#allocation74_spill] sm:$0xff] }
 0x17e   :  { %2428 = vmatpush1.bf16.msra.mxu0 %v6799_v5  ;;  %2469 = vmatpush1.bf16.msra.mxu1 %v6800_v33  ;;  %v6810_v5 = vld [vmem:[#allocation75_spill] sm:$0xff] }
 0x17f   :  { %2429 = vmatprep.subr.bf16.mxu0 %v6801_v34  ;;  %2470 = vmatprep.subr.bf16.mxu1 %v6802_v48  ;;  %v6822_v34 = vld [vmem:[#allocation83_spill] sm:$0xff] }
 0x182   :  { %2430 = vmatpush1.bf16.msra.mxu0 %v6803_v32  ;;  %2471 = vmatpush1.bf16.msra.mxu1 %v6804_v40  ;;  %v6813_v40 = vld [vmem:[#allocation76_spill] sm:$0xff]  ;;  %v6820_v32 = vld [vmem:[#allocation81_spill] sm:$0xff] }
 0x183   :  { %2431 = vmatprep.subr.bf16.mxu0 %v6805_v44  ;;  %2472 = vmatprep.subr.bf16.mxu1 %v6806_v0  ;;  %v6814_v44 = vld [vmem:[#allocation77_spill] sm:$0xff] }
 0x186   :  { %2432 = vmatpush1.bf16.msra.mxu0 %v6807_v23  ;;  %2473 = vmatpush1.bf16.msra.mxu1 %v6808_v8  ;;  %v6816_v23 = vld [vmem:[#allocation78_spill] sm:$0xff] }
 0x187   :  { %2499 = vmatprep.subr.bf16.mxu0 %v6809_v12  ;;  %2540 = vmatprep.subr.bf16.mxu1 %v6810_v5  ;;  %v6818_v12 = vld [vmem:[#allocation79_spill] sm:$0xff]  ;;  %v6819_v5 = vld [vmem:[#allocation80_spill] sm:$0xff] }
 0x189   :  { %v5371_v33 = vpop.f32.mrf.mxu0  ;;  %2450 = vmatmul.mubr.bf16.vlgmr.msra.gmra.mxu0 %v4486_v52  ;;  %v5374_v48 = vpop.f32.mrf.mxu1  ;;  %2491 = vmatmul.mubr.bf16.vlgmr.msra.gmra.mxu1 %v4486_v52 }
 0x18a   :  { %6811 = vst [vmem:[#allocation240_spill] sm:$0xff] %v5371_v33  ;;  %6812 = vst [vmem:[#allocation241_spill] sm:$0xff] %v5374_v48  ;;  %2500 = vmatpush1.bf16.msra.mxu0 %v6813_v40  ;;  %2541 = vmatpush1.bf16.msra.mxu1 %v6814_v44  ;;  %v6821_v44 = vld [vmem:[#allocation82_spill] sm:$0xff] }
 0x18b   :  { %v5379_v0 = vpop.f32.mrf.mxu0  ;;  %2501 = vmatprep.subr.bf16.mxu0 %v6816_v23  ;;  %v5382_v8 = vpop.f32.mrf.mxu1  ;;  %2542 = vmatprep.subr.bf16.mxu1 %v6818_v12  ;;  %v6823_v23 = vld [vmem:[#allocation84_spill] sm:$0xff]  ;;  %v6825_v12 = vld [vmem:[#allocation86_spill] sm:$0xff] }
 0x18c   :  { %6815 = vst [vmem:[#allocation242_spill] sm:$0xff] %v5379_v0  ;;  %6817 = vst [vmem:[#allocation243_spill] sm:$0xff] %v5382_v8  ;;  %2531 = vmatprep.mubr.bf16.mxu0 %v6564_v60  ;;  %2572 = vmatprep.mubr.bf16.mxu1 %v6564_v60  ;;  %v6824_v8 = vld [vmem:[#allocation85_spill] sm:$0xff] }
 0x18d   :  { %v1963_v33 = vpop.f32.mrf.mxu0  ;;  %v2004_v48 = vpop.f32.mrf.mxu1 }
 0x18e   :  { %2502 = vmatpush1.bf16.msra.mxu0 %v6819_v5  ;;  %2543 = vmatpush1.bf16.msra.mxu1 %v6820_v32  ;;  %v6826_v33 = vld [vmem:[#allocation87_spill] sm:$0xff]  ;;  %v6828_v48 = vld [vmem:[#allocation89_spill] sm:$0xff]  ;;  %v6829_v5 = vld [vmem:[#allocation90_spill] sm:$0xff] }
 0x18f   :  { %v1964_v40 = vpop.f32.mrf.mxu0  ;;  %2503 = vmatprep.subr.bf16.mxu0 %v6821_v44  ;;  %v2005_v0 = vpop.f32.mrf.mxu1  ;;  %2544 = vmatprep.subr.bf16.mxu1 %v6822_v34  ;;  %v6831_v44 = vld [vmem:[#allocation92_spill] sm:$0xff]  ;;  %v6833_v34 = vld [vmem:[#allocation94_spill] sm:$0xff] }
 0x190   :  { %v6830_v40 = vld [vmem:[#allocation91_spill] sm:$0xff]  ;;  %v6832_v0 = vld [vmem:[#allocation93_spill] sm:$0xff]  ;;  %v6863_v32 = vld [vmem:[#allocation120_spill] sm:$0xff] }
 0x192   :  { %2504 = vmatpush1.bf16.msra.mxu0 %v6823_v23  ;;  %2545 = vmatpush1.bf16.msra.mxu1 %v6824_v8  ;;  %v6834_v23 = vld [vmem:[#allocation95_spill] sm:$0xff]  ;;  %v6835_v8 = vld [vmem:[#allocation96_spill] sm:$0xff] }
 0x193   :  { %2505 = vmatprep.subr.bf16.mxu0 %v6825_v12  ;;  %2546 = vmatprep.subr.bf16.mxu1 %v6826_v33  ;;  %v6836_v12 = vld [vmem:[#allocation97_spill] sm:$0xff]  ;;  %v6837_v33 = vld [vmem:[#allocation98_spill] sm:$0xff] }
 0x196   :  { %2506 = vmatpush1.bf16.msra.mxu0 %v6827_v39  ;;  %2547 = vmatpush1.bf16.msra.mxu1 %v6828_v48  ;;  %v6838_v39 = vld [vmem:[#allocation99_spill] sm:$0xff]  ;;  %v6839_v48 = vld [vmem:[#allocation100_spill] sm:$0xff] }
 0x197   :  { %2507 = vmatprep.subr.bf16.mxu0 %v6829_v5  ;;  %2548 = vmatprep.subr.bf16.mxu1 %v6830_v40  ;;  %v6840_v5 = vld [vmem:[#allocation101_spill] sm:$0xff]  ;;  %v6841_v40 = vld [vmem:[#allocation102_spill] sm:$0xff] }
 0x19a   :  { %2508 = vmatpush1.bf16.msra.mxu0 %v6831_v44  ;;  %2549 = vmatpush1.bf16.msra.mxu1 %v6832_v0  ;;  %v6842_v44 = vld [vmem:[#allocation103_spill] sm:$0xff]  ;;  %v6843_v0 = vld [vmem:[#allocation104_spill] sm:$0xff] }
 0x19b   :  { %2509 = vmatprep.subr.bf16.mxu0 %v6833_v34  ;;  %2550 = vmatprep.subr.bf16.mxu1 %v6834_v23  ;;  %v6844_v34 = vld [vmem:[#allocation105_spill] sm:$0xff]  ;;  %v6845_v23 = vld [vmem:[#allocation106_spill] sm:$0xff] }
 0x19e   :  { %2510 = vmatpush1.bf16.msra.mxu0 %v6835_v8  ;;  %2551 = vmatpush1.bf16.msra.mxu1 %v6836_v12  ;;  %v6846_v8 = vld [vmem:[#allocation107_spill] sm:$0xff] }
 0x19f   :  { %2511 = vmatprep.subr.bf16.mxu0 %v6837_v33  ;;  %2552 = vmatprep.subr.bf16.mxu1 %v6838_v39  ;;  %v6858_v33 = vld [vmem:[#allocation115_spill] sm:$0xff] }
 0x1a2   :  { %2512 = vmatpush1.bf16.msra.mxu0 %v6839_v48  ;;  %2553 = vmatpush1.bf16.msra.mxu1 %v6840_v5  ;;  %v6849_v5 = vld [vmem:[#allocation108_spill] sm:$0xff]  ;;  %v6856_v48 = vld [vmem:[#allocation113_spill] sm:$0xff] }
 0x1a3   :  { %2513 = vmatprep.subr.bf16.mxu0 %v6841_v40  ;;  %2554 = vmatprep.subr.bf16.mxu1 %v6842_v44  ;;  %v6850_v40 = vld [vmem:[#allocation109_spill] sm:$0xff] }
 0x1a6   :  { %2514 = vmatpush1.bf16.msra.mxu0 %v6843_v0  ;;  %2555 = vmatpush1.bf16.msra.mxu1 %v6844_v34  ;;  %v6852_v0 = vld [vmem:[#allocation110_spill] sm:$0xff] }
 0x1a7   :  { %2581 = vmatprep.subr.bf16.mxu0 %v6845_v23  ;;  %2622 = vmatprep.subr.bf16.mxu1 %v6846_v8  ;;  %v6854_v23 = vld [vmem:[#allocation111_spill] sm:$0xff]  ;;  %v6855_v8 = vld [vmem:[#allocation112_spill] sm:$0xff] }
 0x1a9   :  { %v5415_v12 = vpop.f32.mrf.mxu0  ;;  %2532 = vmatmul.mubr.bf16.vlgmr.msra.gmra.mxu0 %v4486_v52  ;;  %v5418_v39 = vpop.f32.mrf.mxu1  ;;  %2573 = vmatmul.mubr.bf16.vlgmr.msra.gmra.mxu1 %v4486_v52 }
 0x1aa   :  { %6847 = vst [vmem:[#allocation244_spill] sm:$0xff] %v5415_v12  ;;  %6848 = vst [vmem:[#allocation245_spill] sm:$0xff] %v5418_v39  ;;  %2582 = vmatpush1.bf16.msra.mxu0 %v6849_v5  ;;  %2623 = vmatpush1.bf16.msra.mxu1 %v6850_v40  ;;  %v6857_v40 = vld [vmem:[#allocation114_spill] sm:$0xff] }
 0x1ab   :  { %v5423_v44 = vpop.f32.mrf.mxu0  ;;  %2583 = vmatprep.subr.bf16.mxu0 %v6852_v0  ;;  %v5426_v34 = vpop.f32.mrf.mxu1  ;;  %2624 = vmatprep.subr.bf16.mxu1 %v6854_v23  ;;  %v6859_v0 = vld [vmem:[#allocation116_spill] sm:$0xff]  ;;  %v6861_v23 = vld [vmem:[#allocation118_spill] sm:$0xff] }
 0x1ac   :  { %6851 = vst [vmem:[#allocation246_spill] sm:$0xff] %v5423_v44  ;;  %6853 = vst [vmem:[#allocation247_spill] sm:$0xff] %v5426_v34  ;;  %2613 = vmatprep.mubr.bf16.mxu0 %v6564_v60  ;;  %2654 = vmatprep.mubr.bf16.mxu1 %v6564_v60  ;;  %v6860_v34 = vld [vmem:[#allocation117_spill] sm:$0xff] }
 0x1ad   :  { %v2045_v12 = vpop.f32.mrf.mxu0  ;;  %v2086_v39 = vpop.f32.mrf.mxu1 }
 0x1ae   :  { %2584 = vmatpush1.bf16.msra.mxu0 %v6855_v8  ;;  %2625 = vmatpush1.bf16.msra.mxu1 %v6856_v48  ;;  %v6862_v12 = vld [vmem:[#allocation119_spill] sm:$0xff]  ;;  %v6864_v39 = vld [vmem:[#allocation121_spill] sm:$0xff]  ;;  %v6865_v8 = vld [vmem:[#allocation122_spill] sm:$0xff] }
 0x1af   :  { %v2046_v5 = vpop.f32.mrf.mxu0  ;;  %2585 = vmatprep.subr.bf16.mxu0 %v6857_v40  ;;  %v2087_v44 = vpop.f32.mrf.mxu1  ;;  %2626 = vmatprep.subr.bf16.mxu1 %v6858_v33  ;;  %v6867_v40 = vld [vmem:[#allocation124_spill] sm:$0xff]  ;;  %v6869_v33 = vld [vmem:[#allocation126_spill] sm:$0xff] }
 0x1b0   :  { %v6866_v5 = vld [vmem:[#allocation123_spill] sm:$0xff]  ;;  %v6868_v44 = vld [vmem:[#allocation125_spill] sm:$0xff]  ;;  %v6899_v48 = vld [vmem:[#allocation152_spill] sm:$0xff] }
 0x1b2   :  { %2586 = vmatpush1.bf16.msra.mxu0 %v6859_v0  ;;  %2627 = vmatpush1.bf16.msra.mxu1 %v6860_v34  ;;  %v6870_v0 = vld [vmem:[#allocation127_spill] sm:$0xff]  ;;  %v6871_v34 = vld [vmem:[#allocation128_spill] sm:$0xff] }
 0x1b3   :  { %2587 = vmatprep.subr.bf16.mxu0 %v6861_v23  ;;  %2628 = vmatprep.subr.bf16.mxu1 %v6862_v12  ;;  %v6872_v23 = vld [vmem:[#allocation129_spill] sm:$0xff]  ;;  %v6873_v12 = vld [vmem:[#allocation130_spill] sm:$0xff] }
 0x1b6   :  { %2588 = vmatpush1.bf16.msra.mxu0 %v6863_v32  ;;  %2629 = vmatpush1.bf16.msra.mxu1 %v6864_v39  ;;  %v6874_v32 = vld [vmem:[#allocation131_spill] sm:$0xff]  ;;  %v6875_v39 = vld [vmem:[#allocation132_spill] sm:$0xff] }
 0x1b7   :  { %2589 = vmatprep.subr.bf16.mxu0 %v6865_v8  ;;  %2630 = vmatprep.subr.bf16.mxu1 %v6866_v5  ;;  %v6876_v8 = vld [vmem:[#allocation133_spill] sm:$0xff]  ;;  %v6877_v5 = vld [vmem:[#allocation134_spill] sm:$0xff] }
 0x1ba   :  { %2590 = vmatpush1.bf16.msra.mxu0 %v6867_v40  ;;  %2631 = vmatpush1.bf16.msra.mxu1 %v6868_v44  ;;  %v6878_v40 = vld [vmem:[#allocation135_spill] sm:$0xff]  ;;  %v6879_v44 = vld [vmem:[#allocation136_spill] sm:$0xff] }
 0x1bb   :  { %2591 = vmatprep.subr.bf16.mxu0 %v6869_v33  ;;  %2632 = vmatprep.subr.bf16.mxu1 %v6870_v0  ;;  %v6880_v33 = vld [vmem:[#allocation137_spill] sm:$0xff]  ;;  %v6881_v0 = vld [vmem:[#allocation138_spill] sm:$0xff] }
 0x1be   :  { %2592 = vmatpush1.bf16.msra.mxu0 %v6871_v34  ;;  %2633 = vmatpush1.bf16.msra.mxu1 %v6872_v23  ;;  %v6882_v34 = vld [vmem:[#allocation139_spill] sm:$0xff] }
 0x1bf   :  { %2593 = vmatprep.subr.bf16.mxu0 %v6873_v12  ;;  %2634 = vmatprep.subr.bf16.mxu1 %v6874_v32  ;;  %v6894_v12 = vld [vmem:[#allocation147_spill] sm:$0xff] }
 0x1c2   :  { %2594 = vmatpush1.bf16.msra.mxu0 %v6875_v39  ;;  %2635 = vmatpush1.bf16.msra.mxu1 %v6876_v8  ;;  %v6885_v8 = vld [vmem:[#allocation140_spill] sm:$0xff]  ;;  %v6892_v39 = vld [vmem:[#allocation145_spill] sm:$0xff] }
 0x1c3   :  { %2595 = vmatprep.subr.bf16.mxu0 %v6877_v5  ;;  %2636 = vmatprep.subr.bf16.mxu1 %v6878_v40  ;;  %v6886_v5 = vld [vmem:[#allocation141_spill] sm:$0xff] }
 0x1c6   :  { %2596 = vmatpush1.bf16.msra.mxu0 %v6879_v44  ;;  %2637 = vmatpush1.bf16.msra.mxu1 %v6880_v33  ;;  %v6888_v44 = vld [vmem:[#allocation142_spill] sm:$0xff] }
 0x1c7   :  { %2663 = vmatprep.subr.bf16.mxu0 %v6881_v0  ;;  %2704 = vmatprep.subr.bf16.mxu1 %v6882_v34  ;;  %v6890_v0 = vld [vmem:[#allocation143_spill] sm:$0xff]  ;;  %v6891_v34 = vld [vmem:[#allocation144_spill] sm:$0xff] }
 0x1c9   :  { %v5459_v23 = vpop.f32.mrf.mxu0  ;;  %2614 = vmatmul.mubr.bf16.vlgmr.msra.gmra.mxu0 %v4486_v52  ;;  %v5462_v32 = vpop.f32.mrf.mxu1  ;;  %2655 = vmatmul.mubr.bf16.vlgmr.msra.gmra.mxu1 %v4486_v52 }
 0x1ca   :  { %6883 = vst [vmem:[#allocation248_spill] sm:$0xff] %v5459_v23  ;;  %6884 = vst [vmem:[#allocation249_spill] sm:$0xff] %v5462_v32  ;;  %2664 = vmatpush1.bf16.msra.mxu0 %v6885_v8  ;;  %2705 = vmatpush1.bf16.msra.mxu1 %v6886_v5  ;;  %v6893_v5 = vld [vmem:[#allocation146_spill] sm:$0xff] }
 0x1cb   :  { %v5467_v40 = vpop.f32.mrf.mxu0  ;;  %2665 = vmatprep.subr.bf16.mxu0 %v6888_v44  ;;  %v5470_v33 = vpop.f32.mrf.mxu1  ;;  %2706 = vmatprep.subr.bf16.mxu1 %v6890_v0  ;;  %v6895_v44 = vld [vmem:[#allocation148_spill] sm:$0xff]  ;;  %v6897_v0 = vld [vmem:[#allocation150_spill] sm:$0xff] }
 0x1cc   :  { %6887 = vst [vmem:[#allocation250_spill] sm:$0xff] %v5467_v40  ;;  %6889 = vst [vmem:[#allocation251_spill] sm:$0xff] %v5470_v33  ;;  %2695 = vmatprep.mubr.bf16.mxu0 %v6564_v60  ;;  %2736 = vmatprep.mubr.bf16.mxu1 %v6564_v60  ;;  %v6896_v33 = vld [vmem:[#allocation149_spill] sm:$0xff] }
 0x1cd   :  { %v2127_v23 = vpop.f32.mrf.mxu0  ;;  %v2168_v32 = vpop.f32.mrf.mxu1 }
 0x1ce   :  { %2666 = vmatpush1.bf16.msra.mxu0 %v6891_v34  ;;  %2707 = vmatpush1.bf16.msra.mxu1 %v6892_v39  ;;  %v6898_v23 = vld [vmem:[#allocation151_spill] sm:$0xff]  ;;  %v6900_v32 = vld [vmem:[#allocation153_spill] sm:$0xff]  ;;  %v6901_v34 = vld [vmem:[#allocation154_spill] sm:$0xff] }
 0x1cf   :  { %v2128_v8 = vpop.f32.mrf.mxu0  ;;  %2667 = vmatprep.subr.bf16.mxu0 %v6893_v5  ;;  %v2169_v40 = vpop.f32.mrf.mxu1  ;;  %2708 = vmatprep.subr.bf16.mxu1 %v6894_v12  ;;  %v6903_v5 = vld [vmem:[#allocation156_spill] sm:$0xff]  ;;  %v6905_v12 = vld [vmem:[#allocation158_spill] sm:$0xff] }
 0x1d0   :  { %v6902_v8 = vld [vmem:[#allocation155_spill] sm:$0xff]  ;;  %v6904_v40 = vld [vmem:[#allocation157_spill] sm:$0xff]  ;;  %v6935_v39 = vld [vmem:[#allocation184_spill] sm:$0xff] }
 0x1d2   :  { %2668 = vmatpush1.bf16.msra.mxu0 %v6895_v44  ;;  %2709 = vmatpush1.bf16.msra.mxu1 %v6896_v33  ;;  %v6906_v44 = vld [vmem:[#allocation159_spill] sm:$0xff]  ;;  %v6907_v33 = vld [vmem:[#allocation160_spill] sm:$0xff] }
 0x1d3   :  { %2669 = vmatprep.subr.bf16.mxu0 %v6897_v0  ;;  %2710 = vmatprep.subr.bf16.mxu1 %v6898_v23  ;;  %v6908_v0 = vld [vmem:[#allocation161_spill] sm:$0xff]  ;;  %v6909_v23 = vld [vmem:[#allocation162_spill] sm:$0xff] }
 0x1d6   :  { %2670 = vmatpush1.bf16.msra.mxu0 %v6899_v48  ;;  %2711 = vmatpush1.bf16.msra.mxu1 %v6900_v32  ;;  %v6910_v48 = vld [vmem:[#allocation163_spill] sm:$0xff]  ;;  %v6911_v32 = vld [vmem:[#allocation164_spill] sm:$0xff] }
 0x1d7   :  { %2671 = vmatprep.subr.bf16.mxu0 %v6901_v34  ;;  %2712 = vmatprep.subr.bf16.mxu1 %v6902_v8  ;;  %v6912_v34 = vld [vmem:[#allocation165_spill] sm:$0xff]  ;;  %v6913_v8 = vld [vmem:[#allocation166_spill] sm:$0xff] }
 0x1da   :  { %2672 = vmatpush1.bf16.msra.mxu0 %v6903_v5  ;;  %2713 = vmatpush1.bf16.msra.mxu1 %v6904_v40  ;;  %v6914_v5 = vld [vmem:[#allocation167_spill] sm:$0xff]  ;;  %v6915_v40 = vld [vmem:[#allocation168_spill] sm:$0xff] }
 0x1db   :  { %2673 = vmatprep.subr.bf16.mxu0 %v6905_v12  ;;  %2714 = vmatprep.subr.bf16.mxu1 %v6906_v44  ;;  %v6916_v12 = vld [vmem:[#allocation169_spill] sm:$0xff]  ;;  %v6917_v44 = vld [vmem:[#allocation170_spill] sm:$0xff] }
 0x1de   :  { %2674 = vmatpush1.bf16.msra.mxu0 %v6907_v33  ;;  %2715 = vmatpush1.bf16.msra.mxu1 %v6908_v0  ;;  %v6918_v33 = vld [vmem:[#allocation171_spill] sm:$0xff] }
 0x1df   :  { %2675 = vmatprep.subr.bf16.mxu0 %v6909_v23  ;;  %2716 = vmatprep.subr.bf16.mxu1 %v6910_v48  ;;  %v6930_v23 = vld [vmem:[#allocation179_spill] sm:$0xff] }
 0x1e2   :  { %2676 = vmatpush1.bf16.msra.mxu0 %v6911_v32  ;;  %2717 = vmatpush1.bf16.msra.mxu1 %v6912_v34  ;;  %v6921_v34 = vld [vmem:[#allocation172_spill] sm:$0xff]  ;;  %v6928_v32 = vld [vmem:[#allocation177_spill] sm:$0xff] }
 0x1e3   :  { %2677 = vmatprep.subr.bf16.mxu0 %v6913_v8  ;;  %2718 = vmatprep.subr.bf16.mxu1 %v6914_v5  ;;  %v6922_v8 = vld [vmem:[#allocation173_spill] sm:$0xff] }
 0x1e6   :  { %2678 = vmatpush1.bf16.msra.mxu0 %v6915_v40  ;;  %2719 = vmatpush1.bf16.msra.mxu1 %v6916_v12  ;;  %v6924_v40 = vld [vmem:[#allocation174_spill] sm:$0xff] }
 0x1e7   :  { %2745 = vmatprep.subr.bf16.mxu0 %v6917_v44  ;;  %2786 = vmatprep.subr.bf16.mxu1 %v6918_v33  ;;  %v6926_v44 = vld [vmem:[#allocation175_spill] sm:$0xff]  ;;  %v6927_v33 = vld [vmem:[#allocation176_spill] sm:$0xff] }
 0x1e9   :  { %v5503_v0 = vpop.f32.mrf.mxu0  ;;  %2696 = vmatmul.mubr.bf16.vlgmr.msra.gmra.mxu0 %v4486_v52  ;;  %v5506_v48 = vpop.f32.mrf.mxu1  ;;  %2737 = vmatmul.mubr.bf16.vlgmr.msra.gmra.mxu1 %v4486_v52 }
 0x1ea   :  { %6919 = vst [vmem:[#allocation252_spill] sm:$0xff] %v5503_v0  ;;  %6920 = vst [vmem:[#allocation253_spill] sm:$0xff] %v5506_v48  ;;  %2746 = vmatpush1.bf16.msra.mxu0 %v6921_v34  ;;  %2787 = vmatpush1.bf16.msra.mxu1 %v6922_v8  ;;  %v6929_v8 = vld [vmem:[#allocation178_spill] sm:$0xff] }
 0x1eb   :  { %v5511_v5 = vpop.f32.mrf.mxu0  ;;  %2747 = vmatprep.subr.bf16.mxu0 %v6924_v40  ;;  %v5514_v12 = vpop.f32.mrf.mxu1  ;;  %2788 = vmatprep.subr.bf16.mxu1 %v6926_v44  ;;  %v6931_v40 = vld [vmem:[#allocation180_spill] sm:$0xff]  ;;  %v6933_v44 = vld [vmem:[#allocation182_spill] sm:$0xff] }
 0x1ec   :  { %6923 = vst [vmem:[#allocation254_spill] sm:$0xff] %v5511_v5  ;;  %6925 = vst [vmem:[#allocation255_spill] sm:$0xff] %v5514_v12  ;;  %2777 = vmatprep.mubr.bf16.mxu0 %v6564_v60  ;;  %2818 = vmatprep.mubr.bf16.mxu1 %v6564_v60  ;;  %v6932_v12 = vld [vmem:[#allocation181_spill] sm:$0xff] }
 0x1ed   :  { %v2209_v0 = vpop.f32.mrf.mxu0  ;;  %v2250_v48 = vpop.f32.mrf.mxu1 }
 0x1ee   :  { %2748 = vmatpush1.bf16.msra.mxu0 %v6927_v33  ;;  %2789 = vmatpush1.bf16.msra.mxu1 %v6928_v32  ;;  %v6934_v0 = vld [vmem:[#allocation183_spill] sm:$0xff]  ;;  %v6936_v48 = vld [vmem:[#allocation185_spill] sm:$0xff]  ;;  %v6937_v33 = vld [vmem:[#allocation186_spill] sm:$0xff] }
 0x1ef   :  { %v2210_v34 = vpop.f32.mrf.mxu0  ;;  %2749 = vmatprep.subr.bf16.mxu0 %v6929_v8  ;;  %v2251_v5 = vpop.f32.mrf.mxu1  ;;  %2790 = vmatprep.subr.bf16.mxu1 %v6930_v23  ;;  %v6939_v8 = vld [vmem:[#allocation188_spill] sm:$0xff]  ;;  %v6941_v23 = vld [vmem:[#allocation190_spill] sm:$0xff] }
 0x1f0   :  { %v6938_v34 = vld [vmem:[#allocation187_spill] sm:$0xff]  ;;  %v6940_v5 = vld [vmem:[#allocation189_spill] sm:$0xff] }
 0x1f2   :  { %2750 = vmatpush1.bf16.msra.mxu0 %v6931_v40  ;;  %2791 = vmatpush1.bf16.msra.mxu1 %v6932_v12  ;;  %v6942_v40 = vld [vmem:[#allocation191_spill] sm:$0xff]  ;;  %v6943_v12 = vld [vmem:[#allocation192_spill] sm:$0xff] }
 0x1f3   :  { %2751 = vmatprep.subr.bf16.mxu0 %v6933_v44  ;;  %2792 = vmatprep.subr.bf16.mxu1 %v6934_v0  ;;  %v6944_v44 = vld [vmem:[#allocation193_spill] sm:$0xff]  ;;  %v6945_v0 = vld [vmem:[#allocation194_spill] sm:$0xff] }
 0x1f6   :  { %2752 = vmatpush1.bf16.msra.mxu0 %v6935_v39  ;;  %2793 = vmatpush1.bf16.msra.mxu1 %v6936_v48  ;;  %v6946_v39 = vld [vmem:[#allocation195_spill] sm:$0xff]  ;;  %v6947_v48 = vld [vmem:[#allocation196_spill] sm:$0xff] }
 0x1f7   :  { %2753 = vmatprep.subr.bf16.mxu0 %v6937_v33  ;;  %2794 = vmatprep.subr.bf16.mxu1 %v6938_v34  ;;  %v6948_v33 = vld [vmem:[#allocation197_spill] sm:$0xff]  ;;  %v6949_v34 = vld [vmem:[#allocation198_spill] sm:$0xff] }
 0x1fa   :  { %2754 = vmatpush1.bf16.msra.mxu0 %v6939_v8  ;;  %2795 = vmatpush1.bf16.msra.mxu1 %v6940_v5  ;;  %v6950_v8 = vld [vmem:[#allocation199_spill] sm:$0xff]  ;;  %v6951_v5 = vld [vmem:[#allocation200_spill] sm:$0xff] }
 0x1fb   :  { %2755 = vmatprep.subr.bf16.mxu0 %v6941_v23  ;;  %2796 = vmatprep.subr.bf16.mxu1 %v6942_v40  ;;  %v6952_v23 = vld [vmem:[#allocation201_spill] sm:$0xff]  ;;  %v6953_v40 = vld [vmem:[#allocation202_spill] sm:$0xff] }
 0x1fe   :  { %2756 = vmatpush1.bf16.msra.mxu0 %v6943_v12  ;;  %2797 = vmatpush1.bf16.msra.mxu1 %v6944_v44  ;;  %v6954_v12 = vld [vmem:[#allocation203_spill] sm:$0xff] }
 0x1ff   :  { %2757 = vmatprep.subr.bf16.mxu0 %v6945_v0  ;;  %2798 = vmatprep.subr.bf16.mxu1 %v6946_v39  ;;  %v6970_v0 = vld [vmem:[#allocation219_spill] sm:$0xff] }
 0x202   :  { %2758 = vmatpush1.bf16.msra.mxu0 %v6947_v48  ;;  %2799 = vmatpush1.bf16.msra.mxu1 %v6948_v33  ;;  %v6957_v33 = vld [vmem:[#allocation204_spill] sm:$0xff]  ;;  %v6965_v48 = vld [vmem:[#allocation214_spill] sm:$0xff] }
 0x203   :  { %2759 = vmatprep.subr.bf16.mxu0 %v6949_v34  ;;  %2800 = vmatprep.subr.bf16.mxu1 %v6950_v8  ;;  %v6958_v34 = vld [vmem:[#allocation205_spill] sm:$0xff] }
 0x206   :  { %2760 = vmatpush1.bf16.msra.mxu0 %v6951_v5  ;;  %2801 = vmatpush1.bf16.msra.mxu1 %v6952_v23  ;;  %v6960_v5 = vld [vmem:[#allocation206_spill] sm:$0xff] }
 0x207   :  { %2827 = vmatprep.subr.bf16.mxu0 %v6953_v40  ;;  %2868 = vmatprep.subr.bf16.mxu1 %v6954_v12  ;;  %v6962_v40 = vld [vmem:[#allocation207_spill] sm:$0xff] }
 0x209   :  { %v5547_v44 = vpop.f32.mrf.mxu0  ;;  %2778 = vmatmul.mubr.bf16.vlgmr.msra.gmra.mxu0 %v4486_v52  ;;  %v5550_v39 = vpop.f32.mrf.mxu1  ;;  %2819 = vmatmul.mubr.bf16.vlgmr.msra.gmra.mxu1 %v4486_v52 }
 0x20a   :  { %6955 = vst [vmem:[#allocation177_spill] sm:$0xff] %v5547_v44  ;;  %6956 = vst [vmem:[#allocation256_spill] sm:$0xff] %v5550_v39  ;;  %2828 = vmatpush1.bf16.msra.mxu0 %v6957_v33  ;;  %2869 = vmatpush1.bf16.msra.mxu1 %v6958_v34  ;;  %v6963_v44 = vld [vmem:[#allocation210_spill] sm:$0xff]  ;;  %v6964_v34 = vld [vmem:[#allocation212_spill] sm:$0xff] }
 0x20b   :  { %v5555_v8 = vpop.f32.mrf.mxu0  ;;  %2829 = vmatprep.subr.bf16.mxu0 %v6960_v5  ;;  %v5558_v23 = vpop.f32.mrf.mxu1  ;;  %2870 = vmatprep.subr.bf16.mxu1 %v6962_v40  ;;  %v6966_v5 = vld [vmem:[#allocation215_spill] sm:$0xff]  ;;  %v6968_v40 = vld [vmem:[#allocation217_spill] sm:$0xff] }
 0x20c   :  { %6959 = vst [vmem:[#allocation257_spill] sm:$0xff] %v5555_v8  ;;  %6961 = vst [vmem:[#allocation258_spill] sm:$0xff] %v5558_v23  ;;  %2859 = vmatprep.mubr.bf16.mxu0 %v6564_v60  ;;  %2900 = vmatprep.mubr.bf16.mxu1 %v6564_v60  ;;  %v6967_v23 = vld [vmem:[#allocation216_spill] sm:$0xff] }
 0x20d   :  { %v2291_v12 = vpop.f32.mrf.mxu0  ;;  %v2332_v39 = vpop.f32.mrf.mxu1 }
 0x20e   :  { %2830 = vmatpush1.bf16.msra.mxu0 %v6963_v44  ;;  %2871 = vmatpush1.bf16.msra.mxu1 %v5156_v50  ;;  %v6969_v12 = vld [vmem:[#allocation218_spill] sm:$0xff]  ;;  %v6971_v39 = vld [vmem:[#allocation220_spill] sm:$0xff]  ;;  %v6972_v44 = vld [vmem:[#allocation221_spill] sm:$0xff] }
 0x20f   :  { %v2292_v33 = vpop.f32.mrf.mxu0  ;;  %2831 = vmatprep.subr.bf16.mxu0 %v6964_v34  ;;  %v2333_v8 = vpop.f32.mrf.mxu1  ;;  %2872 = vmatprep.subr.bf16.mxu1 %v6965_v48 }
 0x210   :  { %v6973_v33 = vld [vmem:[#allocation222_spill] sm:$0xff]  ;;  %v6974_v8 = vld [vmem:[#allocation223_spill] sm:$0xff] }
 0x212   :  { %2832 = vmatpush1.bf16.msra.mxu0 %v6966_v5  ;;  %2873 = vmatpush1.bf16.msra.mxu1 %v6967_v23 }
 0x213   :  { %2833 = vmatprep.subr.bf16.mxu0 %v6968_v40  ;;  %2874 = vmatprep.subr.bf16.mxu1 %v6969_v12 }
 0x216   :  { %2834 = vmatpush1.bf16.msra.mxu0 %v6970_v0  ;;  %2875 = vmatpush1.bf16.msra.mxu1 %v6971_v39 }
 0x217   :  { %2835 = vmatprep.subr.bf16.mxu0 %v6972_v44  ;;  %2876 = vmatprep.subr.bf16.mxu1 %v6973_v33 }
 0x21a   :  { %2836 = vmatpush1.bf16.msra.mxu0 %v5192_v61  ;;  %2877 = vmatpush1.bf16.msra.mxu1 %v5196_v59 }
 0x21b   :  { %2837 = vmatprep.subr.bf16.mxu0 %v5198_v26  ;;  %2878 = vmatprep.subr.bf16.mxu1 %v6974_v8 }
 0x21e   :  { %2838 = vmatpush1.bf16.msra.mxu0 %v5204_v7  ;;  %2879 = vmatpush1.bf16.msra.mxu1 %v5208_v49 }
 0x21f   :  { %2839 = vmatprep.subr.bf16.mxu0 %v5210_v58  ;;  %2880 = vmatprep.subr.bf16.mxu1 %v5213_v51 }
 0x222   :  { %2840 = vmatpush1.bf16.msra.mxu0 %v5216_v42  ;;  %2881 = vmatpush1.bf16.msra.mxu1 %v5220_v3 }
 0x223   :  { %2841 = vmatprep.subr.bf16.mxu0 %v5222_v18  ;;  %2882 = vmatprep.subr.bf16.mxu1 %v5225_v25 }
 0x226   :  { %2842 = vmatpush1.bf16.msra.mxu0 %v5228_v57  ;;  %2883 = vmatpush1.bf16.msra.mxu1 %v5232_v41 }
 0x227   :  { %2909 = vmatprep.subr.bf16.mxu0 %v4424_v4  ;;  %2950 = vmatprep.subr.bf16.mxu1 %v4428_v9 }
 0x229   :  { %v5591_v49 = vpop.f32.mrf.mxu0  ;;  %2860 = vmatmul.mubr.bf16.vlgmr.msra.gmra.mxu0 %v4486_v52  ;;  %v5594_v51 = vpop.f32.mrf.mxu1  ;;  %2901 = vmatmul.mubr.bf16.vlgmr.msra.gmra.mxu1 %v4486_v52  ;;  %v6982_v52 = vld [vmem:[#allocation19_spill] sm:$0xff] }
 0x22a   :  { %2910 = vmatpush1.bf16.msra.mxu0 %v4426_v6  ;;  %2951 = vmatpush1.bf16.msra.mxu1 %v4430_v10 }
 0x22b   :  { %v5599_v25 = vpop.f32.mrf.mxu0  ;;  %2911 = vmatprep.subr.bf16.mxu0 %v4432_v11  ;;  %v5602_v41 = vpop.f32.mrf.mxu1  ;;  %2952 = vmatprep.subr.bf16.mxu1 %v4435_v15  ;;  %v58_v11 = vunpack.c.l.bf16 %v4529_v24  ;;  %v6975_v15 = vld [vmem:[#allocation12_spill] sm:$0xff] }
 0x22c   :  { %2941 = vmatprep.mubr.bf16.mxu0 %v6564_v60  ;;  %2982 = vmatprep.mubr.bf16.mxu1 %v6564_v60  ;;  %v6995_v24 = vld [vmem:[#allocation32_spill] sm:$0xff] }
 0x22d   :  { %v2373_v4 = vpop.f32.mrf.mxu0  ;;  %v2414_v9 = vpop.f32.mrf.mxu1 }
 0x22e   :  { %2912 = vmatpush1.bf16.msra.mxu0 %v4439_v19  ;;  %2953 = vmatpush1.bf16.msra.mxu1 %v4443_v20  ;;  %v59_v19 = vsub.f32 %v6975_v15, %v58_v11  ;;  %v6997_v4 = vld [vmem:[#allocation34_spill] sm:$0xff]  ;;  %v6998_v9 = vld [vmem:[#allocation35_spill] sm:$0xff] }
 0x22f   :  { %v2374_v6 = vpop.f32.mrf.mxu0  ;;  %2913 = vmatprep.subr.bf16.mxu0 %v4445_v21  ;;  %v2415_v10 = vpop.f32.mrf.mxu1  ;;  %2954 = vmatprep.subr.bf16.mxu1 %v4448_v22  ;;  %v7001_v11 = vld [vmem:[#allocation38_spill] sm:$0xff]  ;;  %v7002_v15 = vld [vmem:[#allocation39_spill] sm:$0xff] }
 0x230   :  { %v5633_v20 = vpack.c.bf16 %v59_v19, %v59_v19  ;;  %v6999_v6 = vld [vmem:[#allocation36_spill] sm:$0xff]  ;;  %v7000_v10 = vld [vmem:[#allocation37_spill] sm:$0xff] }
 0x231   :  { %v7003_v19 = vld [vmem:[#allocation40_spill] sm:$0xff] }
 0x232   :  { %2914 = vmatpush1.bf16.msra.mxu0 %v4451_v27  ;;  %2955 = vmatpush1.bf16.msra.mxu1 %v4455_v28  ;;  %v6976_v27 = vld [vmem:[#allocation13_spill] sm:$0xff] }
 0x233   :  { %2915 = vmatprep.subr.bf16.mxu0 %v4457_v29  ;;  %2956 = vmatprep.subr.bf16.mxu1 %v4460_v30  ;;  %v6977_v29 = vld [vmem:[#allocation14_spill] sm:$0xff] }
 0x236   :  { %2916 = vmatpush1.bf16.msra.mxu0 %v4463_v35  ;;  %2957 = vmatpush1.bf16.msra.mxu1 %v4467_v36  ;;  %v6978_v35 = vld [vmem:[#allocation15_spill] sm:$0xff] }
 0x237   :  { %2917 = vmatprep.subr.bf16.mxu0 %v4469_v37  ;;  %2958 = vmatprep.subr.bf16.mxu1 %v4472_v38  ;;  %v6979_v38 = vld [vmem:[#allocation16_spill] sm:$0xff] }
 0x23a   :  { %2918 = vmatpush1.bf16.msra.mxu0 %v4475_v43  ;;  %2959 = vmatpush1.bf16.msra.mxu1 %v4479_v45  ;;  %v6980_v43 = vld [vmem:[#allocation17_spill] sm:$0xff] }
 0x23b   :  { %2919 = vmatprep.subr.bf16.mxu0 %v4481_v46  ;;  %2960 = vmatprep.subr.bf16.mxu1 %v4484_v47  ;;  %v6981_v46 = vld [vmem:[#allocation18_spill] sm:$0xff] }
 0x23e   :  { %2920 = vmatpush1.bf16.msra.mxu0 %v4489_v53  ;;  %2961 = vmatpush1.bf16.msra.mxu1 %v4493_v54  ;;  %v6983_v53 = vld [vmem:[#allocation20_spill] sm:$0xff]  ;;  %v6984_v54 = vld [vmem:[#allocation21_spill] sm:$0xff] }
 0x23f   :  { %2921 = vmatprep.subr.bf16.mxu0 %v4495_v55  ;;  %2962 = vmatprep.subr.bf16.mxu1 %v4498_v56  ;;  %v6985_v55 = vld [vmem:[#allocation22_spill] sm:$0xff]  ;;  %v6986_v56 = vld [vmem:[#allocation23_spill] sm:$0xff] }
 0x242   :  { %2922 = vmatpush1.bf16.msra.mxu0 %v4502_v62  ;;  %2963 = vmatpush1.bf16.msra.mxu1 %v4506_v63  ;;  %v6987_v62 = vld [vmem:[#allocation24_spill] sm:$0xff]  ;;  %v6988_v63 = vld [vmem:[#allocation25_spill] sm:$0xff] }
 0x243   :  { %2923 = vmatprep.subr.bf16.mxu0 %v4508_v1  ;;  %2964 = vmatprep.subr.bf16.mxu1 %v4511_v2  ;;  %v6989_v1 = vld [vmem:[#allocation26_spill] sm:$0xff]  ;;  %v6990_v2 = vld [vmem:[#allocation27_spill] sm:$0xff] }
 0x246   :  { %2924 = vmatpush1.bf16.msra.mxu0 %v4516_v13  ;;  %2965 = vmatpush1.bf16.msra.mxu1 %v4520_v14  ;;  %v6991_v13 = vld [vmem:[#allocation28_spill] sm:$0xff]  ;;  %v6992_v14 = vld [vmem:[#allocation29_spill] sm:$0xff] }
 0x247   :  { %2991 = vmatprep.subr.bf16.mxu0 %v4522_v16  ;;  %3032 = vmatprep.subr.bf16.mxu1 %v4525_v17  ;;  %v6993_v16 = vld [vmem:[#allocation30_spill] sm:$0xff]  ;;  %v6994_v17 = vld [vmem:[#allocation31_spill] sm:$0xff] }
 0x249   :  { %v5639_v21 = vpop.f32.mrf.mxu0  ;;  %2942 = vmatmul.mubr.bf16.vlgmr.msra.gmra.mxu0 %v5633_v20  ;;  %v5642_v22 = vpop.f32.mrf.mxu1  ;;  %2983 = vmatmul.mubr.bf16.vlgmr.msra.gmra.mxu1 %v5633_v20 }
 0x24a   :  { %2992 = vmatpush1.bf16.msra.mxu0 %v4532_v31  ;;  %3033 = vmatpush1.bf16.msra.mxu1 %v6976_v27  ;;  %v6996_v31 = vld [vmem:[#allocation33_spill] sm:$0xff] }
 0x24b   :  { %v5647_v28 = vpop.f32.mrf.mxu0  ;;  %2993 = vmatprep.subr.bf16.mxu0 %v6977_v29  ;;  %v5650_v30 = vpop.f32.mrf.mxu1  ;;  %3034 = vmatprep.subr.bf16.mxu1 %v6978_v35  ;;  %v7004_v27 = vld [vmem:[#allocation41_spill] sm:$0xff]  ;;  %v7005_v29 = vld [vmem:[#allocation42_spill] sm:$0xff]  ;;  %v7006_v35 = vld [vmem:[#allocation43_spill] sm:$0xff] }
 0x24c   :  { %3023 = vmatprep.mubr.bf16.mxu0 %v6564_v60  ;;  %3064 = vmatprep.mubr.bf16.mxu1 %v6564_v60 }
 0x24d   :  { %v2455_v36 = vpop.f32.mrf.mxu0  ;;  %v2496_v37 = vpop.f32.mrf.mxu1 }
 0x24e   :  { %2994 = vmatpush1.bf16.msra.mxu0 %v6979_v38  ;;  %3035 = vmatpush1.bf16.msra.mxu1 %v6980_v43  ;;  %v7007_v38 = vld [vmem:[#allocation44_spill] sm:$0xff]  ;;  %v7008_v43 = vld [vmem:[#allocation45_spill] sm:$0xff] }
 0x24f   :  { %v2456_v45 = vpop.f32.mrf.mxu0  ;;  %2995 = vmatprep.subr.bf16.mxu0 %v6981_v46  ;;  %v2497_v47 = vpop.f32.mrf.mxu1  ;;  %3036 = vmatprep.subr.bf16.mxu1 %v6982_v52  ;;  %v7009_v46 = vld [vmem:[#allocation46_spill] sm:$0xff]  ;;  %v7010_v52 = vld [vmem:[#allocation47_spill] sm:$0xff] }
 0x252   :  { %2996 = vmatpush1.bf16.msra.mxu0 %v6983_v53  ;;  %3037 = vmatpush1.bf16.msra.mxu1 %v6984_v54 }
 0x253   :  { %2997 = vmatprep.subr.bf16.mxu0 %v6985_v55  ;;  %3038 = vmatprep.subr.bf16.mxu1 %v6986_v56  ;;  %v7011_v55 = vld [vmem:[#allocation48_spill] sm:$0xff]  ;;  %v7012_v56 = vld [vmem:[#allocation49_spill] sm:$0xff] }
 0x256   :  { %2998 = vmatpush1.bf16.msra.mxu0 %v6987_v62  ;;  %3039 = vmatpush1.bf16.msra.mxu1 %v6988_v63  ;;  %v7013_v63 = vld [vmem:[#allocation50_spill] sm:$0xff] }
 0x257   :  { %2999 = vmatprep.subr.bf16.mxu0 %v6989_v1  ;;  %3040 = vmatprep.subr.bf16.mxu1 %v6990_v2  ;;  %v7014_v2 = vld [vmem:[#allocation51_spill] sm:$0xff] }
 0x25a   :  { %3000 = vmatpush1.bf16.msra.mxu0 %v6991_v13  ;;  %3041 = vmatpush1.bf16.msra.mxu1 %v6992_v14  ;;  %v7015_v13 = vld [vmem:[#allocation52_spill] sm:$0xff]  ;;  %v7016_v14 = vld [vmem:[#allocation53_spill] sm:$0xff] }
 0x25b   :  { %3001 = vmatprep.subr.bf16.mxu0 %v6993_v16  ;;  %3042 = vmatprep.subr.bf16.mxu1 %v6994_v17  ;;  %v7017_v16 = vld [vmem:[#allocation54_spill] sm:$0xff]  ;;  %v7018_v17 = vld [vmem:[#allocation55_spill] sm:$0xff] }
 0x25e   :  { %3002 = vmatpush1.bf16.msra.mxu0 %v6995_v24  ;;  %3043 = vmatpush1.bf16.msra.mxu1 %v6996_v31  ;;  %v7019_v24 = vld [vmem:[#allocation56_spill] sm:$0xff]  ;;  %v7020_v31 = vld [vmem:[#allocation57_spill] sm:$0xff] }
 0x25f   :  { %3003 = vmatprep.subr.bf16.mxu0 %v6997_v4  ;;  %3044 = vmatprep.subr.bf16.mxu1 %v6998_v9  ;;  %v7021_v4 = vld [vmem:[#allocation58_spill] sm:$0xff]  ;;  %v7022_v9 = vld [vmem:[#allocation59_spill] sm:$0xff] }
 0x262   :  { %3004 = vmatpush1.bf16.msra.mxu0 %v6999_v6  ;;  %3045 = vmatpush1.bf16.msra.mxu1 %v7000_v10  ;;  %v7023_v6 = vld [vmem:[#allocation60_spill] sm:$0xff]  ;;  %v7024_v10 = vld [vmem:[#allocation61_spill] sm:$0xff] }
 0x263   :  { %3005 = vmatprep.subr.bf16.mxu0 %v7001_v11  ;;  %3046 = vmatprep.subr.bf16.mxu1 %v7002_v15  ;;  %v7025_v11 = vld [vmem:[#allocation62_spill] sm:$0xff]  ;;  %v7026_v15 = vld [vmem:[#allocation63_spill] sm:$0xff] }
 0x266   :  { %3006 = vmatpush1.bf16.msra.mxu0 %v7003_v19  ;;  %3047 = vmatpush1.bf16.msra.mxu1 %v7004_v27  ;;  %v7027_v19 = vld [vmem:[#allocation64_spill] sm:$0xff]  ;;  %v7028_v27 = vld [vmem:[#allocation65_spill] sm:$0xff] }
 0x267   :  { %3073 = vmatprep.subr.bf16.mxu0 %v7005_v29  ;;  %3114 = vmatprep.subr.bf16.mxu1 %v7006_v35  ;;  %v7029_v29 = vld [vmem:[#allocation66_spill] sm:$0xff]  ;;  %v7030_v35 = vld [vmem:[#allocation67_spill] sm:$0xff] }
 0x269   :  { %v5683_v36 = vpop.f32.mrf.mxu0  ;;  %3024 = vmatmul.mubr.bf16.vlgmr.msra.gmra.mxu0 %v5633_v20  ;;  %v5686_v37 = vpop.f32.mrf.mxu1  ;;  %3065 = vmatmul.mubr.bf16.vlgmr.msra.gmra.mxu1 %v5633_v20 }
 0x26a   :  { %3074 = vmatpush1.bf16.msra.mxu0 %v7007_v38  ;;  %3115 = vmatpush1.bf16.msra.mxu1 %v7008_v43  ;;  %v7031_v38 = vld [vmem:[#allocation68_spill] sm:$0xff]  ;;  %v7032_v43 = vld [vmem:[#allocation69_spill] sm:$0xff] }
 0x26b   :  { %v5691_v45 = vpop.f32.mrf.mxu0  ;;  %3075 = vmatprep.subr.bf16.mxu0 %v7009_v46  ;;  %v5694_v47 = vpop.f32.mrf.mxu1  ;;  %3116 = vmatprep.subr.bf16.mxu1 %v7010_v52  ;;  %v7033_v46 = vld [vmem:[#allocation70_spill] sm:$0xff]  ;;  %v7034_v52 = vld [vmem:[#allocation71_spill] sm:$0xff] }
 0x26c   :  { %3105 = vmatprep.mubr.bf16.mxu0 %v6564_v60  ;;  %3146 = vmatprep.mubr.bf16.mxu1 %v6564_v60 }
 0x26d   :  { %v2537_v53 = vpop.f32.mrf.mxu0  ;;  %v2578_v54 = vpop.f32.mrf.mxu1 }
 0x26e   :  { %3076 = vmatpush1.bf16.msra.mxu0 %v7011_v55  ;;  %3117 = vmatpush1.bf16.msra.mxu1 %v7012_v56  ;;  %v7035_v53 = vld [vmem:[#allocation72_spill] sm:$0xff]  ;;  %v7036_v54 = vld [vmem:[#allocation73_spill] sm:$0xff]  ;;  %v7037_v55 = vld [vmem:[#allocation74_spill] sm:$0xff] }
 0x26f   :  { %v2538_v62 = vpop.f32.mrf.mxu0  ;;  %3077 = vmatprep.subr.bf16.mxu0 %v7013_v63  ;;  %v2579_v1 = vpop.f32.mrf.mxu1  ;;  %3118 = vmatprep.subr.bf16.mxu1 %v7014_v2  ;;  %v7038_v56 = vld [vmem:[#allocation75_spill] sm:$0xff]  ;;  %v7042_v2 = vld [vmem:[#allocation77_spill] sm:$0xff] }
 0x270   :  { %v7041_v1 = vld [vmem:[#allocation76_spill] sm:$0xff] }
 0x272   :  { %3078 = vmatpush1.bf16.msra.mxu0 %v7015_v13  ;;  %3119 = vmatpush1.bf16.msra.mxu1 %v7016_v14  ;;  %v7044_v14 = vld [vmem:[#allocation78_spill] sm:$0xff] }
 0x273   :  { %3079 = vmatprep.subr.bf16.mxu0 %v7017_v16  ;;  %3120 = vmatprep.subr.bf16.mxu1 %v7018_v17  ;;  %v7046_v17 = vld [vmem:[#allocation79_spill] sm:$0xff] }
 0x276   :  { %3080 = vmatpush1.bf16.msra.mxu0 %v7019_v24  ;;  %3121 = vmatpush1.bf16.msra.mxu1 %v7020_v31 }
 0x277   :  { %3081 = vmatprep.subr.bf16.mxu0 %v7021_v4  ;;  %3122 = vmatprep.subr.bf16.mxu1 %v7022_v9  ;;  %v7047_v4 = vld [vmem:[#allocation80_spill] sm:$0xff]  ;;  %v7048_v9 = vld [vmem:[#allocation81_spill] sm:$0xff] }
 0x27a   :  { %3082 = vmatpush1.bf16.msra.mxu0 %v7023_v6  ;;  %3123 = vmatpush1.bf16.msra.mxu1 %v7024_v10  ;;  %v7049_v10 = vld [vmem:[#allocation82_spill] sm:$0xff] }
 0x27b   :  { %3083 = vmatprep.subr.bf16.mxu0 %v7025_v11  ;;  %3124 = vmatprep.subr.bf16.mxu1 %v7026_v15  ;;  %v7050_v15 = vld [vmem:[#allocation83_spill] sm:$0xff] }
 0x27e   :  { %3084 = vmatpush1.bf16.msra.mxu0 %v7027_v19  ;;  %3125 = vmatpush1.bf16.msra.mxu1 %v7028_v27  ;;  %v7051_v19 = vld [vmem:[#allocation84_spill] sm:$0xff]  ;;  %v7052_v27 = vld [vmem:[#allocation85_spill] sm:$0xff] }
 0x27f   :  { %3085 = vmatprep.subr.bf16.mxu0 %v7029_v29  ;;  %3126 = vmatprep.subr.bf16.mxu1 %v7030_v35  ;;  %v7053_v29 = vld [vmem:[#allocation86_spill] sm:$0xff]  ;;  %v7054_v35 = vld [vmem:[#allocation87_spill] sm:$0xff] }
 0x282   :  { %3086 = vmatpush1.bf16.msra.mxu0 %v7031_v38  ;;  %3127 = vmatpush1.bf16.msra.mxu1 %v7032_v43  ;;  %v7055_v38 = vld [vmem:[#allocation88_spill] sm:$0xff]  ;;  %v7056_v43 = vld [vmem:[#allocation89_spill] sm:$0xff] }
 0x283   :  { %3087 = vmatprep.subr.bf16.mxu0 %v7033_v46  ;;  %3128 = vmatprep.subr.bf16.mxu1 %v7034_v52  ;;  %v7057_v46 = vld [vmem:[#allocation90_spill] sm:$0xff]  ;;  %v7058_v52 = vld [vmem:[#allocation91_spill] sm:$0xff] }
 0x286   :  { %3088 = vmatpush1.bf16.msra.mxu0 %v7035_v53  ;;  %3129 = vmatpush1.bf16.msra.mxu1 %v7036_v54  ;;  %v7059_v53 = vld [vmem:[#allocation92_spill] sm:$0xff]  ;;  %v7060_v54 = vld [vmem:[#allocation93_spill] sm:$0xff] }
 0x287   :  { %3155 = vmatprep.subr.bf16.mxu0 %v7037_v55  ;;  %3196 = vmatprep.subr.bf16.mxu1 %v7038_v56  ;;  %v7061_v55 = vld [vmem:[#allocation94_spill] sm:$0xff]  ;;  %v7062_v56 = vld [vmem:[#allocation95_spill] sm:$0xff] }
 0x289   :  { %v5727_v62 = vpop.f32.mrf.mxu0  ;;  %3106 = vmatmul.mubr.bf16.vlgmr.msra.gmra.mxu0 %v5633_v20  ;;  %v5730_v63 = vpop.f32.mrf.mxu1  ;;  %3147 = vmatmul.mubr.bf16.vlgmr.msra.gmra.mxu1 %v5633_v20 }
 0x28a   :  { %7039 = vst [vmem:[#allocation212_spill] sm:$0xff] %v5727_v62  ;;  %7040 = vst [vmem:[#allocation214_spill] sm:$0xff] %v5730_v63  ;;  %3156 = vmatpush1.bf16.msra.mxu0 %v7041_v1  ;;  %3197 = vmatpush1.bf16.msra.mxu1 %v7042_v2  ;;  %v7063_v1 = vld [vmem:[#allocation96_spill] sm:$0xff]  ;;  %v7064_v2 = vld [vmem:[#allocation97_spill] sm:$0xff] }
 0x28b   :  { %v5735_v13 = vpop.f32.mrf.mxu0  ;;  %3157 = vmatprep.subr.bf16.mxu0 %v7044_v14  ;;  %v5738_v16 = vpop.f32.mrf.mxu1  ;;  %3198 = vmatprep.subr.bf16.mxu1 %v7046_v17  ;;  %v7065_v14 = vld [vmem:[#allocation98_spill] sm:$0xff]  ;;  %v7066_v17 = vld [vmem:[#allocation99_spill] sm:$0xff] }
 0x28c   :  { %7043 = vst [vmem:[#allocation215_spill] sm:$0xff] %v5735_v13  ;;  %7045 = vst [vmem:[#allocation216_spill] sm:$0xff] %v5738_v16  ;;  %3187 = vmatprep.mubr.bf16.mxu0 %v6564_v60  ;;  %3228 = vmatprep.mubr.bf16.mxu1 %v6564_v60  ;;  %v7193_v16 = vld [vmem:[#allocation207_spill] sm:$0xff] }
 0x28d   :  { %v2619_v24 = vpop.f32.mrf.mxu0  ;;  %v2660_v31 = vpop.f32.mrf.mxu1 }
 0x28e   :  { %3158 = vmatpush1.bf16.msra.mxu0 %v7047_v4  ;;  %3199 = vmatpush1.bf16.msra.mxu1 %v7048_v9  ;;  %v7067_v24 = vld [vmem:[#allocation100_spill] sm:$0xff]  ;;  %v7068_v31 = vld [vmem:[#allocation101_spill] sm:$0xff]  ;;  %v7069_v4 = vld [vmem:[#allocation102_spill] sm:$0xff] }
 0x28f   :  { %v2620_v6 = vpop.f32.mrf.mxu0  ;;  %3159 = vmatprep.subr.bf16.mxu0 %v7049_v10  ;;  %v2661_v11 = vpop.f32.mrf.mxu1  ;;  %3200 = vmatprep.subr.bf16.mxu1 %v7050_v15  ;;  %v7070_v9 = vld [vmem:[#allocation103_spill] sm:$0xff]  ;;  %v7072_v10 = vld [vmem:[#allocation105_spill] sm:$0xff] }
 0x290   :  { %v7071_v6 = vld [vmem:[#allocation104_spill] sm:$0xff]  ;;  %v7073_v11 = vld [vmem:[#allocation106_spill] sm:$0xff]  ;;  %v7074_v15 = vld [vmem:[#allocation107_spill] sm:$0xff] }
 0x292   :  { %3160 = vmatpush1.bf16.msra.mxu0 %v7051_v19  ;;  %3201 = vmatpush1.bf16.msra.mxu1 %v7052_v27 }
 0x293   :  { %3161 = vmatprep.subr.bf16.mxu0 %v7053_v29  ;;  %3202 = vmatprep.subr.bf16.mxu1 %v7054_v35  ;;  %v7077_v29 = vld [vmem:[#allocation108_spill] sm:$0xff]  ;;  %v7078_v35 = vld [vmem:[#allocation109_spill] sm:$0xff] }
 0x296   :  { %3162 = vmatpush1.bf16.msra.mxu0 %v7055_v38  ;;  %3203 = vmatpush1.bf16.msra.mxu1 %v7056_v43  ;;  %v7080_v43 = vld [vmem:[#allocation110_spill] sm:$0xff] }
 0x297   :  { %3163 = vmatprep.subr.bf16.mxu0 %v7057_v46  ;;  %3204 = vmatprep.subr.bf16.mxu1 %v7058_v52  ;;  %v7082_v52 = vld [vmem:[#allocation111_spill] sm:$0xff] }
 0x29a   :  { %3164 = vmatpush1.bf16.msra.mxu0 %v7059_v53  ;;  %3205 = vmatpush1.bf16.msra.mxu1 %v7060_v54 }
 0x29b   :  { %3165 = vmatprep.subr.bf16.mxu0 %v7061_v55  ;;  %3206 = vmatprep.subr.bf16.mxu1 %v7062_v56  ;;  %v7083_v55 = vld [vmem:[#allocation112_spill] sm:$0xff]  ;;  %v7084_v56 = vld [vmem:[#allocation113_spill] sm:$0xff] }
 0x29e   :  { %3166 = vmatpush1.bf16.msra.mxu0 %v7063_v1  ;;  %3207 = vmatpush1.bf16.msra.mxu1 %v7064_v2  ;;  %v7085_v2 = vld [vmem:[#allocation114_spill] sm:$0xff] }
 0x29f   :  { %3167 = vmatprep.subr.bf16.mxu0 %v7065_v14  ;;  %3208 = vmatprep.subr.bf16.mxu1 %v7066_v17  ;;  %v7086_v17 = vld [vmem:[#allocation115_spill] sm:$0xff] }
 0x2a2   :  { %3168 = vmatpush1.bf16.msra.mxu0 %v7067_v24  ;;  %3209 = vmatpush1.bf16.msra.mxu1 %v7068_v31  ;;  %v7087_v24 = vld [vmem:[#allocation116_spill] sm:$0xff]  ;;  %v7088_v31 = vld [vmem:[#allocation117_spill] sm:$0xff] }
 0x2a3   :  { %3169 = vmatprep.subr.bf16.mxu0 %v7069_v4  ;;  %3210 = vmatprep.subr.bf16.mxu1 %v7070_v9  ;;  %v7089_v4 = vld [vmem:[#allocation118_spill] sm:$0xff]  ;;  %v7090_v9 = vld [vmem:[#allocation119_spill] sm:$0xff] }
 0x2a6   :  { %3170 = vmatpush1.bf16.msra.mxu0 %v7071_v6  ;;  %3211 = vmatpush1.bf16.msra.mxu1 %v7072_v10  ;;  %v7091_v6 = vld [vmem:[#allocation120_spill] sm:$0xff]  ;;  %v7092_v10 = vld [vmem:[#allocation121_spill] sm:$0xff] }
 0x2a7   :  { %3237 = vmatprep.subr.bf16.mxu0 %v7073_v11  ;;  %3278 = vmatprep.subr.bf16.mxu1 %v7074_v15  ;;  %v7093_v11 = vld [vmem:[#allocation122_spill] sm:$0xff]  ;;  %v7094_v15 = vld [vmem:[#allocation123_spill] sm:$0xff] }
 0x2a9   :  { %v5771_v19 = vpop.f32.mrf.mxu0  ;;  %3188 = vmatmul.mubr.bf16.vlgmr.msra.gmra.mxu0 %v5633_v20  ;;  %v5774_v27 = vpop.f32.mrf.mxu1  ;;  %3229 = vmatmul.mubr.bf16.vlgmr.msra.gmra.mxu1 %v5633_v20 }
 0x2aa   :  { %7075 = vst [vmem:[#allocation217_spill] sm:$0xff] %v5771_v19  ;;  %7076 = vst [vmem:[#allocation218_spill] sm:$0xff] %v5774_v27  ;;  %3238 = vmatpush1.bf16.msra.mxu0 %v7077_v29  ;;  %3279 = vmatpush1.bf16.msra.mxu1 %v7078_v35  ;;  %v7095_v29 = vld [vmem:[#allocation124_spill] sm:$0xff]  ;;  %v7096_v35 = vld [vmem:[#allocation125_spill] sm:$0xff] }
 0x2ab   :  { %v5779_v38 = vpop.f32.mrf.mxu0  ;;  %3239 = vmatprep.subr.bf16.mxu0 %v7080_v43  ;;  %v5782_v46 = vpop.f32.mrf.mxu1  ;;  %3280 = vmatprep.subr.bf16.mxu1 %v7082_v52  ;;  %v7097_v43 = vld [vmem:[#allocation126_spill] sm:$0xff]  ;;  %v7098_v52 = vld [vmem:[#allocation127_spill] sm:$0xff] }
 0x2ac   :  { %7079 = vst [vmem:[#allocation219_spill] sm:$0xff] %v5779_v38  ;;  %7081 = vst [vmem:[#allocation220_spill] sm:$0xff] %v5782_v46  ;;  %3269 = vmatprep.mubr.bf16.mxu0 %v6564_v60  ;;  %3310 = vmatprep.mubr.bf16.mxu1 %v6564_v60  ;;  %v7191_v38 = vld [vmem:[#allocation205_spill] sm:$0xff] }
 0x2ad   :  { %v2701_v53 = vpop.f32.mrf.mxu0  ;;  %v2742_v54 = vpop.f32.mrf.mxu1 }
 0x2ae   :  { %3240 = vmatpush1.bf16.msra.mxu0 %v7083_v55  ;;  %3281 = vmatpush1.bf16.msra.mxu1 %v7084_v56  ;;  %v7099_v53 = vld [vmem:[#allocation128_spill] sm:$0xff]  ;;  %v7100_v54 = vld [vmem:[#allocation129_spill] sm:$0xff]  ;;  %v7101_v55 = vld [vmem:[#allocation130_spill] sm:$0xff] }
 0x2af   :  { %v2702_v1 = vpop.f32.mrf.mxu0  ;;  %3241 = vmatprep.subr.bf16.mxu0 %v7085_v2  ;;  %v2743_v14 = vpop.f32.mrf.mxu1  ;;  %3282 = vmatprep.subr.bf16.mxu1 %v7086_v17  ;;  %v7102_v56 = vld [vmem:[#allocation131_spill] sm:$0xff]  ;;  %v7104_v2 = vld [vmem:[#allocation133_spill] sm:$0xff] }
 0x2b0   :  { %v7103_v1 = vld [vmem:[#allocation132_spill] sm:$0xff]  ;;  %v7105_v14 = vld [vmem:[#allocation134_spill] sm:$0xff]  ;;  %v7106_v17 = vld [vmem:[#allocation135_spill] sm:$0xff] }
 0x2b2   :  { %3242 = vmatpush1.bf16.msra.mxu0 %v7087_v24  ;;  %3283 = vmatpush1.bf16.msra.mxu1 %v7088_v31  ;;  %v7107_v24 = vld [vmem:[#allocation136_spill] sm:$0xff]  ;;  %v7108_v31 = vld [vmem:[#allocation137_spill] sm:$0xff] }
 0x2b3   :  { %3243 = vmatprep.subr.bf16.mxu0 %v7089_v4  ;;  %3284 = vmatprep.subr.bf16.mxu1 %v7090_v9  ;;  %v7109_v4 = vld [vmem:[#allocation138_spill] sm:$0xff]  ;;  %v7110_v9 = vld [vmem:[#allocation139_spill] sm:$0xff] }
 0x2b6   :  { %3244 = vmatpush1.bf16.msra.mxu0 %v7091_v6  ;;  %3285 = vmatpush1.bf16.msra.mxu1 %v7092_v10 }
 0x2b7   :  { %3245 = vmatprep.subr.bf16.mxu0 %v7093_v11  ;;  %3286 = vmatprep.subr.bf16.mxu1 %v7094_v15  ;;  %v7113_v11 = vld [vmem:[#allocation140_spill] sm:$0xff]  ;;  %v7114_v15 = vld [vmem:[#allocation141_spill] sm:$0xff] }
 0x2ba   :  { %3246 = vmatpush1.bf16.msra.mxu0 %v7095_v29  ;;  %3287 = vmatpush1.bf16.msra.mxu1 %v7096_v35  ;;  %v7116_v35 = vld [vmem:[#allocation142_spill] sm:$0xff] }
 0x2bb   :  { %3247 = vmatprep.subr.bf16.mxu0 %v7097_v43  ;;  %3288 = vmatprep.subr.bf16.mxu1 %v7098_v52  ;;  %v7118_v52 = vld [vmem:[#allocation143_spill] sm:$0xff] }
 0x2be   :  { %3248 = vmatpush1.bf16.msra.mxu0 %v7099_v53  ;;  %3289 = vmatpush1.bf16.msra.mxu1 %v7100_v54 }
 0x2bf   :  { %3249 = vmatprep.subr.bf16.mxu0 %v7101_v55  ;;  %3290 = vmatprep.subr.bf16.mxu1 %v7102_v56  ;;  %v7119_v55 = vld [vmem:[#allocation144_spill] sm:$0xff]  ;;  %v7120_v56 = vld [vmem:[#allocation145_spill] sm:$0xff] }
 0x2c2   :  { %3250 = vmatpush1.bf16.msra.mxu0 %v7103_v1  ;;  %3291 = vmatpush1.bf16.msra.mxu1 %v7104_v2  ;;  %v7121_v2 = vld [vmem:[#allocation146_spill] sm:$0xff] }
 0x2c3   :  { %3251 = vmatprep.subr.bf16.mxu0 %v7105_v14  ;;  %3292 = vmatprep.subr.bf16.mxu1 %v7106_v17  ;;  %v7122_v17 = vld [vmem:[#allocation147_spill] sm:$0xff] }
 0x2c6   :  { %3252 = vmatpush1.bf16.msra.mxu0 %v7107_v24  ;;  %3293 = vmatpush1.bf16.msra.mxu1 %v7108_v31  ;;  %v7123_v24 = vld [vmem:[#allocation148_spill] sm:$0xff]  ;;  %v7124_v31 = vld [vmem:[#allocation149_spill] sm:$0xff] }
 0x2c7   :  { %3319 = vmatprep.subr.bf16.mxu0 %v7109_v4  ;;  %3360 = vmatprep.subr.bf16.mxu1 %v7110_v9  ;;  %v7125_v4 = vld [vmem:[#allocation150_spill] sm:$0xff]  ;;  %v7126_v9 = vld [vmem:[#allocation151_spill] sm:$0xff] }
 0x2c9   :  { %v5815_v6 = vpop.f32.mrf.mxu0  ;;  %3270 = vmatmul.mubr.bf16.vlgmr.msra.gmra.mxu0 %v5633_v20  ;;  %v5818_v10 = vpop.f32.mrf.mxu1  ;;  %3311 = vmatmul.mubr.bf16.vlgmr.msra.gmra.mxu1 %v5633_v20 }
 0x2ca   :  { %7111 = vst [vmem:[#allocation221_spill] sm:$0xff] %v5815_v6  ;;  %7112 = vst [vmem:[#allocation222_spill] sm:$0xff] %v5818_v10  ;;  %3320 = vmatpush1.bf16.msra.mxu0 %v7113_v11  ;;  %3361 = vmatpush1.bf16.msra.mxu1 %v7114_v15  ;;  %v7127_v11 = vld [vmem:[#allocation152_spill] sm:$0xff]  ;;  %v7128_v15 = vld [vmem:[#allocation153_spill] sm:$0xff] }
 0x2cb   :  { %v5823_v29 = vpop.f32.mrf.mxu0  ;;  %3321 = vmatprep.subr.bf16.mxu0 %v7116_v35  ;;  %v5826_v43 = vpop.f32.mrf.mxu1  ;;  %3362 = vmatprep.subr.bf16.mxu1 %v7118_v52  ;;  %v7129_v35 = vld [vmem:[#allocation154_spill] sm:$0xff]  ;;  %v7130_v52 = vld [vmem:[#allocation155_spill] sm:$0xff] }
 0x2cc   :  { %7115 = vst [vmem:[#allocation223_spill] sm:$0xff] %v5823_v29  ;;  %7117 = vst [vmem:[#allocation12_spill] sm:$0xff] %v5826_v43  ;;  %3351 = vmatprep.mubr.bf16.mxu0 %v6564_v60  ;;  %3392 = vmatprep.mubr.bf16.mxu1 %v6564_v60  ;;  %v7187_v43 = vld [vmem:[#allocation257_spill] sm:$0xff] }
 0x2cd   :  { %v2783_v53 = vpop.f32.mrf.mxu0  ;;  %v2824_v54 = vpop.f32.mrf.mxu1 }
 0x2ce   :  { %3322 = vmatpush1.bf16.msra.mxu0 %v7119_v55  ;;  %3363 = vmatpush1.bf16.msra.mxu1 %v7120_v56  ;;  %v7131_v53 = vld [vmem:[#allocation156_spill] sm:$0xff]  ;;  %v7132_v54 = vld [vmem:[#allocation157_spill] sm:$0xff]  ;;  %v7133_v55 = vld [vmem:[#allocation158_spill] sm:$0xff] }
 0x2cf   :  { %v2784_v1 = vpop.f32.mrf.mxu0  ;;  %3323 = vmatprep.subr.bf16.mxu0 %v7121_v2  ;;  %v2825_v14 = vpop.f32.mrf.mxu1  ;;  %3364 = vmatprep.subr.bf16.mxu1 %v7122_v17  ;;  %v7134_v56 = vld [vmem:[#allocation159_spill] sm:$0xff]  ;;  %v7136_v2 = vld [vmem:[#allocation161_spill] sm:$0xff] }
 0x2d0   :  { %v7135_v1 = vld [vmem:[#allocation160_spill] sm:$0xff]  ;;  %v7137_v14 = vld [vmem:[#allocation162_spill] sm:$0xff]  ;;  %v7138_v17 = vld [vmem:[#allocation163_spill] sm:$0xff] }
 0x2d2   :  { %3324 = vmatpush1.bf16.msra.mxu0 %v7123_v24  ;;  %3365 = vmatpush1.bf16.msra.mxu1 %v7124_v31  ;;  %v7139_v24 = vld [vmem:[#allocation164_spill] sm:$0xff]  ;;  %v7140_v31 = vld [vmem:[#allocation165_spill] sm:$0xff] }
 0x2d3   :  { %3325 = vmatprep.subr.bf16.mxu0 %v7125_v4  ;;  %3366 = vmatprep.subr.bf16.mxu1 %v7126_v9  ;;  %v7141_v4 = vld [vmem:[#allocation166_spill] sm:$0xff]  ;;  %v7142_v9 = vld [vmem:[#allocation167_spill] sm:$0xff] }
 0x2d6   :  { %3326 = vmatpush1.bf16.msra.mxu0 %v7127_v11  ;;  %3367 = vmatpush1.bf16.msra.mxu1 %v7128_v15  ;;  %v7143_v11 = vld [vmem:[#allocation168_spill] sm:$0xff]  ;;  %v7144_v15 = vld [vmem:[#allocation169_spill] sm:$0xff] }
 0x2d7   :  { %3327 = vmatprep.subr.bf16.mxu0 %v7129_v35  ;;  %3368 = vmatprep.subr.bf16.mxu1 %v7130_v52  ;;  %v7145_v35 = vld [vmem:[#allocation170_spill] sm:$0xff]  ;;  %v7146_v52 = vld [vmem:[#allocation171_spill] sm:$0xff] }
 0x2da   :  { %3328 = vmatpush1.bf16.msra.mxu0 %v7131_v53  ;;  %3369 = vmatpush1.bf16.msra.mxu1 %v7132_v54 }
 0x2db   :  { %3329 = vmatprep.subr.bf16.mxu0 %v7133_v55  ;;  %3370 = vmatprep.subr.bf16.mxu1 %v7134_v56  ;;  %v7149_v55 = vld [vmem:[#allocation172_spill] sm:$0xff]  ;;  %v7150_v56 = vld [vmem:[#allocation173_spill] sm:$0xff] }
 0x2de   :  { %3330 = vmatpush1.bf16.msra.mxu0 %v7135_v1  ;;  %3371 = vmatpush1.bf16.msra.mxu1 %v7136_v2  ;;  %v7152_v2 = vld [vmem:[#allocation174_spill] sm:$0xff] }
 0x2df   :  { %3331 = vmatprep.subr.bf16.mxu0 %v7137_v14  ;;  %3372 = vmatprep.subr.bf16.mxu1 %v7138_v17  ;;  %v7154_v17 = vld [vmem:[#allocation175_spill] sm:$0xff] }
 0x2e2   :  { %3332 = vmatpush1.bf16.msra.mxu0 %v7139_v24  ;;  %3373 = vmatpush1.bf16.msra.mxu1 %v7140_v31 }
 0x2e3   :  { %3333 = vmatprep.subr.bf16.mxu0 %v7141_v4  ;;  %3374 = vmatprep.subr.bf16.mxu1 %v7142_v9  ;;  %v7155_v4 = vld [vmem:[#allocation176_spill] sm:$0xff] }
 0x2e6   :  { %3334 = vmatpush1.bf16.msra.mxu0 %v7143_v11  ;;  %3375 = vmatpush1.bf16.msra.mxu1 %v7144_v15  ;;  %v7156_v11 = vld [vmem:[#allocation178_spill] sm:$0xff] }
 0x2e7   :  { %3401 = vmatprep.subr.bf16.mxu0 %v7145_v35  ;;  %3442 = vmatprep.subr.bf16.mxu1 %v7146_v52  ;;  %v7157_v35 = vld [vmem:[#allocation179_spill] sm:$0xff]  ;;  %v7158_v52 = vld [vmem:[#allocation180_spill] sm:$0xff] }
 0x2e9   :  { %v5859_v53 = vpop.f32.mrf.mxu0  ;;  %3352 = vmatmul.mubr.bf16.vlgmr.msra.gmra.mxu0 %v5633_v20  ;;  %v5862_v54 = vpop.f32.mrf.mxu1  ;;  %3393 = vmatmul.mubr.bf16.vlgmr.msra.gmra.mxu1 %v5633_v20 }
 0x2ea   :  { %7147 = vst [vmem:[#allocation13_spill] sm:$0xff] %v5859_v53  ;;  %7148 = vst [vmem:[#allocation14_spill] sm:$0xff] %v5862_v54  ;;  %3402 = vmatpush1.bf16.msra.mxu0 %v7149_v55  ;;  %3443 = vmatpush1.bf16.msra.mxu1 %v7150_v56  ;;  %v7159_v55 = vld [vmem:[#allocation181_spill] sm:$0xff]  ;;  %v7160_v56 = vld [vmem:[#allocation182_spill] sm:$0xff] }
 0x2eb   :  { %v5867_v1 = vpop.f32.mrf.mxu0  ;;  %3403 = vmatprep.subr.bf16.mxu0 %v7152_v2  ;;  %v5870_v14 = vpop.f32.mrf.mxu1  ;;  %3444 = vmatprep.subr.bf16.mxu1 %v7154_v17  ;;  %v7161_v2 = vld [vmem:[#allocation183_spill] sm:$0xff]  ;;  %v7162_v17 = vld [vmem:[#allocation184_spill] sm:$0xff] }
 0x2ec   :  { %7151 = vst [vmem:[#allocation15_spill] sm:$0xff] %v5867_v1  ;;  %7153 = vst [vmem:[#allocation16_spill] sm:$0xff] %v5870_v14  ;;  %3433 = vmatprep.mubr.bf16.mxu0 %v6564_v60  ;;  %3474 = vmatprep.mubr.bf16.mxu1 %v6564_v60  ;;  %v7183_v14 = vld [vmem:[#allocation203_spill] sm:$0xff]  ;;  %v7184_v1 = vld [vmem:[#allocation209_spill] sm:$0xff] }
 0x2ed   :  { %v2865_v24 = vpop.f32.mrf.mxu0  ;;  %v2906_v31 = vpop.f32.mrf.mxu1 }
 0x2ee   :  { %3404 = vmatpush1.bf16.msra.mxu0 %v7155_v4  ;;  %3445 = vmatpush1.bf16.msra.mxu1 %v6928_v32  ;;  %v7163_v24 = vld [vmem:[#allocation185_spill] sm:$0xff]  ;;  %v7164_v31 = vld [vmem:[#allocation186_spill] sm:$0xff]  ;;  %v7165_v32 = vld [vmem:[#allocation187_spill] sm:$0xff] }
 0x2ef   :  { %v2866_v9 = vpop.f32.mrf.mxu0  ;;  %3405 = vmatprep.subr.bf16.mxu0 %v7156_v11  ;;  %v2907_v15 = vpop.f32.mrf.mxu1  ;;  %3446 = vmatprep.subr.bf16.mxu1 %v7157_v35  ;;  %v7166_v4 = vld [vmem:[#allocation188_spill] sm:$0xff]  ;;  %v7168_v11 = vld [vmem:[#allocation190_spill] sm:$0xff]  ;;  %v3605_v35 = vlaneseq }
 0x2f0   :  { %v7167_v9 = vld [vmem:[#allocation189_spill] sm:$0xff]  ;;  %v7169_v15 = vld [vmem:[#allocation191_spill] sm:$0xff] }
 0x2f2   :  { %3406 = vmatpush1.bf16.msra.mxu0 %v7158_v52  ;;  %3447 = vmatpush1.bf16.msra.mxu1 %v7159_v55  ;;  %v7170_v52 = vld [vmem:[#allocation192_spill] sm:$0xff]  ;;  %v7171_v55 = vld [vmem:[#allocation193_spill] sm:$0xff] }
 0x2f3   :  { %3407 = vmatprep.subr.bf16.mxu0 %v7160_v56  ;;  %3448 = vmatprep.subr.bf16.mxu1 %v7161_v2  ;;  %v7172_v56 = vld [vmem:[#allocation194_spill] sm:$0xff]  ;;  %v7173_v2 = vld [vmem:[#allocation195_spill] sm:$0xff] }
 0x2f6   :  { %3408 = vmatpush1.bf16.msra.mxu0 %v7162_v17  ;;  %3449 = vmatpush1.bf16.msra.mxu1 %v7163_v24  ;;  %v5895_v17 = vshrl.u32 %v3605_v35, 7  ;;  %v7174_v24 = vld [vmem:[#allocation196_spill] sm:$0xff] }
 0x2f7   :  { %3409 = vmatprep.subr.bf16.mxu0 %v7164_v31  ;;  %3450 = vmatprep.subr.bf16.mxu1 %v7165_v32  ;;  %v7175_v31 = vld [vmem:[#allocation197_spill] sm:$0xff]  ;;  %v7176_v32 = vld [vmem:[#allocation198_spill] sm:$0xff] }
 0x2f8   :  { %v5911_v35 = vsub.s32 1, %v5895_v17 }
 0x2fa   :  { %3410 = vmatpush1.bf16.msra.mxu0 %v7166_v4  ;;  %3451 = vmatpush1.bf16.msra.mxu1 %v7167_v9  ;;  %v7177_v4 = vld [vmem:[#allocation199_spill] sm:$0xff]  ;;  %v5902_v9 = vsub.s32 0, %v5895_v17 }
 0x2fb   :  { %3411 = vmatprep.subr.bf16.mxu0 %v7168_v11  ;;  %3452 = vmatprep.subr.bf16.mxu1 %v7169_v15  ;;  %v5904_v11 = vld [vmem:[#allocation7] sm:$0xff]  ;;  %v5907_v15 = vsub.s32 2, %v5895_v17 }
 0x2fe   :  { %3412 = vmatpush1.bf16.msra.mxu0 %v7170_v52  ;;  %3453 = vmatpush1.bf16.msra.mxu1 %v7171_v55  ;;  %v7178_v52 = vld [vmem:[#allocation200_spill] sm:$0xff]  ;;  %v7179_v55 = vld [vmem:[#allocation201_spill] sm:$0xff] }
 0x2ff   :  { %3413 = vmatprep.subr.bf16.mxu0 %v7172_v56  ;;  %3454 = vmatprep.subr.bf16.mxu1 %v7173_v2  ;;  %v7180_v56 = vld [vmem:[#allocation202_spill] sm:$0xff]  ;;  %v5916_v2 = vsub.s32 3, %v5895_v17 }
 0x301   :  { %v3620_v19 = vrot.slane %v5904_v11, %v5916_v2 }
 0x302   :  { %3414 = vmatpush1.bf16.msra.mxu0 %v7174_v24  ;;  %3455 = vmatpush1.bf16.msra.mxu1 %v7175_v31  ;;  %v7181_v24 = vld [vmem:[#allocation208_spill] sm:$0xff]  ;;  %v7182_v31 = vld [vmem:[#allocation177_spill] sm:$0xff] }
 0x303   :  { %3415 = vmatprep.subr.bf16.mxu0 %v7176_v32  ;;  %3456 = vmatprep.subr.bf16.mxu1 %v7177_v4  ;;  %v2288_v32 = vadd.f32 %v7182_v31, %v7181_v24  ;;  %v3608_v4 = vrot.slane %v5904_v11, %v5902_v9  ;;  %v7188_v24 = vld [vmem:[#allocation204_spill] sm:$0xff]  ;;  %v7189_v31 = vld [vmem:[#allocation213_spill] sm:$0xff] }
 0x306   :  { %3416 = vmatpush1.bf16.msra.mxu0 %v7178_v52  ;;  %3457 = vmatpush1.bf16.msra.mxu1 %v7179_v55  ;;  %v7185_v52 = vld [vmem:[#allocation256_spill] sm:$0xff]  ;;  %v3616_v55 = vrot.slane %v5904_v11, %v5907_v15 }
 0x307   :  { %3483 = vmatprep.subr.bf16.mxu0 %v7180_v56  ;;  %3524 = vmatprep.subr.bf16.mxu1 %v7183_v14  ;;  %v2329_v54 = vadd.f32 %v7185_v52, %v7184_v1  ;;  %v7186_v56 = vld [vmem:[#allocation211_spill] sm:$0xff]  ;;  %v3612_v14 = vrot.slane %v5904_v11, %v5911_v35  ;;  %v7190_v1 = vld [vmem:[#allocation258_spill] sm:$0xff] }
 0x308   :  { %v2290_v29 = vadd.f32 %v7187_v43, %v7186_v56  ;;  %v2331_v52 = vadd.f32 %v7190_v1, %v7189_v31  ;;  %v7192_v43 = vld [vmem:[#allocation206_spill] sm:$0xff] }
 0x309   :  { %v2943_v53 = vpop.f32.mrf.mxu0  ;;  %3434 = vmatmul.mubr.bf16.vlgmr.msra.gmra.mxu0 %v5633_v20  ;;  %v2984_v6 = vpop.f32.mrf.mxu1  ;;  %3475 = vmatmul.mubr.bf16.vlgmr.msra.gmra.mxu1 %v5633_v20  ;;  %v7194_v31 = vld [vmem:[#allocation210_spill] sm:$0xff] }
 0x30a   :  { %v3565_v10 = vadd.f32 %v2943_v53, %v2288_v32  ;;  %3484 = vmatpush1.bf16.msra.mxu0 %v7188_v24  ;;  %v3567_v46 = vadd.f32 %v2984_v6, %v2329_v54  ;;  %3525 = vmatpush1.bf16.msra.mxu1 %v7191_v38 }
 0x30b   :  { %v2945_v27 = vpop.f32.mrf.mxu0  ;;  %3485 = vmatprep.subr.bf16.mxu0 %v7192_v43  ;;  %v2986_v56 = vpop.f32.mrf.mxu1  ;;  %3526 = vmatprep.subr.bf16.mxu1 %v7193_v16 }
 0x30c   :  { %v3765_v53 = vsub.f32 %v3565_v10, %v3608_v4  ;;  %v3566_v32 = vadd.f32 %v2945_v27, %v2290_v29  ;;  %3515 = vmatprep.mubr.bf16.mxu0 %v6564_v60  ;;  %v3767_v24 = vsub.f32 %v3567_v46, %v3616_v55  ;;  %v3568_v13 = vadd.f32 %v2986_v56, %v2331_v52  ;;  %v7202_v52 = vld [vmem:[#allocation231_spill] sm:$0xff] }
 0x30d   :  { %v2947_v63 = vpop.f32.mrf.mxu0  ;;  %3556 = vmatprep.mubr.bf16.mxu1 %v6564_v60  ;;  %v2988_v54 = vpop.f32.mrf.mxu1  ;;  %v2413_v43 = vadd.f32 %v5602_v41, %v7202_v52 }
 0x30e   :  { %v3797_v6 = vmul.f32 %v3765_v53, %v3765_v53  ;;  %v3766_v38 = vsub.f32 %v3566_v32, %v3612_v14  ;;  %3486 = vmatpush1.bf16.msra.mxu0 %v7194_v31  ;;  %v3799_v1 = vmul.f32 %v3767_v24, %v3767_v24  ;;  %v3768_v62 = vsub.f32 %v3568_v13, %v3620_v19 }
 0x30f   :  { %3527 = vmatpush1.bf16.msra.mxu1 %v5156_v50  ;;  %v2948_v27 = vpop.f32.mrf.mxu0  ;;  %3487 = vmatprep.subr.bf16.mxu0 %v6964_v34  ;;  %v2989_v29 = vpop.f32.mrf.mxu1 }
 0x310   :  { %v3829_v16 = vmul.f32 -19.220001, %v3797_v6  ;;  %v3798_v10 = vmul.f32 %v3766_v38, %v3766_v38  ;;  %3528 = vmatprep.subr.bf16.mxu1 %v6965_v48  ;;  %v3831_v63 = vmul.f32 -19.220001, %v3799_v1  ;;  %v3800_v46 = vmul.f32 %v3768_v62, %v3768_v62  ;;  %v7198_v48 = vld [vmem:[#allocation227_spill] sm:$0xff]  ;;  %v7201_v62 = vld [vmem:[#allocation230_spill] sm:$0xff] }
 0x311   :  { %v2372_v13 = vadd.f32 %v5599_v25, %v7201_v62 }
 0x312   :  { %v3861_v60 = vmul.f32 1.442695, %v3829_v16  ;;  %v3830_v4 = vmul.f32 -19.220001, %v3798_v10  ;;  %3488 = vmatpush1.bf16.msra.mxu0 %v6966_v5  ;;  %v3865_v55 = vmul.f32 1.442695, %v3831_v63 }
 0x313   :  { %v3832_v14 = vmul.f32 -19.220001, %v3800_v46  ;;  %3529 = vmatpush1.bf16.msra.mxu1 %v6967_v23  ;;  %3489 = vmatprep.subr.bf16.mxu0 %v6968_v40  ;;  %v7195_v23 = vld [vmem:[#allocation224_spill] sm:$0xff]  ;;  %v7196_v40 = vld [vmem:[#allocation225_spill] sm:$0xff] }
 0x314   :  { %4236 = vpow2.f32 %v3861_v60  ;;  %v3863_v50 = vmul.f32 1.442695, %v3830_v4  ;;  %3530 = vmatprep.subr.bf16.mxu1 %v6969_v12 }
 0x315   :  { %4238 = vpow2.f32 %v3865_v55  ;;  %v3867_v34 = vmul.f32 1.442695, %v3832_v14 }
 0x316   :  { %4240 = vpow2.f32 %v3863_v50  ;;  %3490 = vmatpush1.bf16.msra.mxu0 %v6970_v0 }
 0x317   :  { %4242 = vpow2.f32 %v3867_v34  ;;  %3531 = vmatpush1.bf16.msra.mxu1 %v6971_v39  ;;  %3491 = vmatprep.subr.bf16.mxu0 %v6972_v44  ;;  %v7200_v39 = vld [vmem:[#allocation229_spill] sm:$0xff] }
 0x318   :  { %3532 = vmatprep.subr.bf16.mxu1 %v6973_v33  ;;  %v2411_v33 = vadd.f32 %v5594_v51, %v7200_v39 }
 0x31a   :  { %3492 = vmatpush1.bf16.msra.mxu0 %v5192_v61 }
 0x31b   :  { %3533 = vmatpush1.bf16.msra.mxu1 %v5196_v59  ;;  %3493 = vmatprep.subr.bf16.mxu0 %v5198_v26  ;;  %v7197_v26 = vld [vmem:[#allocation226_spill] sm:$0xff] }
 0x31c   :  { %3534 = vmatprep.subr.bf16.mxu1 %v6974_v8 }
 0x31e   :  { %3494 = vmatpush1.bf16.msra.mxu0 %v5204_v7  ;;  %v5968_v7 = vsub.s32 4, %v5895_v17 }
 0x31f   :  { %3535 = vmatpush1.bf16.msra.mxu1 %v7195_v23  ;;  %3495 = vmatprep.subr.bf16.mxu0 %v5210_v58  ;;  %v5971_v58 = vsub.s32 6, %v5895_v17 }
 0x320   :  { %3536 = vmatprep.subr.bf16.mxu1 %v7196_v40  ;;  %v3624_v12 = vrot.slane %v5904_v11, %v5968_v7 }
 0x321   :  { %v4237_v0 = vpop.eup %4236 }
 0x322   :  { %v4239_v44 = vpop.eup %4238  ;;  %3925 = vst [vmem:[#allocation8] sm:$0xff] %v4237_v0  ;;  %3496 = vmatpush1.bf16.msra.mxu0 %v5216_v42  ;;  %v5975_v42 = vsub.s32 5, %v5895_v17 }
 0x323   :  { %v4241_v61 = vpop.eup %4240  ;;  %3927 = vst [vmem:[#allocation8 + $0x10] sm:$0xff] %v4239_v44  ;;  %3537 = vmatpush1.bf16.msra.mxu1 %v5220_v3  ;;  %3497 = vmatprep.subr.bf16.mxu0 %v5222_v18  ;;  %v5979_v3 = vsub.s32 7, %v5895_v17  ;;  %v7199_v18 = vld [vmem:[#allocation228_spill] sm:$0xff] }
 0x324   :  { %v4243_v59 = vpop.eup %4242  ;;  %3926 = vst [vmem:[#allocation8 + $0x8] sm:$0xff] %v4241_v61  ;;  %3538 = vmatprep.subr.bf16.mxu1 %v7197_v26  ;;  %v2370_v5 = vadd.f32 %v5591_v49, %v7199_v18  ;;  %v3628_v49 = vrot.slane %v5904_v11, %v5975_v42  ;;  %v5999_v61 = vld [vmem:[#allocation7 + $0x8] sm:$0xff] }
 0x325   :  { %3928 = vst [vmem:[#allocation8 + $0x18] sm:$0xff] %v4243_v59  ;;  %v3636_v32 = vrot.slane %v5904_v11, %v5979_v3  ;;  %v7203_v59 = vld [vmem:[#allocation232_spill] sm:$0xff]  ;;  %v7204_v18 = vld [vmem:[#allocation233_spill] sm:$0xff]  ;;  %v3648_v39 = vrot.slane %v5999_v61, %v5907_v15 }
 0x326   :  { %3498 = vmatpush1.bf16.msra.mxu0 %v5228_v57  ;;  %v3632_v57 = vrot.slane %v5904_v11, %v5971_v58  ;;  %v2452_v26 = vadd.f32 %v5639_v21, %v7203_v59  ;;  %v7209_v59 = vld [vmem:[#allocation238_spill] sm:$0xff] }
 0x327   :  { %3539 = vmatpush1.bf16.msra.mxu1 %v7198_v48  ;;  %v3640_v48 = vrot.slane %v5999_v61, %v5902_v9 }
 0x329   :  { %v3025_v8 = vpop.f32.mrf.mxu0  ;;  %3516 = vmatmul.mubr.bf16.vlgmr.msra.gmra.mxu0 %v5633_v20  ;;  %v3066_v17 = vpop.f32.mrf.mxu1 }
 0x32a   :  { %v3569_v19 = vadd.f32 %v3025_v8, %v2370_v5  ;;  %3557 = vmatmul.mubr.bf16.vlgmr.msra.gmra.mxu1 %v5633_v20  ;;  %v3571_v51 = vadd.f32 %v3066_v17, %v2411_v33  ;;  %v2493_v5 = vadd.f32 %v5642_v22, %v7204_v18  ;;  %v7205_v33 = vld [vmem:[#allocation234_spill] sm:$0xff]  ;;  %v3652_v22 = vrot.slane %v5999_v61, %v5916_v2 }
 0x32b   :  { %v3027_v53 = vpop.f32.mrf.mxu0  ;;  %v3068_v6 = vpop.f32.mrf.mxu1  ;;  %v2454_v8 = vadd.f32 %v5647_v28, %v7205_v33 }
 0x32c   :  { %v3769_v56 = vsub.f32 %v3569_v19, %v3624_v12  ;;  %v3570_v24 = vadd.f32 %v3027_v53, %v2372_v13  ;;  %v3771_v38 = vsub.f32 %v3571_v51, %v3632_v57  ;;  %v3572_v25 = vadd.f32 %v3068_v6, %v2413_v43  ;;  %v7206_v19 = vld [vmem:[#allocation235_spill] sm:$0xff] }
 0x32d   :  { %v3029_v54 = vpop.f32.mrf.mxu0  ;;  %v3070_v20 = vpop.f32.mrf.mxu1  ;;  %v3644_v13 = vrot.slane %v5999_v61, %v5911_v35  ;;  %v2495_v21 = vadd.f32 %v5650_v30, %v7206_v19 }
 0x32e   :  { %v3801_v31 = vmul.f32 %v3769_v56, %v3769_v56  ;;  %v3770_v1 = vsub.f32 %v3570_v24, %v3628_v49  ;;  %v3803_v27 = vmul.f32 %v3771_v38, %v3771_v38  ;;  %v3772_v16 = vsub.f32 %v3572_v25, %v3636_v32 }
 0x32f   :  { %v3030_v10 = vpop.f32.mrf.mxu0  ;;  %v3071_v41 = vpop.f32.mrf.mxu1 }
 0x330   :  { %v3833_v29 = vmul.f32 -19.220001, %v3801_v31  ;;  %v3802_v63 = vmul.f32 %v3770_v1, %v3770_v1  ;;  %v3835_v46 = vmul.f32 -19.220001, %v3803_v27  ;;  %v3804_v60 = vmul.f32 %v3772_v16, %v3772_v16 }
 0x332   :  { %v3869_v4 = vmul.f32 1.442695, %v3833_v29  ;;  %v3834_v55 = vmul.f32 -19.220001, %v3802_v63  ;;  %v3873_v11 = vmul.f32 1.442695, %v3835_v46 }
 0x333   :  { %v3836_v14 = vmul.f32 -19.220001, %v3804_v60 }
 0x334   :  { %4244 = vpow2.f32 %v3869_v4  ;;  %v3871_v50 = vmul.f32 1.442695, %v3834_v55 }
 0x335   :  { %4246 = vpow2.f32 %v3873_v11  ;;  %v3875_v34 = vmul.f32 1.442695, %v3836_v14  ;;  %v7207_v14 = vld [vmem:[#allocation236_spill] sm:$0xff] }
 0x336   :  { %4248 = vpow2.f32 %v3871_v50  ;;  %v2534_v50 = vadd.f32 %v5683_v36, %v7207_v14 }
 0x337   :  { %4250 = vpow2.f32 %v3875_v34  ;;  %v3656_v34 = vrot.slane %v5999_v61, %v5968_v7 }
 0x341   :  { %v4245_v23 = vpop.eup %4244 }
 0x342   :  { %v4247_v40 = vpop.eup %4246  ;;  %3929 = vst [vmem:[#allocation8 + $0x20] sm:$0xff] %v4245_v23  ;;  %v7208_v23 = vld [vmem:[#allocation237_spill] sm:$0xff] }
 0x343   :  { %v4249_v0 = vpop.eup %4248  ;;  %3931 = vst [vmem:[#allocation8 + $0x30] sm:$0xff] %v4247_v40  ;;  %v2575_v40 = vadd.f32 %v5686_v37, %v7208_v23  ;;  %v3668_v37 = vrot.slane %v5999_v61, %v5979_v3 }
 0x344   :  { %v4251_v44 = vpop.eup %4250  ;;  %3930 = vst [vmem:[#allocation8 + $0x28] sm:$0xff] %v4249_v0 }
 0x345   :  { %3932 = vst [vmem:[#allocation8 + $0x38] sm:$0xff] %v4251_v44  ;;  %v3664_v44 = vrot.slane %v5999_v61, %v5971_v58 }
 0x349   :  { %v3107_v12 = vpop.f32.mrf.mxu0  ;;  %v3148_v62 = vpop.f32.mrf.mxu1 }
 0x34a   :  { %v3573_v57 = vadd.f32 %v3107_v12, %v2452_v26  ;;  %v3575_v17 = vadd.f32 %v3148_v62, %v2493_v5  ;;  %v2536_v26 = vadd.f32 %v5691_v45, %v7209_v59  ;;  %v3660_v5 = vrot.slane %v5999_v61, %v5975_v42  ;;  %v7210_v12 = vld [vmem:[#allocation239_spill] sm:$0xff] }
 0x34b   :  { %v3109_v49 = vpop.f32.mrf.mxu0  ;;  %v3150_v51 = vpop.f32.mrf.mxu1  ;;  %v2577_v36 = vadd.f32 %v5694_v47, %v7210_v12 }
 0x34c   :  { %v3773_v52 = vsub.f32 %v3573_v57, %v3640_v48  ;;  %v3574_v43 = vadd.f32 %v3109_v49, %v2454_v8  ;;  %v3775_v53 = vsub.f32 %v3575_v17, %v3648_v39  ;;  %v3576_v32 = vadd.f32 %v3150_v51, %v2495_v21 }
 0x34d   :  { %v3111_v56 = vpop.f32.mrf.mxu0  ;;  %v3152_v6 = vpop.f32.mrf.mxu1 }
 0x34e   :  { %v3805_v28 = vmul.f32 %v3773_v52, %v3773_v52  ;;  %v3774_v24 = vsub.f32 %v3574_v43, %v3644_v13  ;;  %v3807_v38 = vmul.f32 %v3775_v53, %v3775_v53  ;;  %v3776_v25 = vsub.f32 %v3576_v32, %v3652_v22 }
 0x34f   :  { %v3112_v54 = vpop.f32.mrf.mxu0  ;;  %v3153_v30 = vpop.f32.mrf.mxu1 }
 0x350   :  { %v3837_v31 = vmul.f32 -19.220001, %v3805_v28  ;;  %v3806_v1 = vmul.f32 %v3774_v24, %v3774_v24  ;;  %v3839_v20 = vmul.f32 -19.220001, %v3807_v38  ;;  %v3808_v27 = vmul.f32 %v3776_v25, %v3776_v25 }
 0x352   :  { %v3877_v16 = vmul.f32 1.442695, %v3837_v31  ;;  %v3838_v10 = vmul.f32 -19.220001, %v3806_v1  ;;  %v3881_v29 = vmul.f32 1.442695, %v3839_v20 }
 0x353   :  { %v3840_v63 = vmul.f32 -19.220001, %v3808_v27  ;;  %v6033_v20 = vld [vmem:[#allocation7 + $0x10] sm:$0xff]  ;;  %v7211_v27 = vld [vmem:[#allocation240_spill] sm:$0xff] }
 0x354   :  { %4252 = vpow2.f32 %v3877_v16  ;;  %v3879_v41 = vmul.f32 1.442695, %v3838_v10  ;;  %v7212_v16 = vld [vmem:[#allocation212_spill] sm:$0xff]  ;;  %v3676_v23 = vrot.slane %v6033_v20, %v5911_v35 }
 0x355   :  { %4254 = vpow2.f32 %v3881_v29  ;;  %v3883_v46 = vmul.f32 1.442695, %v3840_v63  ;;  %v2616_v10 = vadd.f32 %v7212_v16, %v7211_v27  ;;  %v3672_v29 = vrot.slane %v6033_v20, %v5902_v9  ;;  %v7213_v63 = vld [vmem:[#allocation241_spill] sm:$0xff] }
 0x356   :  { %4256 = vpow2.f32 %v3879_v41  ;;  %v7214_v41 = vld [vmem:[#allocation214_spill] sm:$0xff]  ;;  %v3696_v16 = vrot.slane %v6033_v20, %v5971_v58 }
 0x357   :  { %4258 = vpow2.f32 %v3883_v46  ;;  %v2657_v46 = vadd.f32 %v7214_v41, %v7213_v63 }
 0x361   :  { %v4253_v60 = vpop.eup %4252 }
 0x362   :  { %v4255_v4 = vpop.eup %4254  ;;  %3933 = vst [vmem:[#allocation8 + $0x40] sm:$0xff] %v4253_v60 }
 0x363   :  { %v4257_v55 = vpop.eup %4256  ;;  %3935 = vst [vmem:[#allocation8 + $0x50] sm:$0xff] %v4255_v4  ;;  %v3680_v4 = vrot.slane %v6033_v20, %v5907_v15 }
 0x364   :  { %v4259_v11 = vpop.eup %4258  ;;  %3934 = vst [vmem:[#allocation8 + $0x48] sm:$0xff] %v4257_v55  ;;  %v7215_v55 = vld [vmem:[#allocation242_spill] sm:$0xff] }
 0x365   :  { %3936 = vst [vmem:[#allocation8 + $0x58] sm:$0xff] %v4259_v11  ;;  %v7216_v11 = vld [vmem:[#allocation215_spill] sm:$0xff] }
 0x366   :  { %v2618_v14 = vadd.f32 %v7216_v11, %v7215_v55  ;;  %v7226_v55 = vld [vmem:[#allocation220_spill] sm:$0xff] }
 0x369   :  { %v3189_v0 = vpop.f32.mrf.mxu0  ;;  %v3230_v18 = vpop.f32.mrf.mxu1 }
 0x36a   :  { %v3577_v48 = vadd.f32 %v3189_v0, %v2534_v50  ;;  %v3579_v39 = vadd.f32 %v3230_v18, %v2575_v40  ;;  %v7217_v40 = vld [vmem:[#allocation243_spill] sm:$0xff]  ;;  %v7218_v0 = vld [vmem:[#allocation216_spill] sm:$0xff] }
 0x36b   :  { %v3191_v33 = vpop.f32.mrf.mxu0  ;;  %v3232_v62 = vpop.f32.mrf.mxu1 }
 0x36c   :  { %v3777_v8 = vsub.f32 %v3577_v48, %v3656_v34  ;;  %v3578_v57 = vadd.f32 %v3191_v33, %v2536_v26  ;;  %v3779_v13 = vsub.f32 %v3579_v39, %v3664_v44  ;;  %v3580_v19 = vadd.f32 %v3232_v62, %v2577_v36 }
 0x36d   :  { %v3193_v21 = vpop.f32.mrf.mxu0  ;;  %v3234_v49 = vpop.f32.mrf.mxu1  ;;  %v2659_v44 = vadd.f32 %v7218_v0, %v7217_v40  ;;  %v3684_v48 = vrot.slane %v6033_v20, %v5916_v2 }
 0x36e   :  { %v3809_v45 = vmul.f32 %v3777_v8, %v3777_v8  ;;  %v3778_v17 = vsub.f32 %v3578_v57, %v3660_v5  ;;  %v3811_v22 = vmul.f32 %v3779_v13, %v3779_v13  ;;  %v3780_v52 = vsub.f32 %v3580_v19, %v3668_v37 }
 0x36f   :  { %v3194_v43 = vpop.f32.mrf.mxu0  ;;  %v3235_v47 = vpop.f32.mrf.mxu1 }
 0x370   :  { %v3841_v51 = vmul.f32 -19.220001, %v3809_v45  ;;  %v3810_v53 = vmul.f32 %v3778_v17, %v3778_v17  ;;  %v3843_v32 = vmul.f32 -19.220001, %v3811_v22  ;;  %v3812_v56 = vmul.f32 %v3780_v52, %v3780_v52 }
 0x372   :  { %v3885_v28 = vmul.f32 1.442695, %v3841_v51  ;;  %v3842_v24 = vmul.f32 -19.220001, %v3810_v53  ;;  %v3889_v61 = vmul.f32 1.442695, %v3843_v32 }
 0x373   :  { %v3844_v6 = vmul.f32 -19.220001, %v3812_v56 }
 0x374   :  { %4260 = vpow2.f32 %v3885_v28  ;;  %v3887_v38 = vmul.f32 1.442695, %v3842_v24 }
 0x375   :  { %4262 = vpow2.f32 %v3889_v61  ;;  %v3891_v25 = vmul.f32 1.442695, %v3844_v6  ;;  %v7219_v6 = vld [vmem:[#allocation244_spill] sm:$0xff] }
 0x376   :  { %4264 = vpow2.f32 %v3887_v38  ;;  %v7220_v38 = vld [vmem:[#allocation217_spill] sm:$0xff] }
 0x377   :  { %4266 = vpow2.f32 %v3891_v25  ;;  %v2698_v25 = vadd.f32 %v7220_v38, %v7219_v6 }
 0x381   :  { %v4261_v54 = vpop.eup %4260 }
 0x382   :  { %v4263_v31 = vpop.eup %4262  ;;  %3937 = vst [vmem:[#allocation8 + $0x60] sm:$0xff] %v4261_v54  ;;  %v3688_v54 = vrot.slane %v6033_v20, %v5968_v7 }
 0x383   :  { %v4265_v1 = vpop.eup %4264  ;;  %3939 = vst [vmem:[#allocation8 + $0x70] sm:$0xff] %v4263_v31  ;;  %v7221_v31 = vld [vmem:[#allocation245_spill] sm:$0xff] }
 0x384   :  { %v4267_v30 = vpop.eup %4266  ;;  %3938 = vst [vmem:[#allocation8 + $0x68] sm:$0xff] %v4265_v1  ;;  %v7222_v1 = vld [vmem:[#allocation218_spill] sm:$0xff] }
 0x385   :  { %3940 = vst [vmem:[#allocation8 + $0x78] sm:$0xff] %v4267_v30  ;;  %v2739_v30 = vadd.f32 %v7222_v1, %v7221_v31 }
 0x389   :  { %v3271_v60 = vpop.f32.mrf.mxu0  ;;  %v3312_v34 = vpop.f32.mrf.mxu1 }
 0x38a   :  { %v3581_v50 = vadd.f32 %v3271_v60, %v2616_v10  ;;  %v3583_v59 = vadd.f32 %v3312_v34, %v2657_v46  ;;  %v7223_v10 = vld [vmem:[#allocation246_spill] sm:$0xff]  ;;  %v3692_v60 = vrot.slane %v6033_v20, %v5975_v42  ;;  %v3700_v34 = vrot.slane %v6033_v20, %v5979_v3 }
 0x38b   :  { %v3273_v26 = vpop.f32.mrf.mxu0  ;;  %v3314_v12 = vpop.f32.mrf.mxu1 }
 0x38c   :  { %v3781_v18 = vsub.f32 %v3581_v50, %v3672_v29  ;;  %v3582_v5 = vadd.f32 %v3273_v26, %v2618_v14  ;;  %v3783_v36 = vsub.f32 %v3583_v59, %v3680_v4  ;;  %v3584_v39 = vadd.f32 %v3314_v12, %v2659_v44  ;;  %v7224_v29 = vld [vmem:[#allocation219_spill] sm:$0xff] }
 0x38d   :  { %v3275_v33 = vpop.f32.mrf.mxu0  ;;  %v3316_v57 = vpop.f32.mrf.mxu1  ;;  %v2700_v63 = vadd.f32 %v7224_v29, %v7223_v10  ;;  %v7225_v4 = vld [vmem:[#allocation247_spill] sm:$0xff]  ;;  %v7234_v10 = vld [vmem:[#allocation12_spill] sm:$0xff] }
 0x38e   :  { %v3813_v37 = vmul.f32 %v3781_v18, %v3781_v18  ;;  %v3782_v8 = vsub.f32 %v3582_v5, %v3676_v23  ;;  %v3815_v62 = vmul.f32 %v3783_v36, %v3783_v36  ;;  %v3784_v13 = vsub.f32 %v3584_v39, %v3684_v48 }
 0x38f   :  { %v3276_v19 = vpop.f32.mrf.mxu0  ;;  %v3317_v17 = vpop.f32.mrf.mxu1  ;;  %v2741_v11 = vadd.f32 %v7226_v55, %v7225_v4 }
 0x390   :  { %v3845_v21 = vmul.f32 -19.220001, %v3813_v37  ;;  %v3814_v45 = vmul.f32 %v3782_v8, %v3782_v8  ;;  %v3847_v49 = vmul.f32 -19.220001, %v3815_v62  ;;  %v3816_v22 = vmul.f32 %v3784_v13, %v3784_v13 }
 0x392   :  { %v3893_v52 = vmul.f32 1.442695, %v3845_v21  ;;  %v3846_v43 = vmul.f32 -19.220001, %v3814_v45  ;;  %v3897_v51 = vmul.f32 1.442695, %v3847_v49 }
 0x393   :  { %v3848_v53 = vmul.f32 -19.220001, %v3816_v22 }
 0x394   :  { %4268 = vpow2.f32 %v3893_v52  ;;  %v3895_v47 = vmul.f32 1.442695, %v3846_v43 }
 0x395   :  { %4270 = vpow2.f32 %v3897_v51  ;;  %v3899_v32 = vmul.f32 1.442695, %v3848_v53  ;;  %v6067_v51 = vld [vmem:[#allocation7 + $0x18] sm:$0xff]  ;;  %v7227_v53 = vld [vmem:[#allocation248_spill] sm:$0xff] }
 0x396   :  { %4272 = vpow2.f32 %v3895_v47  ;;  %v7228_v47 = vld [vmem:[#allocation221_spill] sm:$0xff]  ;;  %v3712_v38 = vrot.slane %v6067_v51, %v5907_v15 }
 0x397   :  { %4274 = vpow2.f32 %v3899_v32  ;;  %v2780_v32 = vadd.f32 %v7228_v47, %v7227_v53 }
 0x3a1   :  { %v4269_v56 = vpop.eup %4268 }
 0x3a2   :  { %v4271_v28 = vpop.eup %4270  ;;  %3941 = vst [vmem:[#allocation8 + $0x80] sm:$0xff] %v4269_v56  ;;  %v3704_v56 = vrot.slane %v6067_v51, %v5902_v9 }
 0x3a3   :  { %v4273_v24 = vpop.eup %4272  ;;  %3943 = vst [vmem:[#allocation8 + $0x90] sm:$0xff] %v4271_v28  ;;  %v7229_v28 = vld [vmem:[#allocation249_spill] sm:$0xff] }
 0x3a4   :  { %v4275_v61 = vpop.eup %4274  ;;  %3942 = vst [vmem:[#allocation8 + $0x88] sm:$0xff] %v4273_v24  ;;  %v7230_v24 = vld [vmem:[#allocation222_spill] sm:$0xff] }
 0x3a5   :  { %3944 = vst [vmem:[#allocation8 + $0x98] sm:$0xff] %v4275_v61  ;;  %v2821_v61 = vadd.f32 %v7230_v24, %v7229_v28  ;;  %v7241_v28 = vld [vmem:[#allocation255_spill] sm:$0xff]  ;;  %v7242_v24 = vld [vmem:[#allocation16_spill] sm:$0xff] }
 0x3a9   :  { %v3353_v27 = vpop.f32.mrf.mxu0  ;;  %v3394_v46 = vpop.f32.mrf.mxu1 }
 0x3aa   :  { %v3585_v41 = vadd.f32 %v3353_v27, %v2698_v25  ;;  %v3587_v14 = vadd.f32 %v3394_v46, %v2739_v30  ;;  %v7231_v25 = vld [vmem:[#allocation250_spill] sm:$0xff]  ;;  %v3708_v27 = vrot.slane %v6067_v51, %v5911_v35 }
 0x3ab   :  { %v3355_v50 = vpop.f32.mrf.mxu0  ;;  %v3396_v0 = vpop.f32.mrf.mxu1 }
 0x3ac   :  { %v3785_v23 = vsub.f32 %v3585_v41, %v3688_v54  ;;  %v3586_v40 = vadd.f32 %v3355_v50, %v2700_v63  ;;  %v3787_v44 = vsub.f32 %v3587_v14, %v3696_v16  ;;  %v3588_v59 = vadd.f32 %v3396_v0, %v2741_v11  ;;  %v7232_v54 = vld [vmem:[#allocation223_spill] sm:$0xff] }
 0x3ad   :  { %v3357_v26 = vpop.f32.mrf.mxu0  ;;  %v3398_v5 = vpop.f32.mrf.mxu1  ;;  %v2782_v31 = vadd.f32 %v7232_v54, %v7231_v25  ;;  %v7233_v16 = vld [vmem:[#allocation251_spill] sm:$0xff]  ;;  %v3716_v41 = vrot.slane %v6067_v51, %v5916_v2 }
 0x3ae   :  { %v3817_v48 = vmul.f32 %v3785_v23, %v3785_v23  ;;  %v3786_v18 = vsub.f32 %v3586_v40, %v3692_v60  ;;  %v3819_v12 = vmul.f32 %v3787_v44, %v3787_v44  ;;  %v3788_v36 = vsub.f32 %v3588_v59, %v3700_v34 }
 0x3af   :  { %v3358_v39 = vpop.f32.mrf.mxu0  ;;  %v3399_v8 = vpop.f32.mrf.mxu1  ;;  %v2823_v29 = vadd.f32 %v7234_v10, %v7233_v16 }
 0x3b0   :  { %v3849_v33 = vmul.f32 -19.220001, %v3817_v48  ;;  %v3818_v37 = vmul.f32 %v3786_v18, %v3786_v18  ;;  %v3851_v57 = vmul.f32 -19.220001, %v3819_v12  ;;  %v3820_v62 = vmul.f32 %v3788_v36, %v3788_v36 }
 0x3b2   :  { %v3901_v13 = vmul.f32 1.442695, %v3849_v33  ;;  %v3850_v19 = vmul.f32 -19.220001, %v3818_v37  ;;  %v3905_v20 = vmul.f32 1.442695, %v3851_v57 }
 0x3b3   :  { %v3852_v21 = vmul.f32 -19.220001, %v3820_v62  ;;  %v7235_v62 = vld [vmem:[#allocation252_spill] sm:$0xff] }
 0x3b4   :  { %4276 = vpow2.f32 %v3901_v13  ;;  %v3903_v45 = vmul.f32 1.442695, %v3850_v19  ;;  %v7236_v13 = vld [vmem:[#allocation13_spill] sm:$0xff] }
 0x3b5   :  { %4278 = vpow2.f32 %v3905_v20  ;;  %v3907_v17 = vmul.f32 1.442695, %v3852_v21  ;;  %v2862_v19 = vadd.f32 %v7236_v13, %v7235_v62  ;;  %v3720_v20 = vrot.slane %v6067_v51, %v5968_v7  ;;  %v7237_v21 = vld [vmem:[#allocation253_spill] sm:$0xff] }
 0x3b6   :  { %4280 = vpow2.f32 %v3903_v45  ;;  %v7238_v45 = vld [vmem:[#allocation14_spill] sm:$0xff] }
 0x3b7   :  { %4282 = vpow2.f32 %v3907_v17  ;;  %v2903_v17 = vadd.f32 %v7238_v45, %v7237_v21 }
 0x3c1   :  { %v4277_v49 = vpop.eup %4276 }
 0x3c2   :  { %v4279_v22 = vpop.eup %4278  ;;  %3945 = vst [vmem:[#allocation8 + $0xa0] sm:$0xff] %v4277_v49 }
 0x3c3   :  { %v4281_v52 = vpop.eup %4280  ;;  %3947 = vst [vmem:[#allocation8 + $0xb0] sm:$0xff] %v4279_v22  ;;  %v3728_v22 = vrot.slane %v6067_v51, %v5971_v58 }
 0x3c4   :  { %v4283_v43 = vpop.eup %4282  ;;  %3946 = vst [vmem:[#allocation8 + $0xa8] sm:$0xff] %v4281_v52  ;;  %v7239_v52 = vld [vmem:[#allocation254_spill] sm:$0xff] }
 0x3c5   :  { %3948 = vst [vmem:[#allocation8 + $0xb8] sm:$0xff] %v4283_v43  ;;  %v7240_v43 = vld [vmem:[#allocation15_spill] sm:$0xff] }
 0x3c6   :  { %v2864_v53 = vadd.f32 %v7240_v43, %v7239_v52 }
 0x3c9   :  { %v3435_v6 = vpop.f32.mrf.mxu0  ;;  %v3476_v30 = vpop.f32.mrf.mxu1 }
 0x3ca   :  { %v3589_v1 = vadd.f32 %v3435_v6, %v2780_v32  ;;  %v3591_v63 = vadd.f32 %v3476_v30, %v2821_v61  ;;  %v2905_v61 = vadd.f32 %v7242_v24, %v7241_v28 }
 0x3cb   :  { %v3437_v9 = vpop.f32.mrf.mxu0  ;;  %v3478_v4 = vpop.f32.mrf.mxu1 }
 0x3cc   :  { %v3789_v46 = vsub.f32 %v3589_v1, %v3704_v56  ;;  %v3590_v60 = vadd.f32 %v3437_v9, %v2782_v31  ;;  %v3791_v15 = vsub.f32 %v3591_v63, %v3712_v38  ;;  %v3592_v55 = vadd.f32 %v3478_v4, %v2823_v29 }
 0x3cd   :  { %v3439_v11 = vpop.f32.mrf.mxu0  ;;  %v3480_v34 = vpop.f32.mrf.mxu1  ;;  %v3724_v56 = vrot.slane %v6067_v51, %v5975_v42  ;;  %v3732_v38 = vrot.slane %v6067_v51, %v5979_v3 }
 0x3ce   :  { %v3821_v14 = vmul.f32 %v3789_v46, %v3789_v46  ;;  %v3790_v50 = vsub.f32 %v3590_v60, %v3708_v27  ;;  %v3823_v23 = vmul.f32 %v3791_v15, %v3791_v15  ;;  %v3792_v40 = vsub.f32 %v3592_v55, %v3716_v41 }
 0x3cf   :  { %v3440_v35 = vpop.f32.mrf.mxu0  ;;  %v3481_v59 = vpop.f32.mrf.mxu1 }
 0x3d0   :  { %v3853_v0 = vmul.f32 -19.220001, %v3821_v14  ;;  %v3822_v44 = vmul.f32 %v3790_v50, %v3790_v50  ;;  %v3855_v26 = vmul.f32 -19.220001, %v3823_v23  ;;  %v3824_v48 = vmul.f32 %v3792_v40, %v3792_v40 }
 0x3d2   :  { %v3909_v18 = vmul.f32 1.442695, %v3853_v0  ;;  %v3854_v5 = vmul.f32 -19.220001, %v3822_v44  ;;  %v3913_v2 = vmul.f32 1.442695, %v3855_v26 }
 0x3d3   :  { %v3856_v12 = vmul.f32 -19.220001, %v3824_v48 }
 0x3d4   :  { %4284 = vpow2.f32 %v3909_v18  ;;  %v3911_v36 = vmul.f32 1.442695, %v3854_v5 }
 0x3d5   :  { %4286 = vpow2.f32 %v3913_v2  ;;  %v3915_v39 = vmul.f32 1.442695, %v3856_v12 }
 0x3d6   :  { %4288 = vpow2.f32 %v3911_v36 }
 0x3d7   :  { %4290 = vpow2.f32 %v3915_v39 }
 0x3e1   :  { %v4285_v33 = vpop.eup %4284 }
 0x3e2   :  { %v4287_v37 = vpop.eup %4286  ;;  %3949 = vst [vmem:[#allocation8 + $0xc0] sm:$0xff] %v4285_v33 }
 0x3e3   :  { %v4289_v8 = vpop.eup %4288  ;;  %3951 = vst [vmem:[#allocation8 + $0xd0] sm:$0xff] %v4287_v37 }
 0x3e4   :  { %v4291_v57 = vpop.eup %4290  ;;  %3950 = vst [vmem:[#allocation8 + $0xc8] sm:$0xff] %v4289_v8 }
 0x3e5   :  { %3952 = vst [vmem:[#allocation8 + $0xd8] sm:$0xff] %v4291_v57 }
 0x3e9   :  { %v3517_v49 = vpop.f32.mrf.mxu0 }
 0x3ea   :  { %v3593_v47 = vadd.f32 %v3517_v49, %v2862_v19  ;;  %v3558_v32 = vpop.f32.mrf.mxu1 }
 0x3eb   :  { %v3595_v6 = vadd.f32 %v3558_v32, %v2903_v17  ;;  %v3519_v7 = vpop.f32.mrf.mxu0 }
 0x3ec   :  { %v3793_v25 = vsub.f32 %v3593_v47, %v3720_v20  ;;  %v3594_v54 = vadd.f32 %v3519_v7, %v2864_v53  ;;  %v3560_v31 = vpop.f32.mrf.mxu1 }
 0x3ed   :  { %v3795_v58 = vsub.f32 %v3595_v6, %v3728_v22  ;;  %v3596_v1 = vadd.f32 %v3560_v31, %v2905_v61  ;;  %v3521_v30 = vpop.f32.mrf.mxu0 }
 0x3ee   :  { %v3825_v27 = vmul.f32 %v3793_v25, %v3793_v25  ;;  %v3794_v16 = vsub.f32 %v3594_v54, %v3724_v56  ;;  %v3562_v10 = vpop.f32.mrf.mxu1 }
 0x3ef   :  { %v3827_v29 = vmul.f32 %v3795_v58, %v3795_v58  ;;  %v3796_v63 = vsub.f32 %v3596_v1, %v3732_v38  ;;  %v3522_v42 = vpop.f32.mrf.mxu0 }
 0x3f0   :  { %v3857_v9 = vmul.f32 -19.220001, %v3825_v27  ;;  %v3826_v41 = vmul.f32 %v3794_v16, %v3794_v16  ;;  %v3563_v46 = vpop.f32.mrf.mxu1 }
 0x3f1   :  { %v3859_v60 = vmul.f32 -19.220001, %v3827_v29  ;;  %v3828_v4 = vmul.f32 %v3796_v63, %v3796_v63 }
 0x3f2   :  { %v3917_v15 = vmul.f32 1.442695, %v3857_v9  ;;  %v3858_v55 = vmul.f32 -19.220001, %v3826_v41 }
 0x3f3   :  { %v3921_v3 = vmul.f32 1.442695, %v3859_v60  ;;  %v3860_v51 = vmul.f32 -19.220001, %v3828_v4 }
 0x3f4   :  { %4292 = vpow2.f32 %v3917_v15  ;;  %v3919_v11 = vmul.f32 1.442695, %v3858_v55 }
 0x3f5   :  { %4294 = vpow2.f32 %v3921_v3  ;;  %v3923_v14 = vmul.f32 1.442695, %v3860_v51 }
 0x3f6   :  { %4296 = vpow2.f32 %v3919_v11 }
 0x3f7   :  { %4298 = vpow2.f32 %v3923_v14 }
 0x401   :  { %v4293_v50 = vpop.eup %4292 }
 0x402   :  { %v4295_v34 = vpop.eup %4294  ;;  %3953 = vst [vmem:[#allocation8 + $0xe0] sm:$0xff] %v4293_v50 }
 0x403   :  { %v4297_v23 = vpop.eup %4296  ;;  %3955 = vst [vmem:[#allocation8 + $0xf0] sm:$0xff] %v4295_v34 }
 0x404   :  { %v4299_v40 = vpop.eup %4298  ;;  %3954 = vst [vmem:[#allocation8 + $0xe8] sm:$0xff] %v4297_v23 }
 0x405   :  { %3956 = vst [vmem:[#allocation8 + $0xf8] sm:$0xff] %v4299_v40 }
 0x406   :  { %4371 = shalt.err (!%p4368_p5)
}
 0x407   :  { %3966 = dma.vmem_to_hbm [thread:$0]  %s3964_s2, 4096, %s6107_s3, [#allocation4]  }
 0x408   :  { %4384 = dma.done.wait [#allocation4], 4096  }
 0x409   :  { %4385 = vsyncadd [#allocation4], 4294963200 }
 0x40a   :  { %3970 = vsyncpa [#allocation3], 1 }
 0x40b   :  { %3971 = vsyncpa [#allocation6], 1 }
 0x40c   :  { %3972 = vsyncpa [#allocation4], 1 }

</bundles_post_ra>
